<compile_context>
chip_gen: v7x
topology: tpu7x:2x2x1
jax: 0.10.0
libtpu: 0.0.40
codegen_flags: <defaults>
</compile_context>

<pallas_src>
import jax
import jax.numpy as jnp
import numpy as np
from jax.experimental import pallas as pl
from jax.experimental.pallas import tpu as pltpu


def attention_kernel(k_ref, q_ref, v_ref, wq_ref, bq_ref, w1q_ref, w1c_ref, out_ref):
    f32 = jnp.float32

    # ---- W_q projection (bias fused), lane-dense 2-D MXU matmul ----
    q2 = jnp.dot(q_ref[...], wq_ref[...], preferred_element_type=f32) + bq_ref[...]  # (TB, E)

    # ---- scores: score[b, s] = sum_e k[b, s, e] * q2[b, e]  (== torch.matmul(k, q_t), T=1) ----
    scores = jnp.sum(k_ref[...] * q2[:, None, :], axis=-1)        # (TB, S), lane reduction

    # ---- softmax over S; normalization deferred past the value contraction ----
    m = jnp.max(scores, axis=-1, keepdims=True)
    p = jnp.exp(scores - m)                                       # (TB, S), EUP
    denom = jnp.sum(p, axis=-1, keepdims=True)                    # (TB, 1)

    # ---- context: ctx[b, d] = sum_s p[b, s] * v[b, s, d] ----
    ctx = jnp.sum(p[:, :, None] * v_ref[...], axis=1)             # (TB, Dv)
    ctx = ctx * pl.reciprocal(denom, approx=True)                 # EUP slot (nearly free)

    # ---- dense1 (bias-free) on cat([q2, ctx], -1) == q2 @ W1[:E] + ctx @ W1[E:] ----
    out = (jnp.dot(q2, w1q_ref[...], preferred_element_type=f32)
           + jnp.dot(ctx, w1c_ref[...], preferred_element_type=f32))
    out_ref[...] = out.astype(out_ref.dtype)


def attention_forward(k, q, v, p, tb=8):
    """k: (B, S, E); q: (1, B, Din); v: (B, S, Dv); returns (B, 1, Dd) like the torch module."""
    T, B, Din = q.shape
    _, S, E = k.shape
    Dv = v.shape[-1]
    Dd = p['w1'].shape[-1]
    assert T == 1, "kernel specializes to a single query step (decoder usage)"
    assert p['w1'].shape[0] == E + Dv

    tb = min(tb, B)
    grid = (pl.cdiv(B, tb),)

    # Layout plumbing in the wrapper (cheap XLA glue): batch-major 2-D query,
    # 2-D bias, and dense1 weight split so the concat never materializes.
    q2d = q[0]                         # (B, Din)
    bq2d = p['bq'].reshape(1, E)       # (1, E)
    w1q = p['w1'][:E]                  # (E, Dd)
    w1c = p['w1'][E:]                  # (Dv, Dd)

    itemsize = 4
    flops = 2 * B * (Din * E + S * E + S * Dv + E * Dd + Dv * Dd)
    bytes_accessed = itemsize * (k.size + q2d.size + v.size + p['wq'].size
                                 + bq2d.size + w1q.size + w1c.size + B * Dd)
    cost = pl.CostEstimate(flops=flops, transcendentals=B * S,
                           bytes_accessed=bytes_accessed)

    out2d = pl.pallas_call(
        attention_kernel,
        out_shape=jax.ShapeDtypeStruct((B, Dd), jnp.float32),
        grid=grid,
        in_specs=[
            pl.BlockSpec((tb, S, E), lambda i: (i, 0, 0)),    # k   (batch tile)
            pl.BlockSpec((tb, Din), lambda i: (i, 0)),        # q   (batch tile)
            pl.BlockSpec((tb, S, Dv), lambda i: (i, 0, 0)),   # v   (batch tile)
            pl.BlockSpec((Din, E), lambda i: (0, 0)),         # W_q (resident across grid)
            pl.BlockSpec((1, E), lambda i: (0, 0)),           # b_q (resident)
            pl.BlockSpec((E, Dd), lambda i: (0, 0)),          # W1[:E]
            pl.BlockSpec((Dv, Dd), lambda i: (0, 0)),         # W1[E:]
        ],
        out_specs=pl.BlockSpec((tb, Dd), lambda i: (i, 0)),
        compiler_params=pltpu.CompilerParams(
            dimension_semantics=("parallel",)),
        cost_estimate=cost,
    )(k, q2d, v, p['wq'], bq2d, w1q, w1c)

    return out2d.reshape(B, 1, Dd)     # (B, T=1, dec_dim*2), same as the torch module


def attention_reference(k, q, v, p):
    """Pure-JAX transliteration of Attention.forward (for verification)."""
    q2 = jnp.matmul(q, p['wq']) + p['bq']          # (T, B, E)
    q_t = jnp.transpose(q2, (1, 2, 0))             # (B, E, T)
    score = jnp.matmul(k, q_t)                     # (B, S, T)
    score = jnp.transpose(score, (0, 2, 1))        # (B, T, S)
    attn = jax.nn.softmax(score, axis=2)
    out = jnp.matmul(attn, v)                      # (B, T, Dv)
    qb = jnp.transpose(q2, (1, 0, 2))              # (B, T, E)
    out = jnp.matmul(jnp.concatenate([qb, out], axis=-1), p['w1'])   # (B, T, Dd)
    return out


def init_params(key, enc_dim, dec_dim, num_layers):
    E = enc_dim * 2                    # self.enc_dim
    Dd = dec_dim * 2                   # self.dec_dim
    Din = E * num_layers               # W_q input features
    ks = jax.random.split(key, 3)

    def nrm(kk, shape, scale=0.1):
        return (scale * jax.random.normal(kk, shape)).astype(jnp.float32)

    return {
        'wq': nrm(ks[0], (Din, E)),        # W_q.weight.T  (with bias)
        'bq': nrm(ks[1], (E,)),
        'w1': nrm(ks[2], (E + Dd, Dd)),    # dense1.weight.T (bias=False)
    }


if __name__ == "__main__":
    enc_dim, dec_dim, num_layers = 64, 64, 1
    B, S, T = 16, 128, 1
    E = enc_dim * 2                    # 128
    Dd = dec_dim * 2                   # 128
    Din = E * num_layers               # 128

    key = jax.random.PRNGKey(0)
    kp, kk, kq, kv = jax.random.split(key, 4)
    params = init_params(kp, enc_dim, dec_dim, num_layers)

    k = (0.5 * jax.random.normal(kk, (B, S, E))).astype(jnp.float32)      # encoder outputs
    q = (0.5 * jax.random.normal(kq, (T, B, Din))).astype(jnp.float32)    # decoder query state
    v = (0.5 * jax.random.normal(kv, (B, S, Dd))).astype(jnp.float32)     # values

    out = attention_forward(k, q, v, params)
    jax.block_until_ready(out)

    ref = attention_reference(k, q, v, params)
    # Tolerance covers the approx-reciprocal softmax normalization (EUP path).
    np.testing.assert_allclose(np.asarray(out), np.asarray(ref), rtol=5e-3, atol=5e-3)

    assert out.shape == (B, T, Dd)
    print("KERNEL_OK")
</pallas_src>

<mosaic_0001>
module attributes {stable_mosaic.version = 11 : i64} {
  func.func @attention_kernel(%arg0: i32, %arg1: memref<8x128x128xf32, #tpu.memory_space<vmem>>, %arg2: memref<8x128xf32, #tpu.memory_space<vmem>>, %arg3: memref<8x128x128xf32, #tpu.memory_space<vmem>>, %arg4: memref<128x128xf32, #tpu.memory_space<vmem>>, %arg5: memref<1x128xf32, #tpu.memory_space<vmem>>, %arg6: memref<128x128xf32, #tpu.memory_space<vmem>>, %arg7: memref<128x128xf32, #tpu.memory_space<vmem>>, %arg8: memref<8x128xf32, #tpu.memory_space<vmem>>) attributes {dimension_semantics = [#tpu.dimension_semantics<parallel>], iteration_bounds = array<i64: 2>, scalar_prefetch = 0 : i64, scratch_operands = 0 : i64, tpu.core_type = #tpu.core_type<tc>, window_params = [{transform_indices = @transform_0, window_bounds = array<i64: 8, 128, 128>}, {transform_indices = @transform_1, window_bounds = array<i64: 8, 128>}, {transform_indices = @transform_2, window_bounds = array<i64: 8, 128, 128>}, {pipeline_mode = #tpu.pipeline_mode<synchronous>, transform_indices = @transform_3, window_bounds = array<i64: 128, 128>}, {pipeline_mode = #tpu.pipeline_mode<synchronous>, transform_indices = @transform_4, window_bounds = array<i64: 1, 128>}, {pipeline_mode = #tpu.pipeline_mode<synchronous>, transform_indices = @transform_5, window_bounds = array<i64: 128, 128>}, {pipeline_mode = #tpu.pipeline_mode<synchronous>, transform_indices = @transform_6, window_bounds = array<i64: 128, 128>}, {transform_indices = @transform_7, window_bounds = array<i64: 8, 128>}]} {
    %c0 = arith.constant 0 : index
    %c0_0 = arith.constant 0 : index
    %0 = vector.load %arg2[%c0, %c0_0] : memref<8x128xf32, #tpu.memory_space<vmem>>, vector<8x128xf32>
    %c0_1 = arith.constant 0 : index
    %c0_2 = arith.constant 0 : index
    %1 = vector.load %arg4[%c0_1, %c0_2] : memref<128x128xf32, #tpu.memory_space<vmem>>, vector<128x128xf32>
    %cst = arith.constant dense<0.000000e+00> : vector<8x128xf32>
    %2 = tpu.matmul %0, %1, %cst {dimension_numbers = #tpu.dot_dimension_numbers<[1], [0], [0], [1], [0, 0, 1, 1], [], []>} : vector<8x128xf32>, vector<128x128xf32>, vector<8x128xf32> -> vector<8x128xf32>
    %c0_3 = arith.constant 0 : index
    %c0_4 = arith.constant 0 : index
    %3 = vector.load %arg5[%c0_3, %c0_4] : memref<1x128xf32, #tpu.memory_space<vmem>>, vector<1x128xf32>
    %4 = vector.broadcast %3 : vector<1x128xf32> to vector<8x128xf32>
    %5 = arith.addf %2, %4 : vector<8x128xf32>
    %c0_5 = arith.constant 0 : index
    %c0_6 = arith.constant 0 : index
    %c0_7 = arith.constant 0 : index
    %6 = vector.load %arg1[%c0_5, %c0_6, %c0_7] : memref<8x128x128xf32, #tpu.memory_space<vmem>>, vector<8x128x128xf32>
    %7 = vector.shape_cast %5 : vector<8x128xf32> to vector<8x1x128xf32>
    %8 = vector.broadcast %7 : vector<8x1x128xf32> to vector<8x128x128xf32>
    %9 = arith.mulf %6, %8 : vector<8x128x128xf32>
    %cst_8 = arith.constant dense<0.000000e+00> : vector<8x128xf32>
    %10 = vector.multi_reduction <add>, %9, %cst_8 [2] : vector<8x128x128xf32> to vector<8x128xf32>
    %cst_9 = arith.constant dense<0xFF800000> : vector<8xf32>
    %11 = vector.multi_reduction <maximumf>, %10, %cst_9 [1] : vector<8x128xf32> to vector<8xf32>
    %12 = vector.shape_cast %11 : vector<8xf32> to vector<8x1xf32>
    %13 = vector.broadcast %12 : vector<8x1xf32> to vector<8x128xf32>
    %14 = arith.subf %10, %13 : vector<8x128xf32>
    %15 = math.exp %14 : vector<8x128xf32>
    %cst_10 = arith.constant dense<0.000000e+00> : vector<8xf32>
    %16 = vector.multi_reduction <add>, %15, %cst_10 [1] : vector<8x128xf32> to vector<8xf32>
    %17 = vector.shape_cast %16 : vector<8xf32> to vector<8x1xf32>
    %18 = vector.shape_cast %15 : vector<8x128xf32> to vector<8x128x1xf32>
    %c0_11 = arith.constant 0 : index
    %c0_12 = arith.constant 0 : index
    %c0_13 = arith.constant 0 : index
    %19 = vector.load %arg3[%c0_11, %c0_12, %c0_13] : memref<8x128x128xf32, #tpu.memory_space<vmem>>, vector<8x128x128xf32>
    %20 = vector.broadcast %18 : vector<8x128x1xf32> to vector<8x128x128xf32>
    %21 = arith.mulf %20, %19 : vector<8x128x128xf32>
    %cst_14 = arith.constant dense<0.000000e+00> : vector<8x128xf32>
    %22 = vector.multi_reduction <add>, %21, %cst_14 [1] : vector<8x128x128xf32> to vector<8x128xf32>
    %23 = tpu.reciprocal %17 {approx = true} : vector<8x1xf32> -> vector<8x1xf32>
    %24 = vector.broadcast %23 : vector<8x1xf32> to vector<8x128xf32>
    %25 = arith.mulf %22, %24 : vector<8x128xf32>
    %c0_15 = arith.constant 0 : index
    %c0_16 = arith.constant 0 : index
    %26 = vector.load %arg6[%c0_15, %c0_16] : memref<128x128xf32, #tpu.memory_space<vmem>>, vector<128x128xf32>
    %cst_17 = arith.constant dense<0.000000e+00> : vector<8x128xf32>
    %27 = tpu.matmul %5, %26, %cst_17 {dimension_numbers = #tpu.dot_dimension_numbers<[1], [0], [0], [1], [0, 0, 1, 1], [], []>} : vector<8x128xf32>, vector<128x128xf32>, vector<8x128xf32> -> vector<8x128xf32>
    %c0_18 = arith.constant 0 : index
    %c0_19 = arith.constant 0 : index
    %28 = vector.load %arg7[%c0_18, %c0_19] : memref<128x128xf32, #tpu.memory_space<vmem>>, vector<128x128xf32>
    %cst_20 = arith.constant dense<0.000000e+00> : vector<8x128xf32>
    %29 = tpu.matmul %25, %28, %cst_20 {dimension_numbers = #tpu.dot_dimension_numbers<[1], [0], [0], [1], [0, 0, 1, 1], [], []>} : vector<8x128xf32>, vector<128x128xf32>, vector<8x128xf32> -> vector<8x128xf32>
    %30 = arith.addf %27, %29 : vector<8x128xf32>
    %c0_21 = arith.constant 0 : index
    %c0_22 = arith.constant 0 : index
    %31 = vector.load %arg8[%c0_21, %c0_22] : memref<8x128xf32, #tpu.memory_space<vmem>>, vector<8x128xf32>
    tpu.vector_store %arg8[%c0_21, %c0_22], %30 {strides = array<i32>} : memref<8x128xf32, #tpu.memory_space<vmem>>, vector<8x128xf32>,
    return
  }
  func.func @transform_0(%arg0: i32) -> (i32, i32, i32) {
    %c0_i32 = arith.constant 0 : i32
    %c0_i32_0 = arith.constant 0 : i32
    %c0_i32_1 = arith.constant 0 : i32
    return %arg0, %c0_i32, %c0_i32_0 : i32, i32, i32
  }
  func.func @transform_1(%arg0: i32) -> (i32, i32) {
    %c0_i32 = arith.constant 0 : i32
    %c0_i32_0 = arith.constant 0 : i32
    return %arg0, %c0_i32 : i32, i32
  }
  func.func @transform_2(%arg0: i32) -> (i32, i32, i32) {
    %c0_i32 = arith.constant 0 : i32
    %c0_i32_0 = arith.constant 0 : i32
    %c0_i32_1 = arith.constant 0 : i32
    return %arg0, %c0_i32, %c0_i32_0 : i32, i32, i32
  }
  func.func @transform_3(%arg0: i32) -> (i32, i32) {
    %c0_i32 = arith.constant 0 : i32
    %c0_i32_0 = arith.constant 0 : i32
    %c0_i32_1 = arith.constant 0 : i32
    return %c0_i32, %c0_i32_0 : i32, i32
  }
  func.func @transform_4(%arg0: i32) -> (i32, i32) {
    %c0_i32 = arith.constant 0 : i32
    %c0_i32_0 = arith.constant 0 : i32
    %c0_i32_1 = arith.constant 0 : i32
    return %c0_i32, %c0_i32_0 : i32, i32
  }
  func.func @transform_5(%arg0: i32) -> (i32, i32) {
    %c0_i32 = arith.constant 0 : i32
    %c0_i32_0 = arith.constant 0 : i32
    %c0_i32_1 = arith.constant 0 : i32
    return %c0_i32, %c0_i32_0 : i32, i32
  }
  func.func @transform_6(%arg0: i32) -> (i32, i32) {
    %c0_i32 = arith.constant 0 : i32
    %c0_i32_0 = arith.constant 0 : i32
    %c0_i32_1 = arith.constant 0 : i32
    return %c0_i32, %c0_i32_0 : i32, i32
  }
  func.func @transform_7(%arg0: i32) -> (i32, i32) {
    %c0_i32 = arith.constant 0 : i32
    %c0_i32_0 = arith.constant 0 : i32
    return %arg0, %c0_i32 : i32, i32
  }
}

</mosaic_0001>

<bundles_post_ra>
// kernel: tpu_custom_call.1
= control target key start
LH: loop header
LB: loop body
LE: loop exit
PB: predicated region body
PF: predicated region fallthrough
CT: control target
= control target key end

     0   :  { %s7944_s0 = inlined_call_operand.hbm [shape: f32[16,128,128], index: 0, kind: input, shape index: {}]   ;;  %s7945_s1 = inlined_call_operand.hbm [shape: f32[16,128], index: 1, kind: input, shape index: {}]   ;;  %s7946_s2 = inlined_call_operand.hbm [shape: f32[16,128,128], index: 2, kind: input, shape index: {}]   ;;  %s7947_s3 = inlined_call_operand.hbm [shape: f32[128,128], index: 3, kind: input, shape index: {}]   ;;  %s7948_s4 = inlined_call_operand.vmem [shape: f32[1,128], index: 4, kind: input, shape index: {}]   ;;  %s7949_s5 = inlined_call_operand.hbm [shape: f32[128,128], index: 5, kind: input, shape index: {}]   ;;  %s7950_s6 = inlined_call_operand.hbm [shape: f32[128,128], index: 6, kind: input, shape index: {}]   ;;  %s7951_s7 = inlined_call_operand.hbm [shape: f32[16,128], index: 7, kind: output, shape index: {}]  }
   0x1   :  { %8145 = sst [smem:[#allocation142_spill]] %s7945_s1 }
   0x2   :  { %8146 = sst [smem:[#allocation143_spill]] %s7947_s3 }
   0x3   :  { %8147 = sst [smem:[#allocation144_spill]] %s7951_s7 }
   0x4   :  { %12 = vsyncpa [#allocation3], 0 }
   0x5   :  { %14 = vsyncpa [#allocation3 + $0x1], 0 }
   0x6   :  { %15 = vsyncpa [#allocation6], 0 }
   0x7   :  { %17 = vsyncpa [#allocation6 + $0x1], 0 }
   0x8   :  { %18 = vsyncpa [#allocation9], 0 }
   0x9   :  { %19 = vsyncpa [#allocation12], 0 }
   0xa   :  { %20 = vsyncpa [#allocation4], 0 }
   0xb   :  { %22 = vsyncpa [#allocation4 + $0x1], 0  ;;  %s5357_s24 = smov 0   ;;  %s5359_s25 = smov 0  }
   0xc   :  { %s5361_s26 = smov 0   ;;  %s5363_s27 = smov 0  }
   0xd LB: > { %8148 = sst [smem:[#allocation19_spill]] %s5289_s24  ;;  %s5378_s28 = sadd.s32 4294967295, %s5301_s27   ;;  %s5301_s27 = sphi %s5363_s27, %s8571_s27   ;;  %s5297_s26 = sphi %s5361_s26, %s8573_s26   ;;  %s5293_s25 = sphi %s5359_s25, %s8575_s25   ;;  %s5289_s24 = sphi %s5357_s24, %s8574_s24  }
   0xe   : > { %8149 = sst [smem:[#allocation20_spill]] %s5297_s26  ;;  %s4432_s29 = sadd.s32 4294967294, %s5301_s27  }
   0xf   : > { %p48_p0 = scmp.ne.s32.totalorder %s5293_s25, %s5289_s24  ;;  %p7952_p1 = scmp.eq.s32.totalorder %s5378_s28, 0 }
  0x10   : > { %p214_p3 = scmp.eq.s32.totalorder %s4432_s29, 1  ;;  %p4433_p5 = scmp.ge.s32.totalorder %s5301_s27, 1 }
  0x11   : > { %p5387_p4 = por %p7952_p1, %p48_p0  ;;  %p221_p7 = scmp.lt.s32.totalorder %s5301_s27, 3 }
  0x12   : > { %p5392_p6 = por %p214_p3, %p48_p0  ;;  %s5303_s10 = smov [#allocation8]  }
  0x13   : > { %s8150_s30 = scalar_select %p5387_p4, 1, 0 }
  0x14   : > { %s8151_s8 = scalar_select %p5392_p6, 1, 0 }
  0x15   : > { %p5397_p8 = pnand %p4433_p5, %p221_p7  ;;  %s233_s11 = sshll.u32 %s5303_s10, 4  ;;  %s5401_s11 = int_to_ptr.vmem [resolvable:$true] %s233_s11 }
  0x16   : > { %8152 = sst [smem:[#allocation21_spill]] %s8151_s8  ;;  %s5413_s13 = sadd.s32 1, %s5301_s27  }
  0x17   : > { %s8153_s9 = scalar_select %p5397_p8, 1, 0 }
  0x18   : > { %p4715_p9 = pneg %p5397_p8  ;;  %8155 = sst [smem:[#allocation22_spill]] %s5413_s13 }
  0x19   : > { %s35_s14 = sadd.s32 1, %s5297_s26  ;;  %s32_s15 = ssub.s32 %s5301_s27, %s5413_s13 }
  0x1a   : > { %p5408_p11 = pnand %p4715_p9, %p7952_p1  ;;  %s8156_s3 = sld [smem:[#allocation143_spill]] }
  0x1c   : > { %s8154_s12 = scalar_select %p5408_p11, 1, 0 }
  0x1d   : > { %p5426_p13 = pneg %p5408_p11 }
  0x1f   : > { %s8157_s21 = scalar_select %p5426_p13, 1, 0 }
  0x20   : > { %s5049_s18 = scalar_lea.hbm %s8156_s3, 2048 }
  0x21   : > { %p5050_p12 = scmp.ne.s32.totalorder %s8156_s3, %s5049_s18  ;;  %p5056_p5 = scmp.lt.u32.totalorder %s5049_s18, %s8156_s3 }
  0x23   : > { %p5052_p0 = pnand %p5426_p13, %p5050_p12 }
  0x25   : > { %p5053_p3 = pneg %p5052_p0 }
  0x27   : > { %p5058_p7 = pnand %p5056_p5, %p5053_p3 }
  0x29   : > { %5061 = shalt.err (!%p5058_p7)
}
  0x2a   : > { %s5062_s29 = scalar_lea.vmem %s5401_s11, 2048  ;;  %p5070_p2 = scmp.lt.s32.totalorder %s5401_s11, %s5401_s11 }
  0x2b   : > { %p5063_p9 = scmp.ne.s32.totalorder %s5401_s11, %s5062_s29  ;;  %p5071_p6 = scmp.lt.s32.totalorder %s5062_s29, %s5062_s29 }
  0x2d   : > { %p5065_p10 = pnand %p5063_p9, %p5426_p13  ;;  %p5072_p12 = por %p5071_p6, %p5070_p2 }
  0x2f   : > { %p5066_p1 = pneg %p5065_p10 }
  0x31   : > { %p5073_p0 = pnand %p5072_p12, %p5066_p1 }
  0x33   : > { %5076 = shalt.err (!%p5073_p0)
}
  0x34   : > { %s7953_s10 = smov 128   ;;  %s7955_s16 = smov 8  }
  0x35   : > { %4718 = dma.hbm_to_vmem [thread:$0]  (!%p5408_p11), %s8156_s3, 2048, %s5401_s11, [#allocation9], %s7953_s10, %s7953_s10, %s7955_s16  }
  0x36   : > { %p33_p1 = scmp.eq.s32.totalorder %s32_s15, 0  ;;  %p42_p2 = scmp.ne.s32.totalorder %s5297_s26, %s5293_s25 }
  0x37   : > { %p43_p6 = scmp.eq.s32.totalorder %s5301_s27, 0  ;;  %p4742_p10 = scmp.lt.s32.totalorder %s5301_s27, 2 }
  0x38   : > { %s5455_s19 = scalar_select %p33_p1, %s5297_s26, %s35_s14  }
  0x39   : > { %p44_p3 = por %p43_p6, %p42_p2  ;;  %p8159_p5 = scmp.eq.s32.totalorder %s5378_s28, 1 }
  0x3a   : > { %8158 = sst [smem:[#allocation23_spill]] %s5455_s19  ;;  %s5464_s22 = sand.u32 1, %s5297_s26  }
  0x3b   : > { %p5459_p7 = por %p8159_p5, %p42_p2  ;;  %s298_s23 = sand.u32 1, %s5301_s27  }
  0x3c   : > { %p5468_p9 = pnand %p4742_p10, %p44_p3  ;;  %s4442_s15 = sshll.u32 %s5464_s22, 3 }
  0x3d   : > { %s8160_s20 = scalar_select %p5459_p7, 1, 0 }
  0x3e   : > { %s8162_s11 = scalar_select %p5468_p9, 1, 0 }
  0x3f   : > { %8161 = sst [smem:[#allocation24_spill]] %s8160_s20  ;;  %s4443_s14 = sshll.u32 %s5301_s27, 7 }
  0x40   : > { %s302_s17 = scalar_lea.vmem [#allocation5], %s4442_s15  ;;  %s8163_s1 = sld [smem:[#allocation142_spill]] }
  0x41   : > { %s309_s18 = sshll.u32 %s302_s17, 4  ;;  %s5481_s29 = scalar_lea.sflag [#allocation6], %s298_s23  ;;  %s5479_s18 = int_to_ptr.vmem [resolvable:$true] %s309_s18 }
  0x42   : > { %p5487_p0 = pneg %p5468_p9 }
  0x44   : > { %s8164_s26 = scalar_select %p5487_p0, 1, 0 }
  0x46   : > { %s5477_s3 = scalar_lea.hbm %s8163_s1, %s4443_s14  ;;  %s5082_s15 = scalar_lea.hbm %s8163_s1, 256 }
  0x47   : > { %s5077_s19 = scalar_lea.hbm %s5477_s3, 128  ;;  %p5083_p6 = scmp.lt.u32.totalorder %s5477_s3, %s8163_s1 }
  0x48   : > { %p5078_p12 = scmp.ne.s32.totalorder %s5477_s3, %s5077_s19  ;;  %p5084_p10 = scmp.lt.u32.totalorder %s5082_s15, %s5077_s19 }
  0x49   : > { %p5086_p5 = scmp.lt.u32.totalorder %s5077_s19, %s5477_s3 }
  0x4a   : > { %p5080_p1 = pnand %p5487_p0, %p5078_p12  ;;  %p5085_p3 = por %p5084_p10, %p5083_p6 }
  0x4c   : > { %p5081_p2 = pneg %p5080_p1  ;;  %p5087_p7 = por %p5086_p5, %p5085_p3 }
  0x4e   : > { %p5088_p4 = pnand %p5087_p7, %p5081_p2 }
  0x50   : > { %5091 = shalt.err (!%p5088_p4)
}
  0x51   : > { %s5092_s23 = scalar_lea.vmem %s5479_s18, 128  ;;  %s5306_s10 = smov [#allocation5]  }
  0x52   : > { %p5093_p12 = scmp.ne.s32.totalorder %s5479_s18, %s5092_s23  ;;  %s5097_s16 = sshll.u32 %s5306_s10, 4  ;;  %s5098_s16 = int_to_ptr.vmem [resolvable:$false] %s5097_s16 }
  0x53   : > { %s5099_s14 = scalar_lea.vmem %s5098_s16, 256  ;;  %p5100_p11 = scmp.lt.s32.totalorder %s5479_s18, %s5098_s16 }
  0x54   : > { %p5095_p1 = pnand %p5093_p12, %p5487_p0  ;;  %p5101_p13 = scmp.lt.s32.totalorder %s5099_s14, %s5092_s23 }
  0x56   : > { %p5096_p8 = pneg %p5095_p1  ;;  %p5102_p6 = por %p5101_p13, %p5100_p11 }
  0x58   : > { %p5103_p10 = pnand %p5102_p6, %p5096_p8 }
  0x5a   : > { %5106 = shalt.err (!%p5103_p10)
}
  0x5b   : > { %4731 = dma.hbm_to_vmem [thread:$0]  (!%p5468_p9), %s5477_s3, 128, %s5479_s18, %s5481_s29  }
  0x5c   : > { %s8165_s19 = sshll.u32 %s5464_s22, 10  ;;  %s5307_s1 = smov [#allocation10]  }
  0x5d   : > { %s320_s15 = scalar_lea.vmem [#allocation7], %s8165_s19  ;;  %s249_s10 = sshll.u32 %s5307_s1, 4  ;;  %s250_s10 = int_to_ptr.vmem [resolvable:$true] %s249_s10 }
  0x5e   : > { %s328_s17 = sshll.u32 %s320_s15, 4  ;;  %s5107_s14 = scalar_lea.hbm %s7949_s5, 2048  ;;  %s5513_s17 = int_to_ptr.vmem [resolvable:$true] %s328_s17 }
  0x5f   : > { %p5108_p4 = scmp.ne.s32.totalorder %s7949_s5, %s5107_s14  ;;  %p8166_p8 = scmp.ne.s32.totalorder %s8157_s21, 0 }
  0x60   : > { %p5114_p7 = scmp.lt.u32.totalorder %s5107_s14, %s7949_s5 }
  0x61   : > { %p5110_p11 = pnand %p5108_p4, %p8166_p8 }
  0x63   : > { %p5111_p13 = pneg %p5110_p11 }
  0x65   : > { %p5116_p2 = pnand %p5114_p7, %p5111_p13 }
  0x67   : > { %5119 = shalt.err (!%p5116_p2)
}
  0x68   : > { %s5120_s1 = scalar_lea.vmem %s250_s10, 2048  ;;  %p5128_p1 = scmp.lt.s32.totalorder %s250_s10, %s250_s10 }
  0x69   : > { %p5121_p3 = scmp.ne.s32.totalorder %s250_s10, %s5120_s1  ;;  %p5129_p6 = scmp.lt.s32.totalorder %s5120_s1, %s5120_s1 }
  0x6b   : > { %p5123_p5 = pnand %p5121_p3, %p8166_p8  ;;  %p5130_p10 = por %p5129_p6, %p5128_p1 }
  0x6d   : > { %p5124_p12 = pneg %p5123_p5 }
  0x6f   : > { %p5131_p9 = pnand %p5130_p10, %p5124_p12 }
  0x71   : > { %5134 = shalt.err (!%p5131_p9)
}
  0x72   : > { %p8167_p4 = scmp.ne.s32.totalorder %s8154_s12, 0  ;;  %s8168_s8 = smov 8  }
  0x73   : > { %s8169_s13 = smov 128   ;;  %s5308_s23 = smov [#allocation11]  }
  0x74   : > { %4721 = dma.hbm_to_vmem [thread:$0]  (!%p8167_p4), %s7949_s5, 2048, %s250_s10, [#allocation9], %s8169_s13, %s8169_s13, %s8168_s8  }
  0x75   : > { %s262_s16 = sshll.u32 %s5308_s23, 4  ;;  %s4462_s14 = sshll.u32 %s5301_s27, 14  ;;  %s263_s16 = int_to_ptr.vmem [resolvable:$true] %s262_s16 }
  0x76   : > { %s5135_s1 = scalar_lea.hbm %s7950_s6, 2048 }
  0x77   : > { %p5136_p9 = scmp.ne.s32.totalorder %s7950_s6, %s5135_s1  ;;  %p5142_p7 = scmp.lt.u32.totalorder %s5135_s1, %s7950_s6 }
  0x79   : > { %p5138_p11 = pnand %p5136_p9, %p8166_p8 }
  0x7b   : > { %p5139_p13 = pneg %p5138_p11 }
  0x7d   : > { %p5144_p2 = pnand %p5142_p7, %p5139_p13 }
  0x7f   : > { %5147 = shalt.err (!%p5144_p2)
}
  0x80   : > { %s5148_s10 = scalar_lea.vmem %s263_s16, 2048  ;;  %p5156_p1 = scmp.lt.s32.totalorder %s263_s16, %s263_s16 }
  0x81   : > { %p5149_p3 = scmp.ne.s32.totalorder %s263_s16, %s5148_s10  ;;  %p5157_p6 = scmp.lt.s32.totalorder %s5148_s10, %s5148_s10 }
  0x83   : > { %p5151_p5 = pnand %p5149_p3, %p8166_p8  ;;  %p5158_p10 = por %p5157_p6, %p5156_p1 }
  0x85   : > { %p5152_p12 = pneg %p5151_p5 }
  0x87   : > { %p5159_p0 = pnand %p5158_p10, %p5152_p12 }
  0x89   : > { %5162 = shalt.err (!%p5159_p0)
}
  0x8a   : > { %4724 = dma.hbm_to_vmem [thread:$0]  (!%p8167_p4), %s7950_s6, 2048, %s263_s16, [#allocation12], %s8169_s13, %s8169_s13, %s8168_s8  }
  0x8b   : > { %s5561_s15 = scalar_lea.hbm %s7944_s0, %s4462_s14  ;;  %s8170_s23 = sshll.u32 %s5464_s22, 10 }
  0x8c   : > { %s280_s12 = scalar_lea.vmem [#allocation2], %s8170_s23  ;;  %s5570_s19 = scalar_lea.hbm %s7946_s2, %s4462_s14 }
  0x8d   : > { %s288_s3 = sshll.u32 %s280_s12, 4  ;;  %s277_s16 = scalar_lea.sflag [#allocation3], %s5464_s22  ;;  %s5565_s3 = int_to_ptr.vmem [resolvable:$true] %s288_s3 }
  0x8e   : > { %s5163_s10 = scalar_lea.hbm %s5561_s15, 16384  ;;  %p8171_p8 = scmp.ne.s32.totalorder %s8164_s26, 0 }
  0x8f   : > { %p5164_p0 = scmp.ne.s32.totalorder %s5561_s15, %s5163_s10  ;;  %s5168_s21 = scalar_lea.hbm %s7944_s0, 32768 }
  0x90   : > { %p5169_p11 = scmp.lt.u32.totalorder %s5561_s15, %s7944_s0  ;;  %p5170_p13 = scmp.lt.u32.totalorder %s5168_s21, %s5163_s10 }
  0x91   : > { %p5166_p4 = pnand %p5164_p0, %p8171_p8  ;;  %p5172_p2 = scmp.lt.u32.totalorder %s5163_s10, %s5561_s15 }
  0x92   : > { %p5171_p7 = por %p5170_p13, %p5169_p11 }
  0x93   : > { %p5167_p9 = pneg %p5166_p4 }
  0x94   : > { %p5173_p3 = por %p5172_p2, %p5171_p7 }
  0x96   : > { %p5174_p5 = pnand %p5173_p3, %p5167_p9 }
  0x98   : > { %5177 = shalt.err (!%p5174_p5)
}
  0x99   : > { %s5178_s14 = scalar_lea.vmem %s5565_s3, 16384  ;;  %s5309_s12 = smov [#allocation2]  }
  0x9a   : > { %p5179_p12 = scmp.ne.s32.totalorder %s5565_s3, %s5178_s14  ;;  %s5183_s18 = sshll.u32 %s5309_s12, 4  ;;  %s5184_s18 = int_to_ptr.vmem [resolvable:$false] %s5183_s18 }
  0x9b   : > { %s5185_s1 = scalar_lea.vmem %s5184_s18, 32768  ;;  %p5186_p10 = scmp.lt.s32.totalorder %s5565_s3, %s5184_s18 }
  0x9c   : > { %p5181_p1 = pnand %p5179_p12, %p8171_p8  ;;  %p5187_p0 = scmp.lt.s32.totalorder %s5185_s1, %s5178_s14 }
  0x9e   : > { %p5182_p6 = pneg %p5181_p1  ;;  %p5188_p4 = por %p5187_p0, %p5186_p10 }
  0xa0   : > { %p5189_p11 = pnand %p5188_p4, %p5182_p6 }
  0xa2   : > { %5192 = shalt.err (!%p5189_p11)
}
  0xa3   : > { %p8172_p9 = scmp.ne.s32.totalorder %s8162_s11, 0  ;;  %s5193_s10 = scalar_lea.hbm %s5570_s19, 16384 }
  0xa4   : > { %p5194_p13 = scmp.ne.s32.totalorder %s5570_s19, %s5193_s10  ;;  %s5198_s21 = scalar_lea.hbm %s7946_s2, 32768 }
  0xa5   : > { %4728 = dma.hbm_to_vmem [thread:$0]  (!%p8172_p9), %s5561_s15, 16384, %s5565_s3, %s277_s16, %s8169_s13, %s8169_s13, %s8168_s8  }
  0xa6   : > { %p5196_p7 = pnand %p5194_p13, %p8171_p8  ;;  %p5199_p3 = scmp.lt.u32.totalorder %s5570_s19, %s7946_s2 }
  0xa7   : > { %p5200_p5 = scmp.lt.u32.totalorder %s5198_s21, %s5193_s10  ;;  %p5202_p1 = scmp.lt.u32.totalorder %s5193_s10, %s5570_s19 }
  0xa8   : > { %p5197_p2 = pneg %p5196_p7 }
  0xa9   : > { %p5201_p12 = por %p5200_p5, %p5199_p3 }
  0xab   : > { %p5203_p6 = por %p5202_p1, %p5201_p12 }
  0xad   : > { %p5204_p10 = pnand %p5203_p6, %p5197_p2 }
  0xaf   : > { %5207 = shalt.err (!%p5204_p10)
}
  0xb0   : > { %s5208_s22 = scalar_lea.vmem %s5513_s17, 16384  ;;  %s5310_s15 = smov [#allocation7]  }
  0xb1   : > { %p5209_p0 = scmp.ne.s32.totalorder %s5513_s17, %s5208_s22  ;;  %s5213_s3 = sshll.u32 %s5310_s15, 4  ;;  %s5214_s3 = int_to_ptr.vmem [resolvable:$false] %s5213_s3 }
  0xb2   : > { %s5215_s16 = scalar_lea.vmem %s5214_s3, 32768  ;;  %p5216_p13 = scmp.lt.s32.totalorder %s5513_s17, %s5214_s3 }
  0xb3   : > { %p5211_p4 = pnand %p5209_p0, %p8171_p8  ;;  %p5217_p7 = scmp.lt.s32.totalorder %s5215_s16, %s5208_s22 }
  0xb5   : > { %p5212_p11 = pneg %p5211_p4  ;;  %p5218_p3 = por %p5217_p7, %p5216_p13 }
  0xb7   : > { %p5219_p5 = pnand %p5218_p3, %p5212_p11 }
  0xb9   : > { %5222 = shalt.err (!%p5219_p5)
}
  0xba   : > { %4734 = dma.hbm_to_vmem [thread:$0]  (!%p8172_p9), %s5570_s19, 16384, %s5513_s17, %s5481_s29, %s8169_s13, %s8169_s13, %s8168_s8  }
  0xbb   : > { %p8173_p8 = scmp.ne.s32.totalorder %s8153_s9, 0 }
  0xbd   : > { %340 = sbr.rel (%p8173_p8) target bundleno = 1857 (0x741), region = 48 }
  0xc4   : > { %s5627_s26 = sand.u32 1, %s5293_s25   ;;  %p8174_p2 = scmp.ne.s32.totalorder %s8150_s30, 0 }
  0xc5   : > { %s4449_s14 = sshll.u32 %s5627_s26, 10  ;;  %s343_s12 = scalar_lea.sflag [#allocation3], %s5627_s26 }
  0xc6   : > { %s5631_s18 = scalar_lea.vmem [#allocation2], %s4449_s14 }
  0xc7   : > { %5268 = dma.done.wait (%p8174_p2), %s343_s12, 16384  }
  0xc8   : > { %5270 = vsyncadd (%p8174_p2), %s343_s12, 4294950912  ;;  %s351_s9 = sand.u32 1, %s5378_s28   ;;  %s4450_s29 = sshll.u32 %s5627_s26, 3 }
  0xc9   : > { %s352_s11 = scalar_lea.sflag [#allocation6], %s351_s9  ;;  %s5641_s17 = scalar_lea.vmem [#allocation5], %s4450_s29 }
  0xca   : > { %5272 = dma.done.wait (%p8174_p2), %s352_s11, 16512  }
  0xcb   : > { %5274 = vsyncadd (%p8174_p2), %s352_s11, 4294950784  ;;  %s5647_s8 = scalar_lea.vmem [#allocation7], %s4449_s14  ;;  %p8175_p9 = scmp.eq.s32.totalorder %s5378_s28, 0 }
  0xcd   : > { %5276 = dma.done.wait (%p8175_p9), [#allocation9], 4096   ;;  %p8176_p12 = pmov %p8175_p9 }
  0xce   : > { %p8177_p1 = pmov %p8175_p9 }
  0xcf   : > { %5278 = vsyncadd (%p8176_p12), [#allocation9], 4294963200 }
  0xd0   : > { %5280 = dma.done.wait (%p8177_p1), [#allocation12], 2048   ;;  %p8178_p6 = pmov %p8177_p1 }
  0xd1   : > { %v7977_v0 = vmov 0.0|0.0   ;;  %vm8078_vm0 = vmmov 0   ;;  %v7976_v1 = vmov 0.0   ;;  %v420_v2 = vld [vmem:[#allocation8] sm:$0xff]  ;;  %v421_v3 = vld [vmem:[#allocation8 + $0x8] sm:$0xff]  ;;  %v422_v4 = vld [vmem:[#allocation8 + $0x10] sm:$0xff]  ;;  %v7979_v29 = vlaneseq }
  0xd2   : > { %5282 = vsyncadd (%p8178_p6), [#allocation12], 4294965248  ;;  %4621 = vmatprep.subr.bf16.mxu0 %v7977_v0  ;;  %4548 = vmatprep.mubr.msk.f32.mxu0 %vm8078_vm0, %v7976_v1  ;;  %v4622_v5 = vpack.c.bf16 %v421_v3, %v420_v2  ;;  %v423_v6 = vld [vmem:[#allocation8 + $0x18] sm:$0xff]  ;;  %v424_v8 = vld [vmem:[#allocation8 + $0x20] sm:$0xff]  ;;  %v5314_v27 = vmov 1966171168  }
  0xd3   : > { %4645 = vmatprep.subr.bf16.mxu1 %v7977_v0  ;;  %4583 = vmatprep.mubr.msk.f32.mxu1 %vm8078_vm0, %v7976_v1  ;;  %v4625_v7 = vpack.c.bf16 %v423_v6, %v422_v4  ;;  %v425_v9 = vld [vmem:[#allocation8 + $0x28] sm:$0xff]  ;;  %v426_v11 = vld [vmem:[#allocation8 + $0x30] sm:$0xff]  ;;  %v427_v12 = vld [vmem:[#allocation8 + $0x38] sm:$0xff]  ;;  %v644_v28 = vunpack.c.l.s4 %v5314_v27  ;;  %v5672_v31 = vshrl.u32 %v7979_v29, 7  ;;  %vm1254_vm1 = vcmask 130112   ;;  %s8563_s19 = sld [smem:[#allocation24_spill]] }
  0xd4   : > { %4623 = vmatpush3.bf16.msra.mxu0 %v4622_v5  ;;  %v4628_v10 = vpack.c.bf16 %v425_v9, %v424_v8  ;;  %v4631_v13 = vpack.c.bf16 %v427_v12, %v426_v11  ;;  %v428_v14 = vld [vmem:[#allocation8 + $0x40] sm:$0xff]  ;;  %v429_v15 = vld [vmem:[#allocation8 + $0x48] sm:$0xff]  ;;  %v430_v17 = vld [vmem:[#allocation8 + $0x50] sm:$0xff]  ;;  %vm1261_vm2 = vcmask 195712   ;;  %vm8095_vm3 = vcmask 261312   ;;  %s416_s1 = scalar_lea.vmem [#allocation13], %s4450_s29 }
  0xd5   : > { %4624 = vmatprep.subr.bf16.mxu0 %v7977_v0  ;;  %v4634_v16 = vpack.c.bf16 %v429_v15, %v428_v14  ;;  %v431_v18 = vld [vmem:[#allocation8 + $0x58] sm:$0xff]  ;;  %v432_v20 = vld [vmem:[#allocation8 + $0x60] sm:$0xff]  ;;  %v433_v21 = vld [vmem:[#allocation8 + $0x68] sm:$0xff]  ;;  %v645_v30 = vunpack.c.0.s8 %v644_v28  ;;  %8179 = vst [vmem:[#allocation25_spill] sm:$0xff] %v5672_v31  ;;  %v5685_v38 = vsub.s32 0, %v5672_v31  ;;  %vm1275_vm4 = vcmask 326912  }
  0xd6   : > { %v4637_v19 = vpack.c.bf16 %v431_v18, %v430_v17  ;;  %v4640_v22 = vpack.c.bf16 %v433_v21, %v432_v20  ;;  %v434_v23 = vld [vmem:[#allocation8 + $0x70] sm:$0xff]  ;;  %v435_v24 = vld [vmem:[#allocation8 + $0x78] sm:$0xff]  ;;  %v515_v40 = vld [vmem:[%s5631_s18 + $0x10] sm:$0xff]  ;;  %vm8081_vm5 = vcmask 392512   ;;  %vm1289_vm6 = vcmask 458112   ;;  %s4290_s10 = sshll.u32 %s416_s1, 4  ;;  %s7897_s10 = int_to_ptr.vmem [resolvable:$true] %s4290_s10 }
  0xd7   : > { %v4643_v25 = vpack.c.bf16 %v435_v24, %v434_v23  ;;  %v419_v26 = vld [vmem:[%s5641_s17] sm:$0xff]  ;;  %v5678_v33 = vsub.s32 %v645_v30, %v5672_v31  ;;  %8181 = vst [vmem:[#allocation27_spill] sm:$0xff] %v5685_v38  ;;  %v516_v45 = vld [vmem:[%s5631_s18 + $0x18] sm:$0xff]  ;;  %v519_v54 = vld [vmem:[%s5631_s18 + $0x30] sm:$0xff]  ;;  %vm1296_vm7 = vcmask 523712   ;;  %vm1303_vm8 = vcmask 589312  }
  0xd8   : > { %4626 = vmatpush3.bf16.msra.mxu0 %v4625_v7  ;;  %v4456_v32 = vld [vmem:[%s7948_s4] ss:$0 sm:$0xff]  ;;  %v514_v46 = vld [vmem:[%s5631_s18 + $0x8] sm:$0xff]  ;;  %v520_v53 = vld [vmem:[%s5631_s18 + $0x38] sm:$0xff]  ;;  %vm1310_vm9 = vcmask 654912   ;;  %vm8102_vm10 = vcmask 720512  }
  0xd9   : > { %4627 = vmatprep.subr.bf16.mxu0 %v7977_v0  ;;  %v513_v41 = vld [vmem:[%s5631_s18] sm:$0xff]  ;;  %v518_v49 = vld [vmem:[%s5631_s18 + $0x28] sm:$0xff]  ;;  %v524_v61 = vld [vmem:[%s5631_s18 + $0x58] sm:$0xff]  ;;  %vm1324_vm11 = vcmask 786112   ;;  %vm1331_vm12 = vcmask 851712   ;;  %vm1338_vm13 = vcmask 917312  }
  0xda   : > { %v517_v50 = vld [vmem:[%s5631_s18 + $0x20] sm:$0xff]  ;;  %v522_v57 = vld [vmem:[%s5631_s18 + $0x48] sm:$0xff]  ;;  %v523_v62 = vld [vmem:[%s5631_s18 + $0x50] sm:$0xff]  ;;  %vm8090_vm14 = vcmask 982912   ;;  %vm1352_vm15 = vcmask 1048512   ;;  %vm8089_vm0 = vcmask 1041409  }
  0xdb   : > { %v521_v58 = vld [vmem:[%s5631_s18 + $0x40] sm:$0xff]  ;;  %v526_v4 = vld [vmem:[%s5631_s18 + $0x68] sm:$0xff]  ;;  %v528_v9 = vld [vmem:[%s5631_s18 + $0x78] sm:$0xff]  ;;  %s4458_s7 = sshll.u32 %s5378_s28, 7  ;;  %s8565_s20 = sld [smem:[#allocation144_spill]] }
  0xdc   : > { %4629 = vmatpush3.bf16.msra.mxu0 %v4628_v10  ;;  %v525_v5 = vld [vmem:[%s5631_s18 + $0x60] sm:$0xff]  ;;  %v527_v10 = vld [vmem:[%s5631_s18 + $0x70] sm:$0xff]  ;;  %v530_v14 = vld [vmem:[%s5631_s18 + $0x88] sm:$0xff]  ;;  %s4277_s22 = scalar_lea.sflag [#allocation4], %s5627_s26  ;;  %s5223_s15 = scalar_lea.vmem %s7897_s10, 128 }
  0xdd   : > { %4630 = vmatprep.subr.bf16.mxu0 %v7977_v0  ;;  %v529_v15 = vld [vmem:[%s5631_s18 + $0x80] sm:$0xff]  ;;  %v532_v18 = vld [vmem:[%s5631_s18 + $0x98] sm:$0xff]  ;;  %v535_v27 = vld [vmem:[%s5631_s18 + $0xb0] sm:$0xff]  ;;  %p5224_p10 = scmp.ne.s32.totalorder %s7897_s10, %s5223_s15  ;;  %p8566_p0 = scmp.ne.s32.totalorder %s8563_s19, 0 }
  0xde   : > { %v533_v23 = vld [vmem:[%s5631_s18 + $0xa0] sm:$0xff]  ;;  %v623_v1 = vld [vmem:[%s5631_s18 + $0x370] sm:$0xff]  ;;  %v624_v29 = vld [vmem:[%s5631_s18 + $0x378] sm:$0xff]  ;;  %s5316_s28 = smov [#allocation13]  }
  0xdf   : > { %p5225_p4 = pnand %p5224_p10, %p8566_p0  ;;  %s5227_s3 = sshll.u32 %s5316_s28, 4  ;;  %s5228_s3 = int_to_ptr.vmem [resolvable:$false] %s5227_s3 }
  0xe0   : > { %4632 = vmatpush3.bf16.msra.mxu0 %v4631_v13  ;;  %s5229_s16 = scalar_lea.vmem %s5228_s3, 256  ;;  %p5230_p13 = scmp.lt.s32.totalorder %s7897_s10, %s5228_s3 }
  0xe1   : > { %4633 = vmatprep.subr.bf16.mxu0 %v7977_v0  ;;  %s7902_s23 = scalar_lea.hbm %s8565_s20, %s4458_s7  ;;  %p5226_p11 = pneg %p5225_p4 }
  0xe2   : > { %p5231_p7 = scmp.lt.s32.totalorder %s5229_s16, %s5223_s15 }
  0xe4   : > { %4635 = vmatpush3.bf16.msra.mxu0 %v4634_v16  ;;  %p5232_p3 = por %p5231_p7, %p5230_p13 }
  0xe5   : > { %4636 = vmatprep.subr.bf16.mxu0 %v7977_v0 }
  0xe6   : > { %p5233_p5 = pnand %p5232_p3, %p5226_p11 }
  0xe8   : > { %4638 = vmatpush3.bf16.msra.mxu0 %v4637_v19  ;;  %v531_v19 = vld [vmem:[%s5631_s18 + $0x90] sm:$0xff] }
  0xe9   : > { %4639 = vmatprep.subr.bf16.mxu0 %v7977_v0 }
  0xec   : > { %4641 = vmatpush3.bf16.msra.mxu0 %v4640_v22  ;;  %v534_v22 = vld [vmem:[%s5631_s18 + $0xa8] sm:$0xff] }
  0xed   : > { %4642 = vmatprep.subr.bf16.mxu0 %v7977_v0  ;;  %v636_v0 = vld [vmem:[%s5631_s18 + $0x3d8] sm:$0xff] }
  0xf0   : > { %4644 = vmatpush3.bf16.msra.mxu0 %v4643_v25 }
  0xf3   : > { %4549 = vmatmul.mubr.f32.vlgmr.msra.gmra.mrb[0].mxu0 %v419_v26  ;;  %v536_v26 = vld [vmem:[%s5631_s18 + $0xb8] sm:$0xff] }
 0x1c6   : > { %v509_v34 = vpop.f32.mrb[0].mxu0 }
 0x1c7   : > { %v5680_v35 = vadd.f32 %v4456_v32, %v509_v34  ;;  %v4550_v36 = vpop.f32.mrb[1].mxu0  ;;  %v538_v32 = vld [vmem:[%s5631_s18 + $0xc8] sm:$0xff]  ;;  %v537_v34 = vld [vmem:[%s5631_s18 + $0xc0] sm:$0xff] }
 0x1c9   : > { %8180 = vst [vmem:[#allocation26_spill] sm:$0xff] %v5680_v35  ;;  %v649_v37 = vrot.slane %v5680_v35, %v5678_v33 }
 0x1cb   : > { %v5688_v39 = vrot.slane %v649_v37, %v5678_v33  ;;  %v657_v63 = vcombine.high %v649_v37, %v649_v37 }
 0x1cd   : > { %v694_v42 = vrot.slane %v5688_v39, %v5685_v38  ;;  %v5707_v6 = vrot.slane %v657_v63, %v5678_v33 }
 0x1cf   : > { %v733_v43 = vmul.f32 %v694_v42, %v515_v40  ;;  %v731_v44 = vmul.f32 %v694_v42, %v513_v41  ;;  %v734_v47 = vmul.f32 %v694_v42, %v516_v45  ;;  %v732_v48 = vmul.f32 %v694_v42, %v514_v46  ;;  %v540_v40 = vld [vmem:[%s5631_s18 + $0xd8] sm:$0xff]  ;;  %v539_v41 = vld [vmem:[%s5631_s18 + $0xd0] sm:$0xff]  ;;  %v541_v45 = vld [vmem:[%s5631_s18 + $0xe0] sm:$0xff] }
 0x1d0   : > { %v736_v51 = vmul.f32 %v694_v42, %v518_v49  ;;  %v735_v52 = vmul.f32 %v694_v42, %v517_v50  ;;  %v738_v55 = vmul.f32 %v694_v42, %v520_v53  ;;  %v737_v56 = vmul.f32 %v694_v42, %v519_v54  ;;  %v544_v49 = vld [vmem:[%s5631_s18 + $0xf8] sm:$0xff]  ;;  %v543_v50 = vld [vmem:[%s5631_s18 + $0xf0] sm:$0xff]  ;;  %v546_v54 = vld [vmem:[%s5631_s18 + $0x108] sm:$0xff] }
 0x1d1   : > { %863 = vadd.xlane.f32.xlu1 %v733_v43  ;;  %859 = vadd.xlane.f32.xlu0 %v731_v44  ;;  %v740_v59 = vmul.f32 %v694_v42, %v522_v57  ;;  %v739_v60 = vmul.f32 %v694_v42, %v521_v58  ;;  %v742_v2 = vmul.f32 %v694_v42, %v524_v61  ;;  %v542_v44 = vld [vmem:[%s5631_s18 + $0xe8] sm:$0xff]  ;;  %v548_v57 = vld [vmem:[%s5631_s18 + $0x118] sm:$0xff]  ;;  %v547_v58 = vld [vmem:[%s5631_s18 + $0x110] sm:$0xff] }
 0x1d2   : > { %v741_v3 = vmul.f32 %v694_v42, %v523_v62  ;;  %v744_v7 = vmul.f32 %v694_v42, %v526_v4  ;;  %v743_v8 = vmul.f32 %v694_v42, %v525_v5  ;;  %v698_v11 = vrot.slane %v5707_v6, %v5685_v38  ;;  %v550_v61 = vld [vmem:[%s5631_s18 + $0x128] sm:$0xff]  ;;  %v549_v62 = vld [vmem:[%s5631_s18 + $0x120] sm:$0xff]  ;;  %v551_v4 = vld [vmem:[%s5631_s18 + $0x130] sm:$0xff] }
 0x1d3   : > { %v746_v12 = vmul.f32 %v694_v42, %v528_v9  ;;  %v745_v13 = vmul.f32 %v694_v42, %v527_v10  ;;  %v687_v46 = vcombine.high %v5688_v39, %v5688_v39  ;;  %v553_v9 = vld [vmem:[%s5631_s18 + $0x140] sm:$0xff]  ;;  %v642_v10 = vcombine.high %v5680_v35, %v5680_v35 }
 0x1d4   : > { %v748_v16 = vmul.f32 %v698_v11, %v530_v14  ;;  %v747_v17 = vmul.f32 %v698_v11, %v529_v15  ;;  %v750_v20 = vmul.f32 %v698_v11, %v532_v18  ;;  %v749_v21 = vmul.f32 %v698_v11, %v531_v19  ;;  %v555_v14 = vld [vmem:[%s5631_s18 + $0x150] sm:$0xff]  ;;  %v558_v18 = vld [vmem:[%s5631_s18 + $0x168] sm:$0xff]  ;;  %v557_v19 = vld [vmem:[%s5631_s18 + $0x160] sm:$0xff] }
 0x1d5   : > { %865 = vadd.xlane.f32.xlu1 %v734_v47  ;;  %861 = vadd.xlane.f32.xlu0 %v732_v48  ;;  %v752_v24 = vmul.f32 %v698_v11, %v534_v22  ;;  %v751_v25 = vmul.f32 %v698_v11, %v533_v23  ;;  %v754_v28 = vmul.f32 %v698_v11, %v536_v26  ;;  %v560_v23 = vld [vmem:[%s5631_s18 + $0x178] sm:$0xff]  ;;  %v637_v35 = vld [vmem:[%s5631_s18 + $0x3e0] sm:$0xff] }
 0x1d6   : > { %v753_v30 = vmul.f32 %v698_v11, %v535_v27  ;;  %v756_v36 = vmul.f32 %v698_v11, %v538_v32  ;;  %v755_v37 = vmul.f32 %v698_v11, %v537_v34  ;;  %v758_v42 = vmul.f32 %v698_v11, %v540_v40 }
 0x1d7   : > { %v757_v43 = vmul.f32 %v698_v11, %v539_v41  ;;  %v760_v47 = vmul.f32 %v698_v11, %v542_v44  ;;  %v759_v48 = vmul.f32 %v698_v11, %v541_v45  ;;  %v761_v53 = vmul.f32 %v698_v11, %v543_v50  ;;  %v586_v50 = vld [vmem:[%s5631_s18 + $0x248] sm:$0xff] }
 0x1d8   : > { %v5747_v15 = vrot.slane %v642_v10, %v5678_v33  ;;  %v563_v10 = vld [vmem:[%s5631_s18 + $0x190] sm:$0xff] }
 0x1d9   : > { %869 = vadd.xlane.f32.xlu1 %v736_v51  ;;  %867 = vadd.xlane.f32.xlu0 %v735_v52  ;;  %v702_v51 = vrot.slane %v687_v46, %v5685_v38  ;;  %v762_v52 = vmul.f32 %v698_v11, %v544_v49  ;;  %v584_v46 = vld [vmem:[%s5631_s18 + $0x238] sm:$0xff] }
 0x1db   : > { %v764_v39 = vmul.f32 %v702_v51, %v546_v54  ;;  %v768_v63 = vmul.f32 %v702_v51, %v550_v61  ;;  %v775_v22 = vmul.f32 %v702_v51, %v557_v19  ;;  %v778_v26 = vmul.f32 %v702_v51, %v560_v23  ;;  %v588_v54 = vld [vmem:[%s5631_s18 + $0x258] sm:$0xff]  ;;  %v567_v19 = vld [vmem:[%s5631_s18 + $0x1b0] sm:$0xff]  ;;  %v570_v23 = vld [vmem:[%s5631_s18 + $0x1c8] sm:$0xff] }
 0x1dd   : > { %873 = vadd.xlane.f32.xlu1 %v738_v55  ;;  %871 = vadd.xlane.f32.xlu0 %v737_v56  ;;  %v545_v55 = vld [vmem:[%s5631_s18 + $0x100] sm:$0xff] }
 0x1de   : > { %v763_v56 = vmul.f32 %v702_v51, %v545_v55  ;;  %v587_v55 = vld [vmem:[%s5631_s18 + $0x250] sm:$0xff] }
 0x1e1   : > { %877 = vadd.xlane.f32.xlu1 %v740_v59  ;;  %875 = vadd.xlane.f32.xlu0 %v739_v60  ;;  %v766_v59 = vmul.f32 %v702_v51, %v548_v57  ;;  %v765_v60 = vmul.f32 %v702_v51, %v547_v58  ;;  %v590_v57 = vld [vmem:[%s5631_s18 + $0x268] sm:$0xff]  ;;  %v589_v58 = vld [vmem:[%s5631_s18 + $0x260] sm:$0xff] }
 0x1e5   : > { %881 = vadd.xlane.f32.xlu1 %v742_v2  ;;  %879 = vadd.xlane.f32.xlu0 %v741_v3  ;;  %v767_v2 = vmul.f32 %v702_v51, %v549_v62  ;;  %v552_v3 = vld [vmem:[%s5631_s18 + $0x138] sm:$0xff] }
 0x1e6   : > { %v770_v5 = vmul.f32 %v702_v51, %v552_v3  ;;  %v592_v62 = vld [vmem:[%s5631_s18 + $0x278] sm:$0xff] }
 0x1e9   : > { %885 = vadd.xlane.f32.xlu1 %v744_v7  ;;  %883 = vadd.xlane.f32.xlu0 %v743_v8  ;;  %v769_v7 = vmul.f32 %v702_v51, %v551_v4  ;;  %v554_v8 = vld [vmem:[%s5631_s18 + $0x148] sm:$0xff] }
 0x1ea   : > { %v772_v11 = vmul.f32 %v702_v51, %v554_v8 }
 0x1ed   : > { %889 = vadd.xlane.f32.xlu1 %v746_v12  ;;  %887 = vadd.xlane.f32.xlu0 %v745_v13  ;;  %v771_v12 = vmul.f32 %v702_v51, %v553_v9  ;;  %v556_v13 = vld [vmem:[%s5631_s18 + $0x158] sm:$0xff] }
 0x1ee   : > { %v564_v9 = vld [vmem:[%s5631_s18 + $0x198] sm:$0xff] }
 0x1f1   : > { %893 = vadd.xlane.f32.xlu1 %v748_v16  ;;  %891 = vadd.xlane.f32.xlu0 %v747_v17  ;;  %v774_v16 = vmul.f32 %v702_v51, %v556_v13  ;;  %v773_v17 = vmul.f32 %v702_v51, %v555_v14  ;;  %v566_v13 = vld [vmem:[%s5631_s18 + $0x1a8] sm:$0xff]  ;;  %v565_v14 = vld [vmem:[%s5631_s18 + $0x1a0] sm:$0xff] }
 0x1f5   : > { %897 = vadd.xlane.f32.xlu1 %v750_v20  ;;  %895 = vadd.xlane.f32.xlu0 %v749_v21  ;;  %v5753_v20 = vrot.slane %v5747_v15, %v5678_v33  ;;  %v776_v21 = vmul.f32 %v702_v51, %v558_v18  ;;  %v568_v18 = vld [vmem:[%s5631_s18 + $0x1b8] sm:$0xff] }
 0x1f9   : > { %901 = vadd.xlane.f32.xlu1 %v752_v24  ;;  %899 = vadd.xlane.f32.xlu0 %v751_v25  ;;  %v559_v24 = vld [vmem:[%s5631_s18 + $0x170] sm:$0xff]  ;;  %v710_v25 = vrot.slane %v5753_v20, %v5685_v38 }
 0x1fa   : > { %v777_v27 = vmul.f32 %v702_v51, %v559_v24  ;;  %v585_v51 = vld [vmem:[%s5631_s18 + $0x240] sm:$0xff] }
 0x1fb   : > { %v807_v61 = vmul.f32 %v710_v25, %v589_v58  ;;  %v810_v3 = vmul.f32 %v710_v25, %v592_v62  ;;  %v569_v24 = vld [vmem:[%s5631_s18 + $0x1c0] sm:$0xff] }
 0x1fd   : > { %905 = vadd.xlane.f32.xlu1 %v754_v28  ;;  %903 = vadd.xlane.f32.xlu0 %v753_v30  ;;  %v578_v28 = vld [vmem:[%s5631_s18 + $0x208] sm:$0xff]  ;;  %v577_v30 = vld [vmem:[%s5631_s18 + $0x200] sm:$0xff] }
 0x1fe   : > { %v796_v32 = vmul.f32 %v710_v25, %v578_v28  ;;  %v795_v34 = vmul.f32 %v710_v25, %v577_v30  ;;  %v572_v30 = vld [vmem:[%s5631_s18 + $0x1d8] sm:$0xff] }
 0x201   : > { %909 = vadd.xlane.f32.xlu1 %v756_v36  ;;  %907 = vadd.xlane.f32.xlu0 %v755_v37  ;;  %v580_v36 = vld [vmem:[%s5631_s18 + $0x218] sm:$0xff]  ;;  %v579_v37 = vld [vmem:[%s5631_s18 + $0x210] sm:$0xff] }
 0x202   : > { %v798_v40 = vmul.f32 %v710_v25, %v580_v36  ;;  %v797_v41 = vmul.f32 %v710_v25, %v579_v37  ;;  %v658_v37 = vcombine.high %v5747_v15, %v5747_v15 }
 0x205   : > { %913 = vadd.xlane.f32.xlu1 %v758_v42  ;;  %911 = vadd.xlane.f32.xlu0 %v757_v43  ;;  %v582_v42 = vld [vmem:[%s5631_s18 + $0x228] sm:$0xff]  ;;  %v581_v43 = vld [vmem:[%s5631_s18 + $0x220] sm:$0xff] }
 0x206   : > { %v800_v44 = vmul.f32 %v710_v25, %v582_v42  ;;  %v799_v45 = vmul.f32 %v710_v25, %v581_v43  ;;  %v574_v42 = vld [vmem:[%s5631_s18 + $0x1e8] sm:$0xff]  ;;  %v573_v43 = vld [vmem:[%s5631_s18 + $0x1e0] sm:$0xff] }
 0x209   : > { %917 = vadd.xlane.f32.xlu1 %v760_v47  ;;  %915 = vadd.xlane.f32.xlu0 %v759_v48  ;;  %v583_v47 = vld [vmem:[%s5631_s18 + $0x230] sm:$0xff]  ;;  %v802_v48 = vmul.f32 %v710_v25, %v584_v46  ;;  %v5807_v46 = vrot.slane %v658_v37, %v5678_v33  ;;  %v594_v33 = vld [vmem:[%s5631_s18 + $0x288] sm:$0xff] }
 0x20a   : > { %v801_v49 = vmul.f32 %v710_v25, %v583_v47  ;;  %v606_v37 = vld [vmem:[%s5631_s18 + $0x2e8] sm:$0xff] }
 0x20d   : > { %921 = vadd.xlane.f32.xlu1 %v762_v52  ;;  %919 = vadd.xlane.f32.xlu0 %v761_v53  ;;  %v804_v52 = vmul.f32 %v710_v25, %v586_v50  ;;  %v803_v53 = vmul.f32 %v710_v25, %v585_v51  ;;  %v575_v50 = vld [vmem:[%s5631_s18 + $0x1f0] sm:$0xff] }
 0x211   : > { %925 = vadd.xlane.f32.xlu1 %v764_v39  ;;  %923 = vadd.xlane.f32.xlu0 %v763_v56  ;;  %v806_v39 = vmul.f32 %v710_v25, %v588_v54  ;;  %v805_v56 = vmul.f32 %v710_v25, %v587_v55  ;;  %v593_v55 = vld [vmem:[%s5631_s18 + $0x280] sm:$0xff] }
 0x215   : > { %929 = vadd.xlane.f32.xlu1 %v766_v59  ;;  %927 = vadd.xlane.f32.xlu0 %v765_v60  ;;  %v689_v59 = vcombine.high %v5707_v6, %v5707_v6  ;;  %v808_v60 = vmul.f32 %v710_v25, %v590_v57 }
 0x219   : > { %933 = vadd.xlane.f32.xlu1 %v768_v63  ;;  %931 = vadd.xlane.f32.xlu0 %v767_v2  ;;  %v591_v63 = vld [vmem:[%s5631_s18 + $0x270] sm:$0xff]  ;;  %v706_v2 = vrot.slane %v689_v59, %v5685_v38  ;;  %v596_v59 = vld [vmem:[%s5631_s18 + $0x298] sm:$0xff] }
 0x21a   : > { %v809_v4 = vmul.f32 %v710_v25, %v591_v63 }
 0x21b   : > { %v787_v28 = vmul.f32 %v706_v2, %v569_v24  ;;  %v792_v47 = vmul.f32 %v706_v2, %v574_v42  ;;  %v793_v54 = vmul.f32 %v706_v2, %v575_v50  ;;  %v603_v24 = vld [vmem:[%s5631_s18 + $0x2d0] sm:$0xff] }
 0x21c   : > { %v607_v50 = vld [vmem:[%s5631_s18 + $0x2f0] sm:$0xff] }
 0x21d   : > { %937 = vadd.xlane.f32.xlu1 %v770_v5  ;;  %935 = vadd.xlane.f32.xlu0 %v769_v7  ;;  %v562_v5 = vld [vmem:[%s5631_s18 + $0x188] sm:$0xff]  ;;  %v561_v7 = vld [vmem:[%s5631_s18 + $0x180] sm:$0xff] }
 0x21e   : > { %v780_v6 = vmul.f32 %v706_v2, %v562_v5  ;;  %v779_v8 = vmul.f32 %v706_v2, %v561_v7 }
 0x221   : > { %941 = vadd.xlane.f32.xlu1 %v772_v11  ;;  %939 = vadd.xlane.f32.xlu0 %v771_v12  ;;  %v782_v11 = vmul.f32 %v706_v2, %v564_v9  ;;  %v781_v12 = vmul.f32 %v706_v2, %v563_v10  ;;  %v600_v9 = vld [vmem:[%s5631_s18 + $0x2b8] sm:$0xff]  ;;  %v599_v10 = vld [vmem:[%s5631_s18 + $0x2b0] sm:$0xff] }
 0x225   : > { %945 = vadd.xlane.f32.xlu1 %v774_v16  ;;  %943 = vadd.xlane.f32.xlu0 %v773_v17  ;;  %v784_v16 = vmul.f32 %v706_v2, %v566_v13  ;;  %v783_v17 = vmul.f32 %v706_v2, %v565_v14 }
 0x229   : > { %949 = vadd.xlane.f32.xlu1 %v776_v21  ;;  %947 = vadd.xlane.f32.xlu0 %v775_v22  ;;  %v786_v21 = vmul.f32 %v706_v2, %v568_v18  ;;  %v785_v22 = vmul.f32 %v706_v2, %v567_v19 }
 0x22d   : > { %953 = vadd.xlane.f32.xlu1 %v778_v26  ;;  %951 = vadd.xlane.f32.xlu0 %v777_v27  ;;  %v788_v27 = vmul.f32 %v706_v2, %v570_v23  ;;  %v604_v23 = vld [vmem:[%s5631_s18 + $0x2d8] sm:$0xff] }
 0x231   : > { %989 = vadd.xlane.f32.xlu1 %v796_v32  ;;  %987 = vadd.xlane.f32.xlu0 %v795_v34  ;;  %v571_v32 = vld [vmem:[%s5631_s18 + $0x1d0] sm:$0xff] }
 0x235   : > { %993 = vadd.xlane.f32.xlu1 %v798_v40  ;;  %991 = vadd.xlane.f32.xlu0 %v797_v41  ;;  %v790_v40 = vmul.f32 %v706_v2, %v572_v30  ;;  %v789_v41 = vmul.f32 %v706_v2, %v571_v32 }
 0x239   : > { %997 = vadd.xlane.f32.xlu1 %v800_v44  ;;  %995 = vadd.xlane.f32.xlu0 %v799_v45 }
 0x23d   : > { %1001 = vadd.xlane.f32.xlu1 %v802_v48  ;;  %999 = vadd.xlane.f32.xlu0 %v801_v49  ;;  %v791_v48 = vmul.f32 %v706_v2, %v573_v43  ;;  %v576_v49 = vld [vmem:[%s5631_s18 + $0x1f8] sm:$0xff]  ;;  %v688_v43 = vcombine.high %v5753_v20, %v5753_v20 }
 0x241   : > { %1005 = vadd.xlane.f32.xlu1 %v804_v52  ;;  %1003 = vadd.xlane.f32.xlu0 %v803_v53  ;;  %v5817_v52 = vrot.slane %v5807_v46, %v5685_v38  ;;  %v794_v53 = vmul.f32 %v706_v2, %v576_v49  ;;  %v608_v49 = vld [vmem:[%s5631_s18 + $0x2f8] sm:$0xff] }
 0x243   : > { %v812_v57 = vmul.f32 %v5817_v52, %v594_v33  ;;  %v811_v58 = vmul.f32 %v5817_v52, %v593_v55  ;;  %v814_v63 = vmul.f32 %v5817_v52, %v596_v59  ;;  %v818_v13 = vmul.f32 %v5817_v52, %v600_v9 }
 0x244   : > { %v817_v14 = vmul.f32 %v5817_v52, %v599_v10  ;;  %v822_v30 = vmul.f32 %v5817_v52, %v604_v23  ;;  %v821_v32 = vmul.f32 %v5817_v52, %v603_v24  ;;  %v5884_v33 = vrot.slane %v688_v43, %v5685_v38  ;;  %v614_v23 = vld [vmem:[%s5631_s18 + $0x328] sm:$0xff]  ;;  %v627_v24 = vld [vmem:[%s5631_s18 + $0x390] sm:$0xff] }
 0x245   : > { %1009 = vadd.xlane.f32.xlu1 %v806_v39  ;;  %1007 = vadd.xlane.f32.xlu0 %v805_v56  ;;  %v826_v55 = vmul.f32 %v5817_v52, %v608_v49  ;;  %v825_v20 = vmul.f32 %v5817_v52, %v607_v50  ;;  %v615_v43 = vld [vmem:[%s5631_s18 + $0x330] sm:$0xff] }
 0x246   : > { %v833_v50 = vmul.f32 %v5884_v33, %v615_v43  ;;  %v619_v43 = vld [vmem:[%s5631_s18 + $0x350] sm:$0xff] }
 0x249   : > { %1013 = vadd.xlane.f32.xlu1 %v808_v60  ;;  %1011 = vadd.xlane.f32.xlu0 %v807_v61  ;;  %v595_v60 = vld [vmem:[%s5631_s18 + $0x290] sm:$0xff] }
 0x24a   : > { %v813_v2 = vmul.f32 %v5817_v52, %v595_v60 }
 0x24d   : > { %1017 = vadd.xlane.f32.xlu1 %v810_v3  ;;  %1015 = vadd.xlane.f32.xlu0 %v809_v4  ;;  %v598_v3 = vld [vmem:[%s5631_s18 + $0x2a8] sm:$0xff]  ;;  %v597_v4 = vld [vmem:[%s5631_s18 + $0x2a0] sm:$0xff] }
 0x251   : > { %957 = vadd.xlane.f32.xlu1 %v780_v6  ;;  %955 = vadd.xlane.f32.xlu0 %v779_v8  ;;  %v816_v6 = vmul.f32 %v5817_v52, %v598_v3  ;;  %v815_v8 = vmul.f32 %v5817_v52, %v597_v4  ;;  %v612_v4 = vld [vmem:[%s5631_s18 + $0x318] sm:$0xff] }
 0x252   : > { %v830_v10 = vmul.f32 %v5884_v33, %v612_v4  ;;  %v617_v4 = vld [vmem:[%s5631_s18 + $0x340] sm:$0xff] }
 0x255   : > { %961 = vadd.xlane.f32.xlu1 %v782_v11  ;;  %959 = vadd.xlane.f32.xlu0 %v781_v12 }
 0x259   : > { %965 = vadd.xlane.f32.xlu1 %v784_v16  ;;  %963 = vadd.xlane.f32.xlu0 %v783_v17  ;;  %v602_v16 = vld [vmem:[%s5631_s18 + $0x2c8] sm:$0xff]  ;;  %v601_v17 = vld [vmem:[%s5631_s18 + $0x2c0] sm:$0xff] }
 0x25d   : > { %969 = vadd.xlane.f32.xlu1 %v786_v21  ;;  %967 = vadd.xlane.f32.xlu0 %v785_v22  ;;  %v820_v21 = vmul.f32 %v5817_v52, %v602_v16  ;;  %v819_v22 = vmul.f32 %v5817_v52, %v601_v17 }
 0x25e   : > { %v5788_v25 = vpop.xlane.xlu1 %863  ;;  %v5790_v26 = vpop.xlane.xlu0 %859 }
 0x25f   : > { %8182 = vst [vmem:[#allocation28_spill] sm:$0xff] %v5788_v25  ;;  %8183 = vst [vmem:[#allocation29_spill] sm:$0xff] %v5790_v26 }
 0x261   : > { %973 = vadd.xlane.f32.xlu1 %v788_v27  ;;  %971 = vadd.xlane.f32.xlu0 %v787_v28 }
 0x262   : > { %v5794_v34 = vpop.xlane.xlu1 %865  ;;  %v5796_v36 = vpop.xlane.xlu0 %861 }
 0x263   : > { %8184 = vst [vmem:[#allocation30_spill] sm:$0xff] %v5794_v34  ;;  %8185 = vst [vmem:[#allocation31_spill] sm:$0xff] %v5796_v36 }
 0x265   : > { %977 = vadd.xlane.f32.xlu1 %v790_v40  ;;  %975 = vadd.xlane.f32.xlu0 %v789_v41  ;;  %v605_v40 = vld [vmem:[%s5631_s18 + $0x2e0] sm:$0xff] }
 0x266   : > { %v5802_v44 = vpop.xlane.xlu1 %869  ;;  %v5804_v45 = vpop.xlane.xlu0 %867 }
 0x267   : > { %8186 = vst [vmem:[#allocation32_spill] sm:$0xff] %v5802_v44  ;;  %8187 = vst [vmem:[#allocation33_spill] sm:$0xff] %v5804_v45 }
 0x269   : > { %981 = vadd.xlane.f32.xlu1 %v792_v47  ;;  %979 = vadd.xlane.f32.xlu0 %v791_v48  ;;  %v824_v47 = vmul.f32 %v5817_v52, %v606_v37  ;;  %v823_v48 = vmul.f32 %v5817_v52, %v605_v40  ;;  %v832_v37 = vmul.f32 %v5884_v33, %v614_v23 }
 0x26a   : > { %v5811_v15 = vpop.xlane.xlu1 %873  ;;  %v5813_v51 = vpop.xlane.xlu0 %871 }
 0x26b   : > { %8188 = vst [vmem:[#allocation34_spill] sm:$0xff] %v5811_v15  ;;  %8189 = vst [vmem:[#allocation35_spill] sm:$0xff] %v5813_v51 }
 0x26d   : > { %985 = vadd.xlane.f32.xlu1 %v794_v53  ;;  %983 = vadd.xlane.f32.xlu0 %v793_v54 }
 0x26e   : > { %v5821_v39 = vpop.xlane.xlu1 %877  ;;  %v5823_v56 = vpop.xlane.xlu0 %875 }
 0x26f   : > { %8190 = vst [vmem:[#allocation36_spill] sm:$0xff] %v5821_v39  ;;  %8191 = vst [vmem:[#allocation37_spill] sm:$0xff] %v5823_v56 }
 0x271   : > { %1021 = vadd.xlane.f32.xlu1 %v812_v57  ;;  %1019 = vadd.xlane.f32.xlu0 %v811_v58  ;;  %v610_v57 = vld [vmem:[%s5631_s18 + $0x308] sm:$0xff]  ;;  %v609_v58 = vld [vmem:[%s5631_s18 + $0x300] sm:$0xff] }
 0x272   : > { %v5829_v61 = vpop.xlane.xlu1 %881  ;;  %v5831_v62 = vpop.xlane.xlu0 %879  ;;  %v827_v3 = vmul.f32 %v5884_v33, %v609_v58 }
 0x273   : > { %8192 = vst [vmem:[#allocation38_spill] sm:$0xff] %v5829_v61  ;;  %8193 = vst [vmem:[#allocation39_spill] sm:$0xff] %v5831_v62 }
 0x275   : > { %1025 = vadd.xlane.f32.xlu1 %v814_v63  ;;  %1023 = vadd.xlane.f32.xlu0 %v813_v2  ;;  %v690_v63 = vcombine.high %v5807_v46, %v5807_v46  ;;  %v828_v2 = vmul.f32 %v5884_v33, %v610_v57  ;;  %v629_v57 = vld [vmem:[%s5631_s18 + $0x3a0] sm:$0xff] }
 0x276   : > { %v5837_v5 = vpop.xlane.xlu1 %885  ;;  %v5839_v7 = vpop.xlane.xlu0 %883 }
 0x277   : > { %8194 = vst [vmem:[#allocation40_spill] sm:$0xff] %v5837_v5  ;;  %8195 = vst [vmem:[#allocation41_spill] sm:$0xff] %v5839_v7  ;;  %v5905_v9 = vrot.slane %v690_v63, %v5685_v38  ;;  %v638_v38 = vld [vmem:[%s5631_s18 + $0x3e8] sm:$0xff] }
 0x279   : > { %1029 = vadd.xlane.f32.xlu1 %v816_v6  ;;  %1027 = vadd.xlane.f32.xlu0 %v815_v8  ;;  %v611_v6 = vld [vmem:[%s5631_s18 + $0x310] sm:$0xff]  ;;  %v845_v40 = vmul.f32 %v5905_v9, %v627_v24 }
 0x27a   : > { %v5845_v11 = vpop.xlane.xlu1 %889  ;;  %v5847_v12 = vpop.xlane.xlu0 %887  ;;  %v829_v46 = vmul.f32 %v5884_v33, %v611_v6  ;;  %v630_v6 = vld [vmem:[%s5631_s18 + $0x3a8] sm:$0xff] }
 0x27b   : > { %8196 = vst [vmem:[#allocation42_spill] sm:$0xff] %v5845_v11  ;;  %8197 = vst [vmem:[#allocation43_spill] sm:$0xff] %v5847_v12 }
 0x27d   : > { %1033 = vadd.xlane.f32.xlu1 %v818_v13  ;;  %1031 = vadd.xlane.f32.xlu0 %v817_v14  ;;  %v613_v13 = vld [vmem:[%s5631_s18 + $0x320] sm:$0xff]  ;;  %v626_v14 = vld [vmem:[%s5631_s18 + $0x388] sm:$0xff] }
 0x27e   : > { %v5853_v18 = vpop.xlane.xlu1 %893  ;;  %v5855_v19 = vpop.xlane.xlu0 %891 }
 0x27f   : > { %8198 = vst [vmem:[#allocation44_spill] sm:$0xff] %v5853_v18  ;;  %8199 = vst [vmem:[#allocation45_spill] sm:$0xff] %v5855_v19 }
 0x281   : > { %1037 = vadd.xlane.f32.xlu1 %v820_v21  ;;  %1035 = vadd.xlane.f32.xlu0 %v819_v22  ;;  %v831_v21 = vmul.f32 %v5884_v33, %v613_v13  ;;  %v844_v22 = vmul.f32 %v5905_v9, %v626_v14  ;;  %v835_v13 = vmul.f32 %v5884_v33, %v617_v4 }
 0x282   : > { %v5861_v27 = vpop.xlane.xlu1 %897  ;;  %v5863_v28 = vpop.xlane.xlu0 %895  ;;  %v848_v14 = vmul.f32 %v5905_v9, %v630_v6 }
 0x283   : > { %8200 = vst [vmem:[#allocation46_spill] sm:$0xff] %v5861_v27  ;;  %8201 = vst [vmem:[#allocation47_spill] sm:$0xff] %v5863_v28 }
 0x285   : > { %1041 = vadd.xlane.f32.xlu1 %v822_v30  ;;  %1039 = vadd.xlane.f32.xlu0 %v821_v32 }
 0x286   : > { %v5869_v41 = vpop.xlane.xlu1 %901  ;;  %v5871_v42 = vpop.xlane.xlu0 %899 }
 0x287   : > { %8202 = vst [vmem:[#allocation48_spill] sm:$0xff] %v5869_v41  ;;  %8203 = vst [vmem:[#allocation49_spill] sm:$0xff] %v5871_v42 }
 0x289   : > { %1045 = vadd.xlane.f32.xlu1 %v824_v47  ;;  %1043 = vadd.xlane.f32.xlu0 %v823_v48  ;;  %v628_v47 = vld [vmem:[%s5631_s18 + $0x398] sm:$0xff] }
 0x28a   : > { %v5879_v53 = vpop.xlane.xlu1 %905  ;;  %v5881_v54 = vpop.xlane.xlu0 %903 }
 0x28b   : > { %8204 = vst [vmem:[#allocation50_spill] sm:$0xff] %v5879_v53  ;;  %8205 = vst [vmem:[#allocation51_spill] sm:$0xff] %v5881_v54 }
 0x28d   : > { %1049 = vadd.xlane.f32.xlu1 %v826_v55  ;;  %1047 = vadd.xlane.f32.xlu0 %v825_v20  ;;  %v846_v55 = vmul.f32 %v5905_v9, %v628_v47  ;;  %v616_v20 = vld [vmem:[%s5631_s18 + $0x338] sm:$0xff] }
 0x28e   : > { %v5890_v59 = vpop.xlane.xlu1 %909  ;;  %v5892_v60 = vpop.xlane.xlu0 %907  ;;  %v632_v47 = vld [vmem:[%s5631_s18 + $0x3b8] sm:$0xff] }
 0x28f   : > { %8206 = vst [vmem:[#allocation52_spill] sm:$0xff] %v5890_v59  ;;  %8207 = vst [vmem:[#allocation53_spill] sm:$0xff] %v5892_v60 }
 0x291   : > { %1053 = vadd.xlane.f32.xlu1 %v828_v2  ;;  %1051 = vadd.xlane.f32.xlu0 %v827_v3  ;;  %v834_v2 = vmul.f32 %v5884_v33, %v616_v20  ;;  %v847_v3 = vmul.f32 %v5905_v9, %v629_v57  ;;  %v837_v20 = vmul.f32 %v5884_v33, %v619_v43 }
 0x292   : > { %v5900_v52 = vpop.xlane.xlu1 %913  ;;  %v5902_v8 = vpop.xlane.xlu0 %911  ;;  %v850_v57 = vmul.f32 %v5905_v9, %v632_v47 }
 0x293   : > { %8208 = vst [vmem:[#allocation54_spill] sm:$0xff] %v5900_v52  ;;  %8209 = vst [vmem:[#allocation55_spill] sm:$0xff] %v5902_v8 }
 0x295   : > { %1057 = vadd.xlane.f32.xlu1 %v830_v10  ;;  %1055 = vadd.xlane.f32.xlu0 %v829_v46 }
 0x296   : > { %v5911_v16 = vpop.xlane.xlu1 %917  ;;  %v5913_v17 = vpop.xlane.xlu0 %915 }
 0x297   : > { %8210 = vst [vmem:[#allocation56_spill] sm:$0xff] %v5911_v16  ;;  %8211 = vst [vmem:[#allocation57_spill] sm:$0xff] %v5913_v17 }
 0x299   : > { %1059 = vadd.xlane.f32.xlu1 %v831_v21  ;;  %1085 = vadd.xlane.f32.xlu0 %v844_v22  ;;  %v618_v21 = vld [vmem:[%s5631_s18 + $0x348] sm:$0xff]  ;;  %v631_v22 = vld [vmem:[%s5631_s18 + $0x3b0] sm:$0xff] }
 0x29a   : > { %v5919_v30 = vpop.xlane.xlu1 %921  ;;  %v5921_v32 = vpop.xlane.xlu0 %919 }
 0x29b   : > { %8212 = vst [vmem:[#allocation58_spill] sm:$0xff] %v5919_v30  ;;  %8213 = vst [vmem:[#allocation59_spill] sm:$0xff] %v5921_v32 }
 0x29d   : > { %1061 = vadd.xlane.f32.xlu1 %v832_v37  ;;  %1087 = vadd.xlane.f32.xlu0 %v845_v40  ;;  %v836_v37 = vmul.f32 %v5884_v33, %v618_v21  ;;  %v849_v40 = vmul.f32 %v5905_v9, %v631_v22  ;;  %v621_v21 = vld [vmem:[%s5631_s18 + $0x360] sm:$0xff]  ;;  %v634_v22 = vld [vmem:[%s5631_s18 + $0x3c8] sm:$0xff] }
 0x29e   : > { %v5927_v48 = vpop.xlane.xlu1 %925  ;;  %v5929_v49 = vpop.xlane.xlu0 %923  ;;  %v839_v43 = vmul.f32 %v5884_v33, %v621_v21  ;;  %v852_v47 = vmul.f32 %v5905_v9, %v634_v22 }
 0x29f   : > { %8214 = vst [vmem:[#allocation60_spill] sm:$0xff] %v5927_v48  ;;  %8215 = vst [vmem:[#allocation61_spill] sm:$0xff] %v5929_v49 }
 0x2a1   : > { %1063 = vadd.xlane.f32.xlu1 %v833_v50  ;;  %1089 = vadd.xlane.f32.xlu0 %v846_v55 }
 0x2a2   : > { %v5935_v58 = vpop.xlane.xlu1 %929  ;;  %v5937_v63 = vpop.xlane.xlu0 %927 }
 0x2a3   : > { %8216 = vst [vmem:[#allocation62_spill] sm:$0xff] %v5935_v58  ;;  %8217 = vst [vmem:[#allocation63_spill] sm:$0xff] %v5937_v63 }
 0x2a5   : > { %1065 = vadd.xlane.f32.xlu1 %v834_v2  ;;  %1091 = vadd.xlane.f32.xlu0 %v847_v3  ;;  %v620_v2 = vld [vmem:[%s5631_s18 + $0x358] sm:$0xff]  ;;  %v633_v3 = vld [vmem:[%s5631_s18 + $0x3c0] sm:$0xff] }
 0x2a6   : > { %v5943_v10 = vpop.xlane.xlu1 %933  ;;  %v5945_v46 = vpop.xlane.xlu0 %931 }
 0x2a7   : > { %8218 = vst [vmem:[#allocation64_spill] sm:$0xff] %v5943_v10  ;;  %8219 = vst [vmem:[#allocation65_spill] sm:$0xff] %v5945_v46 }
 0x2a9   : > { %1067 = vadd.xlane.f32.xlu1 %v835_v13  ;;  %1093 = vadd.xlane.f32.xlu0 %v848_v14  ;;  %v838_v13 = vmul.f32 %v5884_v33, %v620_v2  ;;  %v851_v14 = vmul.f32 %v5905_v9, %v633_v3 }
 0x2aa   : > { %v5951_v23 = vpop.xlane.xlu1 %937  ;;  %v5953_v24 = vpop.xlane.xlu0 %935 }
 0x2ab   : > { %8220 = vst [vmem:[#allocation66_spill] sm:$0xff] %v5951_v23  ;;  %8221 = vst [vmem:[#allocation67_spill] sm:$0xff] %v5953_v24 }
 0x2ad   : > { %1069 = vadd.xlane.f32.xlu1 %v836_v37  ;;  %1095 = vadd.xlane.f32.xlu0 %v849_v40 }
 0x2ae   : > { %v5959_v50 = vpop.xlane.xlu1 %941  ;;  %v5961_v55 = vpop.xlane.xlu0 %939 }
 0x2af   : > { %8222 = vst [vmem:[#allocation68_spill] sm:$0xff] %v5959_v50  ;;  %8223 = vst [vmem:[#allocation69_spill] sm:$0xff] %v5961_v55 }
 0x2b1   : > { %1071 = vadd.xlane.f32.xlu1 %v837_v20  ;;  %1097 = vadd.xlane.f32.xlu0 %v850_v57  ;;  %v622_v20 = vld [vmem:[%s5631_s18 + $0x368] sm:$0xff]  ;;  %v635_v57 = vld [vmem:[%s5631_s18 + $0x3d0] sm:$0xff] }
 0x2b2   : > { %v5967_v4 = vpop.xlane.xlu1 %945  ;;  %v5969_v6 = vpop.xlane.xlu0 %943 }
 0x2b3   : > { %8224 = vst [vmem:[#allocation70_spill] sm:$0xff] %v5967_v4  ;;  %8225 = vst [vmem:[#allocation71_spill] sm:$0xff] %v5969_v6 }
 0x2b5   : > { %1073 = vadd.xlane.f32.xlu1 %v838_v13  ;;  %1099 = vadd.xlane.f32.xlu0 %v851_v14  ;;  %v840_v13 = vmul.f32 %v5884_v33, %v622_v20  ;;  %v853_v14 = vmul.f32 %v5905_v9, %v635_v57 }
 0x2b6   : > { %v5975_v37 = vpop.xlane.xlu1 %949  ;;  %v5977_v40 = vpop.xlane.xlu0 %947 }
 0x2b7   : > { %8226 = vst [vmem:[#allocation72_spill] sm:$0xff] %v5975_v37  ;;  %8227 = vst [vmem:[#allocation73_spill] sm:$0xff] %v5977_v40  ;;  %v640_v37 = vld [vmem:[%s5631_s18 + $0x3f8] sm:$0xff] }
 0x2b9   : > { %1075 = vadd.xlane.f32.xlu1 %v839_v43  ;;  %1101 = vadd.xlane.f32.xlu0 %v852_v47  ;;  %v841_v43 = vmul.f32 %v5884_v33, %v623_v1  ;;  %v854_v47 = vmul.f32 %v5905_v9, %v636_v0 }
 0x2ba   : > { %v5983_v2 = vpop.xlane.xlu1 %953  ;;  %v5985_v3 = vpop.xlane.xlu0 %951 }
 0x2bb   : > { %8228 = vst [vmem:[#allocation74_spill] sm:$0xff] %v5983_v2  ;;  %8229 = vst [vmem:[#allocation75_spill] sm:$0xff] %v5985_v3  ;;  %v625_v2 = vld [vmem:[%s5631_s18 + $0x380] sm:$0xff]  ;;  %v856_v3 = vmul.f32 %v5905_v9, %v638_v38 }
 0x2bd   : > { %1077 = vadd.xlane.f32.xlu1 %v840_v13  ;;  %1103 = vadd.xlane.f32.xlu0 %v853_v14  ;;  %v842_v13 = vmul.f32 %v5884_v33, %v624_v29  ;;  %v855_v14 = vmul.f32 %v5905_v9, %v637_v35  ;;  %v858_v33 = vmul.f32 %v5905_v9, %v640_v37 }
 0x2be   : > { %v5991_v21 = vpop.xlane.xlu1 %989  ;;  %v5993_v22 = vpop.xlane.xlu0 %987 }
 0x2bf   : > { %8230 = vst [vmem:[#allocation76_spill] sm:$0xff] %v5991_v21  ;;  %8231 = vst [vmem:[#allocation77_spill] sm:$0xff] %v5993_v22 }
 0x2c1   : > { %1079 = vadd.xlane.f32.xlu1 %v841_v43  ;;  %1105 = vadd.xlane.f32.xlu0 %v854_v47  ;;  %v843_v43 = vmul.f32 %v5905_v9, %v625_v2  ;;  %v639_v47 = vld [vmem:[%s5631_s18 + $0x3f0] sm:$0xff] }
 0x2c2   : > { %v5999_v20 = vpop.xlane.xlu1 %993  ;;  %v6001_v57 = vpop.xlane.xlu0 %991  ;;  %v857_v35 = vmul.f32 %v5905_v9, %v639_v47 }
 0x2c3   : > { %8232 = vst [vmem:[#allocation78_spill] sm:$0xff] %v5999_v20  ;;  %8233 = vst [vmem:[#allocation79_spill] sm:$0xff] %v6001_v57 }
 0x2c5   : > { %1081 = vadd.xlane.f32.xlu1 %v842_v13  ;;  %1107 = vadd.xlane.f32.xlu0 %v855_v14 }
 0x2c6   : > { %v6007_v1 = vpop.xlane.xlu1 %997  ;;  %v6009_v0 = vpop.xlane.xlu0 %995 }
 0x2c7   : > { %8234 = vst [vmem:[#allocation80_spill] sm:$0xff] %v6007_v1  ;;  %8235 = vst [vmem:[#allocation81_spill] sm:$0xff] %v6009_v0 }
 0x2c9   : > { %1109 = vadd.xlane.f32.xlu0 %v856_v3  ;;  %1083 = vadd.xlane.f32.xlu1 %v843_v43 }
 0x2ca   : > { %v6015_v40 = vpop.xlane.xlu1 %1001  ;;  %v6017_v29 = vpop.xlane.xlu0 %999 }
 0x2cb   : > { %8236 = vst [vmem:[#allocation82_spill] sm:$0xff] %v6015_v40  ;;  %8237 = vst [vmem:[#allocation83_spill] sm:$0xff] %v6017_v29 }
 0x2cd   : > { %1111 = vadd.xlane.f32.xlu0 %v857_v35  ;;  %1113 = vadd.xlane.f32.xlu1 %v858_v33 }
 0x2ce   : > { %v6021_v13 = vpop.xlane.xlu1 %1005  ;;  %v6023_v14 = vpop.xlane.xlu0 %1003 }
 0x2cf   : > { %8238 = vst [vmem:[#allocation84_spill] sm:$0xff] %v6021_v13  ;;  %8239 = vst [vmem:[#allocation85_spill] sm:$0xff] %v6023_v14 }
 0x2d2   : > { %v6025_v38 = vpop.xlane.xlu1 %1009  ;;  %v6027_v2 = vpop.xlane.xlu0 %1007 }
 0x2d3   : > { %8240 = vst [vmem:[#allocation86_spill] sm:$0xff] %v6025_v38  ;;  %8241 = vst [vmem:[#allocation87_spill] sm:$0xff] %v6027_v2 }
 0x2d6   : > { %v6029_v3 = vpop.xlane.xlu1 %1013  ;;  %v6031_v43 = vpop.xlane.xlu0 %1011 }
 0x2d7   : > { %8242 = vst [vmem:[#allocation88_spill] sm:$0xff] %v6029_v3  ;;  %8243 = vst [vmem:[#allocation89_spill] sm:$0xff] %v6031_v43 }
 0x2da   : > { %v6033_v40 = vpop.xlane.xlu1 %1017  ;;  %v6035_v4 = vpop.xlane.xlu0 %1015 }
 0x2db   : > { %8244 = vst [vmem:[#allocation90_spill] sm:$0xff] %v6033_v40  ;;  %8245 = vst [vmem:[#allocation91_spill] sm:$0xff] %v6035_v4 }
 0x2de   : > { %v6037_v47 = vpop.xlane.xlu1 %957  ;;  %v6039_v9 = vpop.xlane.xlu0 %955 }
 0x2df   : > { %8246 = vst [vmem:[#allocation92_spill] sm:$0xff] %v6037_v47  ;;  %8247 = vst [vmem:[#allocation93_spill] sm:$0xff] %v6039_v9 }
 0x2e2   : > { %v6041_v37 = vpop.xlane.xlu1 %961  ;;  %v6043_v35 = vpop.xlane.xlu0 %959 }
 0x2e3   : > { %8248 = vst [vmem:[#allocation94_spill] sm:$0xff] %v6041_v37  ;;  %8249 = vst [vmem:[#allocation95_spill] sm:$0xff] %v6043_v35 }
 0x2e6   : > { %v6045_v33 = vpop.xlane.xlu1 %965  ;;  %v6047_v38 = vpop.xlane.xlu0 %963 }
 0x2e7   : > { %8250 = vst [vmem:[#allocation96_spill] sm:$0xff] %v6045_v33  ;;  %8251 = vst [vmem:[#allocation97_spill] sm:$0xff] %v6047_v38 }
 0x2ea   : > { %v6049_v2 = vpop.xlane.xlu1 %969  ;;  %v6051_v3 = vpop.xlane.xlu0 %967 }
 0x2eb   : > { %8252 = vst [vmem:[#allocation98_spill] sm:$0xff] %v6049_v2  ;;  %8253 = vst [vmem:[#allocation99_spill] sm:$0xff] %v6051_v3 }
 0x2ee   : > { %v6053_v43 = vpop.xlane.xlu1 %973  ;;  %v6055_v40 = vpop.xlane.xlu0 %971 }
 0x2ef   : > { %8254 = vst [vmem:[#allocation100_spill] sm:$0xff] %v6053_v43  ;;  %8255 = vst [vmem:[#allocation101_spill] sm:$0xff] %v6055_v40 }
 0x2f2   : > { %v6057_v4 = vpop.xlane.xlu1 %977  ;;  %v6059_v13 = vpop.xlane.xlu0 %975 }
 0x2f3   : > { %8256 = vst [vmem:[#allocation102_spill] sm:$0xff] %v6057_v4  ;;  %8257 = vst [vmem:[#allocation103_spill] sm:$0xff] %v6059_v13  ;;  %v8268_v13 = vlaneseq }
 0x2f6   : > { %v6061_v14 = vpop.xlane.xlu1 %981  ;;  %v6063_v29 = vpop.xlane.xlu0 %979 }
 0x2f7   : > { %8258 = vst [vmem:[#allocation104_spill] sm:$0xff] %v6061_v14  ;;  %8259 = vst [vmem:[#allocation105_spill] sm:$0xff] %v6063_v29  ;;  %v6082_v14 = vand.u32 127, %v8268_v13 }
 0x2f9   : > { %v1249_v29 = vadd.s32 4294967288, %v6082_v14  ;;  %v1263_v13 = vadd.s32 4294967272, %v6082_v14  ;;  %v1291_v38 = vadd.s32 4294967240, %v6082_v14 }
 0x2fa   : > { %v6065_v6 = vpop.xlane.xlu1 %985  ;;  %v6067_v1 = vpop.xlane.xlu0 %983 }
 0x2fb   : > { %8260 = vst [vmem:[#allocation106_spill] sm:$0xff] %v6065_v6  ;;  %8261 = vst [vmem:[#allocation107_spill] sm:$0xff] %v6067_v1  ;;  %v6090_v33 = vsub.s32 %v1249_v29, %v5672_v31  ;;  %v6115_v20 = vsub.s32 %v1263_v13, %v5672_v31 }
 0x2fe   : > { %v6069_v50 = vpop.xlane.xlu1 %1021  ;;  %v6071_v2 = vpop.xlane.xlu0 %1019 }
 0x2ff   : > { %8262 = vst [vmem:[#allocation108_spill] sm:$0xff] %v6069_v50  ;;  %8263 = vst [vmem:[#allocation109_spill] sm:$0xff] %v6071_v2 }
 0x302   : > { %v6073_v3 = vpop.xlane.xlu1 %1025  ;;  %v6075_v43 = vpop.xlane.xlu0 %1023 }
 0x303   : > { %8264 = vst [vmem:[#allocation110_spill] sm:$0xff] %v6073_v3  ;;  %8265 = vst [vmem:[#allocation111_spill] sm:$0xff] %v6075_v43 }
 0x306   : > { %v6077_v40 = vpop.xlane.xlu1 %1029  ;;  %v6079_v4 = vpop.xlane.xlu0 %1027 }
 0x307   : > { %8266 = vst [vmem:[#allocation112_spill] sm:$0xff] %v6077_v40  ;;  %8267 = vst [vmem:[#allocation113_spill] sm:$0xff] %v6079_v4  ;;  %v1256_v40 = vadd.s32 4294967280, %v6082_v14  ;;  %v6099_v4 = vsub.s32 %v6082_v14, %v5672_v31 }
 0x309   : > { %8273 = vst [vmem:[#allocation118_spill] sm:$0xff] %v6099_v4  ;;  %v6109_v29 = vsub.s32 %v1256_v40, %v5672_v31 }
 0x30a   : > { %v6085_v6 = vpop.xlane.xlu1 %1033  ;;  %v6087_v1 = vpop.xlane.xlu0 %1031 }
 0x30b   : > { %8269 = vst [vmem:[#allocation114_spill] sm:$0xff] %v6085_v6  ;;  %8270 = vst [vmem:[#allocation115_spill] sm:$0xff] %v6087_v1  ;;  %v1253_v6 = vrot.slane %v5796_v36, %v6090_v33  ;;  %v1277_v36 = vadd.s32 4294967256, %v6082_v14  ;;  %v1260_v40 = vrot.slane %v5788_v25, %v6109_v29 }
 0x30c   : > { %8276 = vst [vmem:[#allocation121_spill] sm:$0xff] %v6109_v29 }
 0x30e   : > { %v6092_v0 = vpop.xlane.xlu1 %1037  ;;  %v6094_v3 = vpop.xlane.xlu0 %1035 }
 0x30f   : > { %8271 = vst [vmem:[#allocation116_spill] sm:$0xff] %v6092_v0  ;;  %8272 = vst [vmem:[#allocation117_spill] sm:$0xff] %v6094_v3  ;;  %v1270_v0 = vadd.s32 4294967264, %v6082_v14  ;;  %v1248_v3 = vrot.slane %v5790_v26, %v6099_v4  ;;  %v1284_v26 = vadd.s32 4294967248, %v6082_v14 }
 0x311   : > { %v1255_v23 = vsel %vm1254_vm1, %v1253_v6, %v1248_v3  ;;  %v6126_v43 = vsub.s32 %v1270_v0, %v5672_v31  ;;  %v1267_v6 = vrot.slane %v5794_v34, %v6115_v20  ;;  %v6134_v3 = vsub.s32 %v1277_v36, %v5672_v31 }
 0x312   : > { %v6104_v55 = vpop.xlane.xlu1 %1041  ;;  %v6106_v1 = vpop.xlane.xlu0 %1039  ;;  %v1262_v13 = vsel %vm1261_vm2, %v1260_v40, %v1255_v23  ;;  %v6144_v23 = vsub.s32 %v1284_v26, %v5672_v31  ;;  %v1361_v40 = vrot.slane %v5853_v18, %v6090_v33  ;;  %v1357_v34 = vrot.slane %v5855_v19, %v6099_v4 }
 0x313   : > { %8274 = vst [vmem:[#allocation119_spill] sm:$0xff] %v6104_v55  ;;  %8275 = vst [vmem:[#allocation120_spill] sm:$0xff] %v6106_v1  ;;  %v1274_v0 = vrot.slane %v5804_v45, %v6126_v43  ;;  %v1269_v36 = vsel %vm8095_vm3, %v1267_v6, %v1262_v13  ;;  %v1305_v45 = vadd.s32 4294967224, %v6082_v14  ;;  %v1281_v26 = vrot.slane %v5802_v44, %v6134_v3 }
 0x314   : > { %8279 = vst [vmem:[#allocation124_spill] sm:$0xff] %v6134_v3  ;;  %v1312_v19 = vadd.s32 4294967216, %v6082_v14  ;;  %v1371_v44 = vrot.slane %v5861_v27, %v6115_v20  ;;  %v1376_v50 = vrot.slane %v5871_v42, %v6126_v43  ;;  %v1326_v27 = vadd.s32 4294967200, %v6082_v14 }
 0x315   : > { %v1276_v6 = vsel %vm1275_vm4, %v1274_v0, %v1269_v36  ;;  %v1319_v0 = vadd.s32 4294967208, %v6082_v14 }
 0x316   : > { %v6119_v55 = vpop.xlane.xlu1 %1045  ;;  %v6121_v1 = vpop.xlane.xlu0 %1043 }
 0x317   : > { %8277 = vst [vmem:[#allocation122_spill] sm:$0xff] %v6119_v55  ;;  %8278 = vst [vmem:[#allocation123_spill] sm:$0xff] %v6121_v1  ;;  %v1298_v55 = vadd.s32 4294967232, %v6082_v14 }
 0x319   : > { %v6160_v18 = vsub.s32 %v1298_v55, %v5672_v31 }
 0x31a   : > { %v6137_v1 = vpop.xlane.xlu1 %1049  ;;  %v6139_v25 = vpop.xlane.xlu0 %1047 }
 0x31b   : > { %8280 = vst [vmem:[#allocation125_spill] sm:$0xff] %v6137_v1  ;;  %8281 = vst [vmem:[#allocation126_spill] sm:$0xff] %v6139_v25  ;;  %v1366_v1 = vrot.slane %v5863_v28, %v6109_v29  ;;  %v6154_v25 = vsub.s32 %v1291_v38, %v5672_v31  ;;  %v1288_v38 = vrot.slane %v5813_v51, %v6144_v23 }
 0x31c   : > { %8283 = vst [vmem:[#allocation128_spill] sm:$0xff] %v6160_v18  ;;  %v1362_v28 = vsel %vm1254_vm1, %v1361_v40, %v1357_v34  ;;  %v1283_v34 = vsel %vm8081_vm5, %v1281_v26, %v1276_v6  ;;  %v6184_v40 = vsub.s32 %v1312_v19, %v5672_v31  ;;  %v1302_v42 = vrot.slane %v5823_v56, %v6160_v18 }
 0x31d   : > { %8282 = vst [vmem:[#allocation127_spill] sm:$0xff] %v6154_v25  ;;  %v1367_v55 = vsel %vm1261_vm2, %v1366_v1, %v1362_v28  ;;  %v1295_v36 = vrot.slane %v5811_v15, %v6154_v25  ;;  %v1381_v51 = vrot.slane %v5869_v41, %v6134_v3  ;;  %v1386_v26 = vrot.slane %v5881_v54, %v6144_v23 }
 0x31e   : > { %v6163_v2 = vpop.xlane.xlu1 %1053  ;;  %v6165_v13 = vpop.xlane.xlu0 %1051  ;;  %8287 = vst [vmem:[#allocation132_spill] sm:$0xff] %v6184_v40  ;;  %v1372_v15 = vsel %vm8095_vm3, %v1371_v44, %v1367_v55  ;;  %v6201_v6 = vsub.s32 %v1319_v0, %v5672_v31  ;;  %v6208_v41 = vsub.s32 %v1326_v27, %v5672_v31  ;;  %v1340_v44 = vadd.s32 4294967184, %v6082_v14 }
 0x31f   : > { %8284 = vst [vmem:[#allocation129_spill] sm:$0xff] %v6163_v2  ;;  %8285 = vst [vmem:[#allocation130_spill] sm:$0xff] %v6165_v13  ;;  %v6177_v2 = vsub.s32 %v1305_v45, %v5672_v31  ;;  %v1290_v45 = vsel %vm1289_vm6, %v1288_v38, %v1283_v34  ;;  %v1377_v19 = vsel %vm1275_vm4, %v1376_v50, %v1372_v15  ;;  %v1333_v38 = vadd.s32 4294967192, %v6082_v14 }
 0x320   : > { %8288 = vst [vmem:[#allocation133_spill] sm:$0xff] %v6201_v6  ;;  %v1297_v56 = vsel %vm1296_vm7, %v1295_v36, %v1290_v45  ;;  %8289 = vst [vmem:[#allocation134_spill] sm:$0xff] %v6208_v41  ;;  %v1316_v0 = vrot.slane %v5831_v62, %v6184_v40  ;;  %v1391_v54 = vrot.slane %v5879_v53, %v6154_v25  ;;  %v1347_v62 = vadd.s32 4294967176, %v6082_v14 }
 0x321   : > { %8286 = vst [vmem:[#allocation131_spill] sm:$0xff] %v6177_v2  ;;  %v1309_v34 = vrot.slane %v5821_v39, %v6177_v2  ;;  %v1304_v55 = vsel %vm1303_vm8, %v1302_v42, %v1297_v56  ;;  %v1382_v39 = vsel %vm8081_vm5, %v1381_v51, %v1377_v19  ;;  %v1396_v36 = vrot.slane %v5892_v60, %v6160_v18  ;;  %v8309_v60 = vld [vmem:[#allocation98_spill] sm:$0xff] }
 0x322   : > { %v6187_v28 = vpop.xlane.xlu1 %1057  ;;  %v6189_v1 = vpop.xlane.xlu0 %1055  ;;  %v1387_v27 = vsel %vm1289_vm6, %v1386_v26, %v1382_v39  ;;  %v6225_v45 = vsub.s32 %v1333_v38, %v5672_v31  ;;  %v1323_v56 = vrot.slane %v5829_v61, %v6201_v6  ;;  %v6232_v53 = vsub.s32 %v1340_v44, %v5672_v31 }
 0x323   : > { %v1311_v42 = vsel %vm1310_vm9, %v1309_v34, %v1304_v55  ;;  %v1330_v26 = vrot.slane %v5839_v7, %v6208_v41  ;;  %v1401_v38 = vrot.slane %v5890_v59, %v6177_v2  ;;  %v1392_v61 = vsel %vm1296_vm7, %v1391_v54, %v1387_v27  ;;  %v8317_v7 = vld [vmem:[#allocation100_spill] sm:$0xff] }
 0x324   : > { %8290 = vst [vmem:[#allocation135_spill] sm:$0xff] %v6225_v45  ;;  %8291 = vst [vmem:[#allocation136_spill] sm:$0xff] %v6232_v53  ;;  %v1318_v19 = vsel %vm8102_vm10, %v1316_v0, %v1311_v42  ;;  %v1397_v14 = vsel %vm1303_vm8, %v1396_v36, %v1392_v61  ;;  %v1406_v34 = vrot.slane %v5902_v8, %v6184_v40 }
 0x325   : > { %v1337_v44 = vrot.slane %v5837_v5, %v6225_v45  ;;  %v1325_v55 = vsel %vm1324_vm11, %v1323_v56, %v1318_v19  ;;  %v6251_v0 = vsub.s32 %v1347_v62, %v5672_v31  ;;  %v1344_v61 = vrot.slane %v5847_v12, %v6232_v53 }
 0x326   : > { %v6211_v15 = vpop.xlane.xlu1 %1059  ;;  %v6213_v50 = vpop.xlane.xlu0 %1085  ;;  %v1332_v54 = vsel %vm1331_vm12, %v1330_v26, %v1325_v55  ;;  %v1411_v27 = vrot.slane %v5900_v52, %v6201_v6  ;;  %v1402_v36 = vsel %vm1310_vm9, %v1401_v38, %v1397_v14  ;;  %v1416_v62 = vrot.slane %v5913_v17, %v6208_v41 }
 0x327   : > { %8292 = vst [vmem:[#allocation137_spill] sm:$0xff] %v6251_v0  ;;  %v1407_v56 = vsel %vm8102_vm10, %v1406_v34, %v1402_v36  ;;  %v1440_v19 = vrot.slane %v5927_v48, %v6090_v33  ;;  %v1436_v8 = vrot.slane %v5929_v49, %v6099_v4  ;;  %v1445_v26 = vrot.slane %v5937_v63, %v6109_v29 }
 0x328   : > { %v1351_v38 = vrot.slane %v5845_v11, %v6251_v0  ;;  %v1339_v14 = vsel %vm1338_vm13, %v1337_v44, %v1332_v54  ;;  %v1421_v34 = vrot.slane %v5911_v16, %v6225_v45  ;;  %v1412_v36 = vsel %vm1324_vm11, %v1411_v27, %v1407_v56 }
 0x329   : > { %v1346_v17 = vsel %vm8090_vm14, %v1344_v61, %v1339_v14  ;;  %v1417_v49 = vsel %vm1331_vm12, %v1416_v62, %v1412_v36  ;;  %v1441_v63 = vsel %vm1254_vm1, %v1440_v19, %v1436_v8  ;;  %v1450_v5 = vrot.slane %v5935_v58, %v6115_v20  ;;  %v8301_v58 = vld [vmem:[#allocation96_spill] sm:$0xff] }
 0x32a   : > { %v6234_v51 = vpop.xlane.xlu1 %1061  ;;  %v6236_v39 = vpop.xlane.xlu0 %1087  ;;  %v1446_v48 = vsel %vm1261_vm2, %v1445_v26, %v1441_v63  ;;  %v1455_v11 = vrot.slane %v5945_v46, %v6126_v43  ;;  %v1519_v44 = vrot.slane %v6037_v47, %v6090_v33  ;;  %v1515_v54 = vrot.slane %v6039_v9, %v6099_v4  ;;  %v8297_v47 = vld [vmem:[#allocation66_spill] sm:$0xff] }
 0x32b   : > { %v6299_v8 = vsel %vm1352_vm15, %v1351_v38, %v1346_v17  ;;  %v1422_v56 = vsel %vm1338_vm13, %v1421_v34, %v1417_v49  ;;  %v1426_v63 = vrot.slane %v5921_v32, %v6232_v53  ;;  %v1524_v62 = vrot.slane %v6043_v35, %v6109_v29  ;;  %v8298_v46 = vld [vmem:[#allocation78_spill] sm:$0xff] }
 0x32c   : > { %v1460_v19 = vrot.slane %v5943_v10, %v6134_v3  ;;  %v1451_v26 = vsel %vm8095_vm3, %v1450_v5, %v1446_v48  ;;  %v1598_v14 = vrot.slane %v5991_v21, %v6090_v33  ;;  %v1594_v17 = vrot.slane %v5993_v22, %v6099_v4  ;;  %v8293_v48 = vld [vmem:[#allocation108_spill] sm:$0xff]  ;;  %v8294_v10 = vld [vmem:[#allocation109_spill] sm:$0xff] }
 0x32d   : > { %v1456_v38 = vsel %vm1275_vm4, %v1455_v11, %v1451_v26  ;;  %v1465_v34 = vrot.slane %v5953_v24, %v6144_v23  ;;  %v1603_v36 = vrot.slane %v6001_v57, %v6109_v29  ;;  %v1520_v32 = vsel %vm1254_vm1, %v1519_v44, %v1515_v54  ;;  %v8295_v44 = vld [vmem:[#allocation97_spill] sm:$0xff] }
 0x32e   : > { %v6253_v42 = vpop.xlane.xlu1 %1063  ;;  %v6255_v59 = vpop.xlane.xlu0 %1089  ;;  %v1529_v5 = vrot.slane %v6041_v37, %v6115_v20  ;;  %v1677_v16 = vrot.slane %v8293_v48, %v6090_v33  ;;  %v1673_v21 = vrot.slane %v8294_v10, %v6099_v4  ;;  %v6332_v26 = vsel %vm8090_vm14, %v1426_v63, %v1422_v56  ;;  %v8296_v37 = vld [vmem:[#allocation111_spill] sm:$0xff] }
 0x32f   : > { %v1525_v24 = vsel %vm1261_vm2, %v1524_v62, %v1520_v32  ;;  %v1534_v54 = vrot.slane %v8295_v44, %v6126_v43  ;;  %v1682_v35 = vrot.slane %v8296_v37, %v6109_v29  ;;  %v1470_v48 = vrot.slane %v8297_v47, %v6154_v25  ;;  %v8299_v32 = vld [vmem:[#allocation69_spill] sm:$0xff] }
 0x330   : > { %v1461_v10 = vsel %vm8081_vm5, %v1460_v19, %v1456_v38  ;;  %v1599_v57 = vsel %vm1254_vm1, %v1598_v14, %v1594_v17  ;;  %v1608_v22 = vrot.slane %v8298_v46, %v6115_v20  ;;  %v1475_v63 = vrot.slane %v8299_v32, %v6160_v18  ;;  %v8300_v44 = vld [vmem:[#allocation81_spill] sm:$0xff]  ;;  %v8302_v17 = vld [vmem:[#allocation110_spill] sm:$0xff] }
 0x331   : > { %v1466_v56 = vsel %vm1289_vm6, %v1465_v34, %v1461_v10  ;;  %v1604_v62 = vsel %vm1261_vm2, %v1603_v36, %v1599_v57  ;;  %v1613_v37 = vrot.slane %v8300_v44, %v6126_v43  ;;  %v1539_v47 = vrot.slane %v8301_v58, %v6134_v3  ;;  %v8303_v57 = vld [vmem:[#allocation99_spill] sm:$0xff]  ;;  %v8304_v44 = vld [vmem:[#allocation113_spill] sm:$0xff] }
 0x332   : > { %v6272_v55 = vpop.xlane.xlu1 %1065  ;;  %v6274_v52 = vpop.xlane.xlu0 %1091  ;;  %v1530_v19 = vsel %vm8095_vm3, %v1529_v5, %v1525_v24  ;;  %v1678_v14 = vsel %vm1254_vm1, %v1677_v16, %v1673_v21  ;;  %v1687_v38 = vrot.slane %v8302_v17, %v6115_v20  ;;  %v1544_v36 = vrot.slane %v8303_v57, %v6144_v23  ;;  %v8305_v24 = vld [vmem:[#allocation68_spill] sm:$0xff] }
 0x333   : > { %v1535_v34 = vsel %vm1275_vm4, %v1534_v54, %v1530_v19  ;;  %v1683_v32 = vsel %vm1261_vm2, %v1682_v35, %v1678_v14  ;;  %v1692_v58 = vrot.slane %v8304_v44, %v6126_v43  ;;  %v1480_v16 = vrot.slane %v8305_v24, %v6177_v2  ;;  %v8306_v5 = vld [vmem:[#allocation80_spill] sm:$0xff]  ;;  %v8307_v19 = vld [vmem:[#allocation71_spill] sm:$0xff] }
 0x334   : > { %v1471_v21 = vsel %vm1296_vm7, %v1470_v48, %v1466_v56  ;;  %v1618_v17 = vrot.slane %v8306_v5, %v6134_v3  ;;  %v1609_v9 = vsel %vm8095_vm3, %v1608_v22, %v1604_v62  ;;  %v1485_v57 = vrot.slane %v8307_v19, %v6184_v40  ;;  %v8308_v14 = vld [vmem:[#allocation83_spill] sm:$0xff]  ;;  %v8310_v56 = vld [vmem:[#allocation112_spill] sm:$0xff] }
 0x335   : > { %v1476_v54 = vsel %vm1303_vm8, %v1475_v63, %v1471_v21  ;;  %v1614_v35 = vsel %vm1275_vm4, %v1613_v37, %v1609_v9  ;;  %v1623_v44 = vrot.slane %v8308_v14, %v6144_v23  ;;  %v1549_v24 = vrot.slane %v8309_v60, %v6154_v25  ;;  %v8311_v9 = vld [vmem:[#allocation101_spill] sm:$0xff]  ;;  %v8312_v14 = vld [vmem:[#allocation115_spill] sm:$0xff] }
 0x336   : > { %v6294_v27 = vpop.xlane.xlu1 %1067  ;;  %v6296_v61 = vpop.xlane.xlu0 %1093  ;;  %v1540_v48 = vsel %vm8081_vm5, %v1539_v47, %v1535_v34  ;;  %v1697_v5 = vrot.slane %v8310_v56, %v6134_v3  ;;  %v1688_v22 = vsel %vm8095_vm3, %v1687_v38, %v1683_v32  ;;  %v1554_v37 = vrot.slane %v8311_v9, %v6160_v18  ;;  %v8313_v47 = vld [vmem:[#allocation70_spill] sm:$0xff] }
 0x337   : > { %v1545_v21 = vsel %vm1289_vm6, %v1544_v36, %v1540_v48  ;;  %v1693_v19 = vsel %vm1275_vm4, %v1692_v58, %v1688_v22  ;;  %v1702_v60 = vrot.slane %v8312_v14, %v6144_v23  ;;  %v1490_v34 = vrot.slane %v8313_v47, %v6201_v6  ;;  %v8314_v32 = vld [vmem:[#allocation82_spill] sm:$0xff]  ;;  %v8315_v48 = vld [vmem:[#allocation73_spill] sm:$0xff] }
 0x338   : > { %v1481_v56 = vsel %vm1310_vm9, %v1480_v16, %v1476_v54  ;;  %v1628_v38 = vrot.slane %v8314_v32, %v6154_v25  ;;  %v1619_v12 = vsel %vm8081_vm5, %v1618_v17, %v1614_v35  ;;  %v1495_v9 = vrot.slane %v8315_v48, %v6208_v41  ;;  %v8316_v22 = vld [vmem:[#allocation85_spill] sm:$0xff]  ;;  %v8318_v54 = vld [vmem:[#allocation114_spill] sm:$0xff] }
 0x339   : > { %v1486_v36 = vsel %vm8102_vm10, %v1485_v57, %v1481_v56  ;;  %v1624_v58 = vsel %vm1289_vm6, %v1623_v44, %v1619_v12  ;;  %v1633_v14 = vrot.slane %v8316_v22, %v6160_v18  ;;  %v1559_v47 = vrot.slane %v8317_v7, %v6177_v2  ;;  %v8320_v12 = vld [vmem:[#allocation103_spill] sm:$0xff]  ;;  %v8321_v22 = vld [vmem:[#allocation117_spill] sm:$0xff] }
 0x33a   : > { %v6327_v49 = vpop.xlane.xlu1 %1069  ;;  %v6329_v11 = vpop.xlane.xlu0 %1095  ;;  %v1550_v16 = vsel %vm1296_vm7, %v1549_v24, %v1545_v21  ;;  %v1707_v32 = vrot.slane %v8318_v54, %v6154_v25  ;;  %v1698_v17 = vsel %vm8081_vm5, %v1697_v5, %v1693_v19  ;;  %v1564_v44 = vrot.slane %v8320_v12, %v6184_v40  ;;  %v8322_v24 = vld [vmem:[#allocation72_spill] sm:$0xff] }
 0x33b   : > { %v1555_v56 = vsel %vm1303_vm8, %v1554_v37, %v1550_v16  ;;  %v1703_v48 = vsel %vm1289_vm6, %v1702_v60, %v1698_v17  ;;  %v1712_v7 = vrot.slane %v8321_v22, %v6160_v18  ;;  %v1500_v21 = vrot.slane %v8322_v24, %v6225_v45  ;;  %v8323_v19 = vld [vmem:[#allocation84_spill] sm:$0xff]  ;;  %v8324_v16 = vld [vmem:[#allocation75_spill] sm:$0xff]  ;;  %v8326_v24 = vld [vmem:[#allocation102_spill] sm:$0xff] }
 0x33c   : > { %v1491_v5 = vsel %vm1324_vm11, %v1490_v34, %v1486_v36  ;;  %v1638_v54 = vrot.slane %v8323_v19, %v6177_v2  ;;  %v1629_v31 = vsel %vm1296_vm7, %v1628_v38, %v1624_v58  ;;  %vm8086_vm5 = vcmask 1042434   ;;  %v8325_v22 = vld [vmem:[#allocation87_spill] sm:$0xff]  ;;  %v8327_v36 = vld [vmem:[#allocation116_spill] sm:$0xff] }
 0x33d   : > { %v1496_v37 = vsel %vm1331_vm12, %v1495_v9, %v1491_v5  ;;  %v1505_v60 = vrot.slane %v8324_v16, %v6232_v53  ;;  %v1634_v17 = vsel %vm1303_vm8, %v1633_v14, %v1629_v31  ;;  %v1643_v12 = vrot.slane %v8325_v22, %v6184_v40  ;;  %v8329_v31 = vld [vmem:[#allocation105_spill] sm:$0xff]  ;;  %v8330_v22 = vld [vmem:[#allocation120_spill] sm:$0xff] }
 0x33e   : > { %v6357_v46 = vpop.xlane.xlu1 %1071  ;;  %v6359_v10 = vpop.xlane.xlu0 %1097  ;;  %v1560_v34 = vsel %vm1310_vm9, %v1559_v47, %v1555_v56  ;;  %v1717_v19 = vrot.slane %v8327_v36, %v6177_v2  ;;  %v1708_v38 = vsel %vm1296_vm7, %v1707_v32, %v1703_v48  ;;  %v1574_v14 = vrot.slane %v8329_v31, %v6208_v41  ;;  %v8331_v47 = vld [vmem:[#allocation74_spill] sm:$0xff] }
 0x33f   : > { %v1565_v5 = vsel %vm8102_vm10, %v1564_v44, %v1560_v34  ;;  %v1713_v16 = vsel %vm1303_vm8, %v1712_v7, %v1708_v38  ;;  %v1510_v56 = vrot.slane %v8331_v47, %v6251_v0  ;;  %v1501_v36 = vsel %vm1338_vm13, %v1500_v21, %v1496_v37  ;;  %v8332_v32 = vld [vmem:[#allocation86_spill] sm:$0xff]  ;;  %v8335_v21 = vld [vmem:[#allocation104_spill] sm:$0xff] }
 0x340   : > { %v1648_v48 = vrot.slane %v8332_v32, %v6201_v6  ;;  %v8333_v44 = vrot.slane %v5919_v30, %v6251_v0  ;;  %v1506_v7 = vsel %vm8090_vm14, %v1505_v60, %v1501_v36  ;;  %v1579_v37 = vrot.slane %v8335_v21, %v6225_v45  ;;  %v8338_v60 = vld [vmem:[#allocation107_spill] sm:$0xff] }
 0x341   : > { %v1718_v32 = vsel %vm1310_vm9, %v1717_v19, %v1713_v16  ;;  %v8340_v19 = vld [vmem:[#allocation129_spill] sm:$0xff] }
 0x342   : > { %v6385_v62 = vpop.xlane.xlu1 %1073  ;;  %v6387_v63 = vpop.xlane.xlu0 %1099  ;;  %v1432_v34 = vsel %vm1352_vm15, %v8333_v44, %v6332_v26  ;;  %v1756_v16 = vrot.slane %v8340_v19, %v6090_v33 }
 0x346   : > { %v6413_v35 = vpop.xlane.xlu1 %1075  ;;  %v6415_v57 = vpop.xlane.xlu0 %1101 }
 0x347   : > { %8319 = vst [vmem:[#allocation138_spill] sm:$0xff] %v6415_v57  ;;  %v1569_v57 = vrot.slane %v8326_v24, %v6201_v6  ;;  %v1722_v24 = vrot.slane %v8330_v22, %v6184_v40  ;;  %v8334_v22 = vld [vmem:[#allocation89_spill] sm:$0xff] }
 0x348   : > { %v1653_v47 = vrot.slane %v8334_v22, %v6208_v41 }
 0x349   : > { %v1570_v31 = vsel %vm1324_vm11, %v1569_v57, %v1565_v5  ;;  %v1723_v36 = vsel %vm8102_vm10, %v1722_v24, %v1718_v32  ;;  %v1511_v57 = vsel %vm1352_vm15, %v1510_v56, %v1506_v7  ;;  %v8342_v32 = vld [vmem:[#allocation91_spill] sm:$0xff]  ;;  %v8343_v56 = vld [vmem:[#allocation106_spill] sm:$0xff] }
 0x34a   : > { %v6441_v9 = vpop.xlane.xlu1 %1077  ;;  %v6443_v58 = vpop.xlane.xlu0 %1103  ;;  %v1575_v26 = vsel %vm1331_vm12, %v1574_v14, %v1570_v31  ;;  %v1752_v31 = vrot.slane %v6165_v13, %v6099_v4  ;;  %v8341_v14 = vld [vmem:[#allocation88_spill] sm:$0xff] }
 0x34b   : > { %8328 = vst [vmem:[#allocation139_spill] sm:$0xff] %v6443_v58  ;;  %v1639_v58 = vsel %vm1310_vm9, %v1638_v54, %v1634_v17  ;;  %v8336_v54 = vld [vmem:[#allocation119_spill] sm:$0xff]  ;;  %v1580_v7 = vsel %vm1338_vm13, %v1579_v37, %v1575_v26 }
 0x34c   : > { %v1644_v38 = vsel %vm8102_vm10, %v1643_v12, %v1639_v58  ;;  %v1727_v17 = vrot.slane %v8336_v54, %v6201_v6  ;;  %v1584_v12 = vrot.slane %v8338_v60, %v6232_v53  ;;  %v8339_v58 = vld [vmem:[#allocation123_spill] sm:$0xff]  ;;  %v1658_v60 = vrot.slane %v8341_v14, %v6225_v45 }
 0x34d   : > { %v1732_v44 = vrot.slane %v8339_v58, %v6208_v41  ;;  %v1649_v5 = vsel %vm1324_vm11, %v1648_v48, %v1644_v38  ;;  %v1663_v58 = vrot.slane %v8342_v32, %v6232_v53  ;;  %v1761_v54 = vrot.slane %v6189_v1, %v6109_v29  ;;  %v8344_v38 = vld [vmem:[#allocation122_spill] sm:$0xff] }
 0x34e   : > { %v6472_v30 = vpop.xlane.xlu1 %1079  ;;  %v6480_v22 = vpop.xlane.xlu0 %1105  ;;  %v1654_v24 = vsel %vm1331_vm12, %v1653_v47, %v1649_v5  ;;  %v1589_v48 = vrot.slane %v8343_v56, %v6251_v0  ;;  %v1737_v21 = vrot.slane %v8344_v38, %v6225_v45  ;;  %v1728_v13 = vsel %vm1324_vm11, %v1727_v17, %v1723_v36  ;;  %v8346_v56 = vld [vmem:[#allocation126_spill] sm:$0xff] }
 0x34f   : > { %8337 = vst [vmem:[#allocation140_spill] sm:$0xff] %v6472_v30  ;;  %v1908_v47 = vsel %vm8089_vm0, %v1432_v34, %v6299_v8  ;;  %v1585_v5 = vsel %vm8090_vm14, %v1584_v12, %v1580_v7  ;;  %v1733_v14 = vsel %vm1331_vm12, %v1732_v44, %v1728_v13  ;;  %v1742_v37 = vrot.slane %v8346_v56, %v6232_v53  ;;  %v8347_v36 = vld [vmem:[#allocation90_spill] sm:$0xff] }
 0x350   : > { %v6508_v32 = vsel %vm8086_vm5, %v1511_v57, %v1908_v47  ;;  %v1757_v26 = vsel %vm1254_vm1, %v1756_v16, %v1752_v31  ;;  %v1766_v17 = vrot.slane %v6187_v28, %v6115_v20  ;;  %v1668_v38 = vrot.slane %v8347_v36, %v6251_v0 }
 0x351   : > { %v1659_v8 = vsel %vm1338_vm13, %v1658_v60, %v1654_v24  ;;  %v1762_v34 = vsel %vm1261_vm2, %v1761_v54, %v1757_v26  ;;  %v1771_v13 = vrot.slane %v6211_v15, %v6126_v43  ;;  %v1590_v57 = vsel %vm1352_vm15, %v1589_v48, %v1585_v5  ;;  %v8348_v60 = vld [vmem:[#allocation125_spill] sm:$0xff] }
 0x352   : > { %v6501_v19 = vpop.xlane.xlu1 %1081  ;;  %v6521_v12 = vpop.xlane.xlu0 %1107  ;;  %v1664_v44 = vsel %vm8090_vm14, %v1663_v58, %v1659_v8  ;;  %v1738_v16 = vsel %vm1338_vm13, %v1737_v21, %v1733_v14  ;;  %v1776_v31 = vrot.slane %v6234_v51, %v6134_v3  ;;  %v1747_v24 = vrot.slane %v8348_v60, %v6251_v0 }
 0x353   : > { %8345 = vst [vmem:[#allocation141_spill] sm:$0xff] %v6501_v19  ;;  %v1835_v54 = vrot.slane %v6213_v50, %v6090_v33  ;;  %v1781_v47 = vrot.slane %v6253_v42, %v6144_v23  ;;  %vm8103_vm5 = vcmask 1043459   ;;  %v1743_v21 = vsel %vm8090_vm14, %v1742_v37, %v1738_v16 }
 0x354   : > { %v1767_v14 = vsel %vm8095_vm3, %v1766_v17, %v1762_v34  ;;  %v1840_v48 = vrot.slane %v6236_v39, %v6109_v29  ;;  %v1786_v5 = vrot.slane %v6272_v55, %v6154_v25  ;;  %v1845_v8 = vrot.slane %v6255_v59, %v6115_v20 }
 0x355   : > { %v1772_v26 = vsel %vm1275_vm4, %v1771_v13, %v1767_v14  ;;  %v1791_v56 = vrot.slane %v6294_v27, %v6160_v18  ;;  %vm8349_vm0 = vcmask 392512   ;;  %v1850_v17 = vrot.slane %v6274_v52, %v6126_v43 }
 0x356   : > { %v6528_v7 = vpop.xlane.xlu1 %1083  ;;  %v1777_v37 = vsel %vm8349_vm0, %v1776_v31, %v1772_v26  ;;  %v1796_v34 = vrot.slane %v6327_v49, %v6177_v2  ;;  %vm1913_vm14 = vcmask 1044484   ;;  %v1855_v14 = vrot.slane %v6296_v61, %v6134_v3 }
 0x357   : > { %v1831_v58 = vrot.slane %v6528_v7, %v6099_v4  ;;  %v1782_v13 = vsel %vm1289_vm6, %v1781_v47, %v1777_v37  ;;  %v1801_v29 = vrot.slane %v6357_v46, %v6184_v40  ;;  %vm1915_vm0 = vcmask 1045509  }
 0x358   : > { %v1860_v26 = vrot.slane %v6329_v11, %v6144_v23  ;;  %v1865_v37 = vrot.slane %v6359_v10, %v6154_v25  ;;  %v1811_v3 = vrot.slane %v6413_v35, %v6208_v41  ;;  %v1821_v25 = vrot.slane %v6472_v30, %v6232_v53 }
 0x359   : > { %v1836_v4 = vsel %vm1254_vm1, %v1835_v54, %v1831_v58  ;;  %v6561_v54 = vpop.xlane.xlu0 %1109  ;;  %v1787_v58 = vsel %vm1296_vm7, %v1786_v5, %v1782_v13  ;;  %v1816_v13 = vrot.slane %v6441_v9, %v6225_v45 }
 0x35a   : > { %v1841_v16 = vsel %vm1261_vm2, %v1840_v48, %v1836_v4  ;;  %v1806_v4 = vrot.slane %v6385_v62, %v6201_v6  ;;  %v1792_v48 = vsel %vm1303_vm8, %v1791_v56, %v1787_v58 }
 0x35b   : > { %v1846_v31 = vsel %vm8095_vm3, %v1845_v8, %v1841_v16  ;;  %vm8350_vm3 = vcmask 392512   ;;  %v1797_v5 = vsel %vm1310_vm9, %v1796_v34, %v1792_v48  ;;  %v1870_v16 = vrot.slane %v6387_v63, %v6160_v18 }
 0x35c   : > { %v1851_v47 = vsel %vm1275_vm4, %v1850_v17, %v1846_v31  ;;  %v1802_v56 = vsel %vm8102_vm10, %v1801_v29, %v1797_v5  ;;  %v8351_v31 = vld [vmem:[#allocation138_spill] sm:$0xff]  ;;  %v1826_v18 = vrot.slane %v6501_v19, %v6251_v0  ;;  %v1669_v29 = vsel %vm1352_vm15, %v1668_v38, %v1664_v44 }
 0x35d   : > { %v1856_v8 = vsel %vm8350_vm3, %v1855_v14, %v1851_v47  ;;  %v1875_v58 = vrot.slane %v8351_v31, %v6177_v2  ;;  %v1807_v34 = vsel %vm1324_vm11, %v1806_v4, %v1802_v56  ;;  %v8352_v47 = vld [vmem:[#allocation139_spill] sm:$0xff]  ;;  %v1885_v5 = vrot.slane %v6480_v22, %v6201_v6  ;;  %v6598_v2 = vpop.xlane.xlu0 %1111  ;;  %v6604_v56 = vpop.xlane.xlu1 %1113  ;;  %v3569_v6 = vld [vmem:[%s5647_s8 + $0x210] sm:$0xff] }
 0x35e   : > { %v1861_v17 = vsel %vm1289_vm6, %v1860_v26, %v1856_v8  ;;  %v1880_v48 = vrot.slane %v8352_v47, %v6184_v40  ;;  %v1812_v8 = vsel %vm1331_vm12, %v1811_v3, %v1807_v34  ;;  %8353 = vst [vmem:[#allocation90_spill] sm:$0xff] %v6604_v56  ;;  %v1912_v38 = vsel %vm8103_vm5, %v1590_v57, %v6508_v32 }
 0x35f   : > { %v1866_v14 = vsel %vm1296_vm7, %v1865_v37, %v1861_v17  ;;  %v1817_v4 = vsel %vm1338_vm13, %v1816_v13, %v1812_v8  ;;  %v1890_v17 = vrot.slane %v6521_v12, %v6208_v41  ;;  %vm8354_vm3 = vcmask 982912  }
 0x360   : > { %v1871_v26 = vsel %vm1303_vm8, %v1870_v16, %v1866_v14  ;;  %v1822_v3 = vsel %vm8354_vm3, %v1821_v25, %v1817_v4  ;;  %v1895_v44 = vrot.slane %v6561_v54, %v6225_v45  ;;  %v1748_v14 = vsel %vm1352_vm15, %v1747_v24, %v1743_v21  ;;  %v8356_v4 = vld [vmem:[#allocation27_spill] sm:$0xff]  ;;  %v3553_v45 = vld [vmem:[%s5647_s8 + $0x190] sm:$0xff] }
 0x361   : > { %v1876_v37 = vsel %vm1310_vm9, %v1875_v58, %v1871_v26  ;;  %v1900_v13 = vrot.slane %v6598_v2, %v6232_v53  ;;  %v1827_v34 = vsel %vm1352_vm15, %v1826_v18, %v1822_v3  ;;  %v1905_v32 = vrot.slane %v6604_v56, %v6251_v0  ;;  %v3554_v56 = vld [vmem:[%s5647_s8 + $0x198] sm:$0xff] }
 0x362   : > { %v1881_v16 = vsel %vm8102_vm10, %v1880_v48, %v1876_v37  ;;  %vm1917_vm10 = vcmask 1046534   ;;  %v1914_v57 = vsel %vm1913_vm14, %v1669_v29, %v1912_v38  ;;  %vm8143_vm3 = vcmask 1047559   ;;  %v8358_v38 = vld [vmem:[#allocation29_spill] sm:$0xff] }
 0x363   : > { %v1886_v58 = vsel %vm1324_vm11, %v1885_v5, %v1881_v16  ;;  %vm8355_vm5 = vcmask 982912   ;;  %v1916_v21 = vsel %vm1915_vm0, %v1748_v14, %v1914_v57  ;;  %v5315_v5 = vmov 0  }
 0x364   : > { %v1891_v26 = vsel %vm1331_vm12, %v1890_v17, %v1886_v58  ;;  %v1918_v8 = vsel %vm1917_vm10, %v1827_v34, %v1916_v21  ;;  %4790 = vset.pattern.permute.xlu0 %v5315_v5  ;;  %4789 = vset.pattern.permute.xlu1 %v5315_v5  ;;  %v8357_v17 = vld [vmem:[#allocation31_spill] sm:$0xff]  ;;  %v8360_v58 = vld [vmem:[#allocation28_spill] sm:$0xff] }
 0x365   : > { %v1896_v25 = vsel %vm1338_vm13, %v1895_v44, %v1891_v26  ;;  %v8359_v44 = vld [vmem:[#allocation39_spill] sm:$0xff] }
 0x366   : > { %v1901_v24 = vsel %vm8355_vm5, %v1900_v13, %v1896_v25  ;;  %vm8478_vm5 = vcmask 261312  }
 0x367   : > { %v1906_v48 = vsel %vm1352_vm15, %v1905_v32, %v1901_v24  ;;  %v8361_v32 = vld [vmem:[#allocation25_spill] sm:$0xff] }
 0x368   : > { %v1920_v18 = vsel %vm8143_vm3, %v1906_v48, %v1918_v8  ;;  %v1931_v25 = vsub.s32 1, %v8361_v32  ;;  %v8362_v24 = vld [vmem:[#allocation41_spill] sm:$0xff]  ;;  %v8363_v8 = vld [vmem:[#allocation30_spill] sm:$0xff]  ;;  %vm8481_vm3 = vcmask 261312  }
 0x369   : > { %1922 = vmax.xlane.f32.xlu0 %v1920_v18 }
 0x3f6   : > { %v6627_v37 = vpop.xlane.xlu0 %1922 }
 0x3f7   : > { %v6631_v29 = vrot.slane %v6627_v37, %v8356_v4  ;;  %v6647_v5 = vrot.slane %v6627_v37, %v1931_v25 }
 0x3f9   : > { %v1966_v16 = vsub.f32 %v8357_v17, %v6631_v29  ;;  %v1965_v3 = vsub.f32 %v8358_v38, %v6631_v29  ;;  %v1975_v14 = vsub.f32 %v8359_v44, %v6631_v29  ;;  %v1967_v13 = vsub.f32 %v8360_v58, %v6631_v29  ;;  %v8364_v17 = vld [vmem:[#allocation43_spill] sm:$0xff]  ;;  %v8366_v58 = vld [vmem:[#allocation45_spill] sm:$0xff] }
 0x3fa   : > { %v1977_v21 = vsub.f32 %v8362_v24, %v6631_v29  ;;  %v1968_v18 = vsub.f32 %v8363_v8, %v6631_v29 }
 0x3fb   : > { %v2095_v34 = vmul.f32 1.442695, %v1966_v16  ;;  %v2093_v26 = vmul.f32 1.442695, %v1965_v3  ;;  %v2113_v57 = vmul.f32 1.442695, %v1975_v14  ;;  %v1979_v16 = vsub.f32 %v8364_v17, %v6631_v29 }
 0x3fc   : > { %v2097_v48 = vmul.f32 1.442695, %v1967_v13  ;;  %v2117_v4 = vmul.f32 1.442695, %v1977_v21  ;;  %v2099_v38 = vmul.f32 1.442695, %v1968_v18  ;;  %v1981_v13 = vsub.f32 %v8366_v58, %v6647_v5 }
 0x3fd   : > { %4791 = vpow2.f32 %v2095_v34  ;;  %v8365_v3 = vld [vmem:[#allocation33_spill] sm:$0xff]  ;;  %v2121_v14 = vmul.f32 1.442695, %v1979_v16 }
 0x3fe   : > { %4793 = vpow2.f32 %v2093_v26  ;;  %v1969_v44 = vsub.f32 %v8365_v3, %v6631_v29  ;;  %v8367_v26 = vld [vmem:[#allocation32_spill] sm:$0xff]  ;;  %v2125_v21 = vmul.f32 1.442695, %v1981_v13  ;;  %v8371_v13 = vld [vmem:[#allocation34_spill] sm:$0xff] }
 0x3ff   : > { %4795 = vpow2.f32 %v2113_v57  ;;  %v1970_v25 = vsub.f32 %v8367_v26, %v6631_v29  ;;  %v1972_v26 = vsub.f32 %v8371_v13, %v6631_v29 }
 0x400   : > { %4797 = vpow2.f32 %v2097_v48  ;;  %v2101_v34 = vmul.f32 1.442695, %v1969_v44  ;;  %v8368_v48 = vld [vmem:[#allocation47_spill] sm:$0xff]  ;;  %v8370_v44 = vld [vmem:[#allocation49_spill] sm:$0xff] }
 0x401   : > { %4799 = vpow2.f32 %v2117_v4  ;;  %v1983_v8 = vsub.f32 %v8368_v48, %v6647_v5  ;;  %v2103_v18 = vmul.f32 1.442695, %v1970_v25  ;;  %v8369_v4 = vld [vmem:[#allocation35_spill] sm:$0xff]  ;;  %v1985_v58 = vsub.f32 %v8370_v44, %v6647_v5 }
 0x402   : > { %4801 = vpow2.f32 %v2099_v38  ;;  %v1971_v17 = vsub.f32 %v8369_v4, %v6631_v29  ;;  %v1935_v25 = vsub.s32 2, %v8361_v32  ;;  %v8372_v48 = vld [vmem:[#allocation51_spill] sm:$0xff]  ;;  %v8373_v4 = vld [vmem:[#allocation37_spill] sm:$0xff] }
 0x403   : > { %4803 = vpow2.f32 %v2121_v14  ;;  %v2129_v3 = vmul.f32 1.442695, %v1983_v8  ;;  %v2107_v8 = vmul.f32 1.442695, %v1972_v26  ;;  %v8375_v26 = vld [vmem:[#allocation36_spill] sm:$0xff] }
 0x404   : > { %4805 = vpow2.f32 %v2101_v34  ;;  %v2105_v14 = vmul.f32 1.442695, %v1971_v17  ;;  %v6672_v44 = vrot.slane %v6627_v37, %v1935_v25 }
 0x405   : > { %4807 = vpow2.f32 %v2125_v21  ;;  %v1987_v21 = vsub.f32 %v8372_v48, %v6647_v5 }
 0x406   : > { %4809 = vpow2.f32 %v2103_v18  ;;  %v1973_v18 = vsub.f32 %v8373_v4, %v6631_v29 }
 0x407   : > { %v4792_v57 = vpop.eup %4791  ;;  %4811 = vpow2.f32 %v2129_v3  ;;  %v2137_v3 = vmul.f32 1.442695, %v1987_v21 }
 0x408   : > { %v4794_v24 = vpop.eup %4793  ;;  %2481 = vperm.xlu0 %4790, %v4792_v57   ;;  %4813 = vpow2.f32 %v2105_v14  ;;  %v2109_v14 = vmul.f32 1.442695, %v1973_v18 }
 0x409   : > { %2478 = vperm.xlu1 %4789, %v4794_v24   ;;  %v4796_v16 = vpop.eup %4795  ;;  %v2133_v24 = vmul.f32 1.442695, %v1985_v58  ;;  %v8374_v58 = vld [vmem:[#allocation53_spill] sm:$0xff] }
 0x40a   : > { %v4798_v38 = vpop.eup %4797  ;;  %v1989_v13 = vsub.f32 %v8374_v58, %v6647_v5 }
 0x40b   : > { %v4800_v57 = vpop.eup %4799  ;;  %4815 = vpow2.f32 %v2133_v24  ;;  %v8376_v24 = vld [vmem:[#allocation60_spill] sm:$0xff] }
 0x40c   : > { %2508 = vperm.xlu0 %4790, %v4796_v16   ;;  %v4802_v34 = vpop.eup %4801  ;;  %4817 = vpow2.f32 %v2107_v8  ;;  %v2141_v25 = vmul.f32 1.442695, %v1989_v13  ;;  %v1998_v21 = vsub.f32 %v8376_v24, %v6672_v44  ;;  %v8377_v8 = vld [vmem:[#allocation38_spill] sm:$0xff] }
 0x40d   : > { %2484 = vperm.xlu1 %4789, %v4798_v38   ;;  %v4804_v17 = vpop.eup %4803  ;;  %v1939_v38 = vsub.s32 3, %v8361_v32  ;;  %4819 = vpow2.f32 %v2137_v3  ;;  %v1976_v18 = vsub.f32 %v8377_v8, %v6631_v29 }
 0x40e   : > { %v4806_v16 = vpop.eup %4805  ;;  %4821 = vpow2.f32 %v2109_v14 }
 0x40f   : > { %v6679_v4 = vrot.slane %v6627_v37, %v1939_v38  ;;  %4823 = vpow2.f32 %v2141_v25  ;;  %v2159_v38 = vmul.f32 1.442695, %v1998_v21  ;;  %v2115_v13 = vmul.f32 1.442695, %v1976_v18  ;;  %v8380_v25 = vld [vmem:[#allocation62_spill] sm:$0xff] }
 0x410   : > { %2514 = vperm.xlu0 %4790, %v4800_v57   ;;  %v1974_v57 = vsub.f32 %v8375_v26, %v6631_v29  ;;  %v1943_v26 = vsub.s32 4, %v8361_v32  ;;  %v2000_v21 = vsub.f32 %v8380_v25, %v6672_v44 }
 0x411   : > { %2487 = vperm.xlu1 %4789, %v4802_v34   ;;  %v4808_v34 = vpop.eup %4807 }
 0x412   : > { %v4810_v48 = vpop.eup %4809  ;;  %v6691_v8 = vrot.slane %v6627_v37, %v1943_v26  ;;  %v8382_v26 = vld [vmem:[#allocation77_spill] sm:$0xff] }
 0x414   : > { %2520 = vperm.xlu0 %4790, %v4804_v17   ;;  %v2111_v17 = vmul.f32 1.442695, %v1974_v57 }
 0x415   : > { %2490 = vperm.xlu1 %4789, %v4806_v16   ;;  %v4812_v16 = vpop.eup %4811 }
 0x416   : > { %v4814_v58 = vpop.eup %4813  ;;  %4825 = vpow2.f32 %v2111_v17  ;;  %v8381_v17 = vld [vmem:[#allocation42_spill] sm:$0xff] }
 0x417   : > { %v4816_v57 = vpop.eup %4815  ;;  %4827 = vpow2.f32 %v2159_v38  ;;  %v1980_v18 = vsub.f32 %v8381_v17, %v6631_v29  ;;  %v8385_v17 = vld [vmem:[#allocation46_spill] sm:$0xff] }
 0x418   : > { %2526 = vperm.xlu0 %4790, %v4808_v34   ;;  %v8378_v34 = vld [vmem:[#allocation93_spill] sm:$0xff]  ;;  %v4818_v24 = vpop.eup %4817  ;;  %4829 = vpow2.f32 %v2115_v13 }
 0x419   : > { %2493 = vperm.xlu1 %4789, %v4810_v48   ;;  %v2013_v3 = vsub.f32 %v8378_v34, %v6679_v4  ;;  %v8379_v48 = vld [vmem:[#allocation40_spill] sm:$0xff]  ;;  %v4820_v34 = vpop.eup %4819  ;;  %v2123_v38 = vmul.f32 1.442695, %v1980_v18 }
 0x41a   : > { %v1978_v14 = vsub.f32 %v8379_v48, %v6631_v29  ;;  %v4822_v0 = vpop.eup %4821  ;;  %v2163_v48 = vmul.f32 1.442695, %v2000_v21 }
 0x41b   : > { %v4824_v25 = vpop.eup %4823 }
 0x41c   : > { %2532 = vperm.xlu0 %4790, %v4812_v16   ;;  %v2189_v16 = vmul.f32 1.442695, %v2013_v3  ;;  %v8383_v3 = vld [vmem:[#allocation44_spill] sm:$0xff] }
 0x41d   : > { %2496 = vperm.xlu1 %4789, %v4814_v58   ;;  %v2119_v58 = vmul.f32 1.442695, %v1978_v14  ;;  %v1947_v14 = vsub.s32 5, %v8361_v32 }
 0x41e   : > { %4831 = vpow2.f32 %v2189_v16 }
 0x41f   : > { %4833 = vpow2.f32 %v2119_v58  ;;  %v1984_v58 = vsub.f32 %v8385_v17, %v6647_v5 }
 0x420   : > { %2538 = vperm.xlu0 %4790, %v4816_v57   ;;  %v2029_v57 = vsub.f32 %v8382_v26, %v6691_v8  ;;  %v4826_v13 = vpop.eup %4825  ;;  %4835 = vpow2.f32 %v2163_v48  ;;  %v6707_v26 = vrot.slane %v6627_v37, %v1947_v14  ;;  %v8386_v48 = vld [vmem:[#allocation79_spill] sm:$0xff]  ;;  %v8388_v14 = vld [vmem:[#allocation108_spill] sm:$0xff] }
 0x421   : > { %2499 = vperm.xlu1 %4789, %v4818_v24   ;;  %v1982_v24 = vsub.f32 %v8383_v3, %v6647_v5  ;;  %4837 = vpow2.f32 %v2123_v38  ;;  %v4828_v18 = vpop.eup %4827  ;;  %v8387_v38 = vld [vmem:[#allocation48_spill] sm:$0xff] }
 0x422   : > { %v2221_v29 = vmul.f32 1.442695, %v2029_v57  ;;  %v2031_v57 = vsub.f32 %v8386_v48, %v6691_v8 }
 0x423   : > { %v2127_v21 = vmul.f32 1.442695, %v1982_v24  ;;  %v1986_v24 = vsub.f32 %v8387_v38, %v6647_v5 }
 0x424   : > { %2544 = vperm.xlu0 %4790, %v4820_v34   ;;  %v4830_v34 = vpop.eup %4829  ;;  %4839 = vpow2.f32 %v2221_v29  ;;  %v2225_v17 = vmul.f32 1.442695, %v2031_v57 }
 0x425   : > { %2502 = vperm.xlu1 %4789, %v4822_v0   ;;  %v8384_v0 = vld [vmem:[#allocation65_spill] sm:$0xff]  ;;  %4841 = vpow2.f32 %v2127_v21  ;;  %v2135_v29 = vmul.f32 1.442695, %v1986_v24 }
 0x426   : > { %v2001_v16 = vsub.f32 %v8384_v0, %v6672_v44 }
 0x428   : > { %2550 = vperm.xlu0 %4790, %v4824_v25   ;;  %v2165_v3 = vmul.f32 1.442695, %v2001_v16  ;;  %v2131_v25 = vmul.f32 1.442695, %v1984_v58  ;;  %v8389_v16 = vld [vmem:[#allocation50_spill] sm:$0xff]  ;;  %v1951_v58 = vsub.s32 6, %v8361_v32 }
 0x429   : > { %2505 = vperm.xlu1 %4789, %v4826_v13   ;;  %v4832_v13 = vpop.eup %4831 }
 0x42a   : > { %v4834_v0 = vpop.eup %4833  ;;  %4843 = vpow2.f32 %v2165_v3 }
 0x42b   : > { %4845 = vpow2.f32 %v2131_v25  ;;  %v4836_v48 = vpop.eup %4835 }
 0x42c   : > { %2577 = vperm.xlu0 %4790, %v4828_v18   ;;  %v2046_v18 = vsub.f32 %v8388_v14, %v6707_v26  ;;  %v4838_v21 = vpop.eup %4837  ;;  %4847 = vpow2.f32 %v2225_v17  ;;  %v8392_v17 = vld [vmem:[#allocation111_spill] sm:$0xff] }
 0x42d   : > { %2511 = vperm.xlu1 %4789, %v4830_v34   ;;  %v1988_v34 = vsub.f32 %v8389_v16, %v6647_v5  ;;  %4849 = vpow2.f32 %v2135_v29  ;;  %v6723_v16 = vrot.slane %v6627_v37, %v1951_v58  ;;  %v8393_v29 = vld [vmem:[#allocation63_spill] sm:$0xff]  ;;  %v8394_v58 = vld [vmem:[#allocation129_spill] sm:$0xff] }
 0x42e   : > { %v2255_v38 = vmul.f32 1.442695, %v2046_v18  ;;  %v4840_v24 = vpop.eup %4839  ;;  %v2047_v18 = vsub.f32 %v8392_v17, %v6707_v26 }
 0x42f   : > { %v2139_v57 = vmul.f32 1.442695, %v1988_v34  ;;  %v4842_v14 = vpop.eup %4841  ;;  %v1999_v34 = vsub.f32 %v8393_v29, %v6672_v44 }
 0x430   : > { %2622 = vperm.xlu0 %4790, %v4832_v13   ;;  %v8390_v13 = vld [vmem:[#allocation97_spill] sm:$0xff]  ;;  %4851 = vpow2.f32 %v2255_v38 }
 0x431   : > { %2517 = vperm.xlu1 %4789, %v4834_v0   ;;  %v2017_v3 = vsub.f32 %v8390_v13, %v6679_v4  ;;  %v8391_v0 = vld [vmem:[#allocation61_spill] sm:$0xff]  ;;  %4853 = vpow2.f32 %v2139_v57  ;;  %v2161_v38 = vmul.f32 1.442695, %v1999_v34 }
 0x432   : > { %v1997_v25 = vsub.f32 %v8391_v0, %v6672_v44  ;;  %v2257_v0 = vmul.f32 1.442695, %v2047_v18 }
 0x434   : > { %2583 = vperm.xlu0 %4790, %v4836_v48   ;;  %v2197_v48 = vmul.f32 1.442695, %v2017_v3  ;;  %v4844_v13 = vpop.eup %4843  ;;  %v8395_v3 = vld [vmem:[#allocation92_spill] sm:$0xff] }
 0x435   : > { %2523 = vperm.xlu1 %4789, %v4838_v21   ;;  %v2157_v21 = vmul.f32 1.442695, %v1997_v25  ;;  %v4846_v53 = vpop.eup %4845  ;;  %v1955_v25 = vsub.s32 7, %v8361_v32 }
 0x436   : > { %4855 = vpow2.f32 %v2197_v48  ;;  %v4848_v17 = vpop.eup %4847 }
 0x437   : > { %4857 = vpow2.f32 %v2157_v21  ;;  %v4850_v57 = vpop.eup %4849 }
 0x438   : > { %2670 = vperm.xlu0 %4790, %v4840_v24   ;;  %v2062_v24 = vsub.f32 %v8394_v58, %v6723_v16  ;;  %4859 = vpow2.f32 %v2257_v0  ;;  %v8398_v0 = vld [vmem:[#allocation110_spill] sm:$0xff] }
 0x439   : > { %2529 = vperm.xlu1 %4789, %v4842_v14   ;;  %v2014_v14 = vsub.f32 %v8395_v3, %v6679_v4  ;;  %4861 = vpow2.f32 %v2161_v38  ;;  %v6739_v3 = vrot.slane %v6627_v37, %v1955_v25  ;;  %v8399_v38 = vld [vmem:[#allocation76_spill] sm:$0xff] }
 0x43a   : > { %v2287_v29 = vmul.f32 1.442695, %v2062_v24  ;;  %v4852_v34 = vpop.eup %4851  ;;  %v2048_v24 = vsub.f32 %v8398_v0, %v6707_v26 }
 0x43b   : > { %v2191_v18 = vmul.f32 1.442695, %v2014_v14  ;;  %v4854_v58 = vpop.eup %4853  ;;  %v2030_v14 = vsub.f32 %v8399_v38, %v6691_v8  ;;  %v2077_v37 = vsub.f32 %v6528_v7, %v6739_v3 }
 0x43c   : > { %2586 = vperm.xlu0 %4790, %v4844_v13   ;;  %v8397_v13 = vld [vmem:[#allocation95_spill] sm:$0xff]  ;;  %4863 = vpow2.f32 %v2287_v29  ;;  %v8400_v29 = vld [vmem:[#allocation94_spill] sm:$0xff] }
 0x43d   : > { %2535 = vperm.xlu1 %4789, %v4846_v53   ;;  %v8396_v53 = vld [vmem:[#allocation96_spill] sm:$0xff]  ;;  %v2015_v21 = vsub.f32 %v8397_v13, %v6679_v4  ;;  %4865 = vpow2.f32 %v2191_v18  ;;  %v2259_v13 = vmul.f32 1.442695, %v2048_v24  ;;  %v2223_v25 = vmul.f32 1.442695, %v2030_v14  ;;  %v8402_v24 = vld [vmem:[#allocation109_spill] sm:$0xff] }
 0x43e   : > { %v2018_v48 = vsub.f32 %v8396_v53, %v6679_v4  ;;  %v2045_v38 = vsub.f32 %v8402_v24, %v6707_v26 }
 0x440   : > { %2676 = vperm.xlu0 %4790, %v4848_v17   ;;  %v2199_v32 = vmul.f32 1.442695, %v2018_v48  ;;  %v2193_v17 = vmul.f32 1.442695, %v2015_v21  ;;  %v2016_v48 = vsub.f32 %v8400_v29, %v6679_v4  ;;  %v2317_v21 = vmul.f32 1.442695, %v2077_v37 }
 0x441   : > { %2541 = vperm.xlu1 %4789, %v4850_v57   ;;  %v4856_v57 = vpop.eup %4855  ;;  %v8404_v37 = vld [vmem:[#allocation64_spill] sm:$0xff] }
 0x442   : > { %v4858_v53 = vpop.eup %4857  ;;  %4867 = vpow2.f32 %v2199_v32  ;;  %v2195_v32 = vmul.f32 1.442695, %v2016_v48  ;;  %v2002_v29 = vsub.f32 %v8404_v37, %v6672_v44 }
 0x443   : > { %4869 = vpow2.f32 %v2193_v17 }
 0x444   : > { %2721 = vperm.xlu0 %4790, %v4852_v34   ;;  %v4860_v34 = vpop.eup %4859  ;;  %4871 = vpow2.f32 %v2259_v13  ;;  %v2253_v13 = vmul.f32 1.442695, %v2045_v38 }
 0x445   : > { %2547 = vperm.xlu1 %4789, %v4854_v58   ;;  %v4862_v18 = vpop.eup %4861  ;;  %v8401_v58 = vld [vmem:[#allocation66_spill] sm:$0xff]  ;;  %4873 = vpow2.f32 %v2223_v25 }
 0x446   : > { %v2004_v0 = vsub.f32 %v8401_v58, %v6672_v44  ;;  %v4864_v7 = vpop.eup %4863  ;;  %4875 = vpow2.f32 %v2317_v21  ;;  %v2167_v21 = vmul.f32 1.442695, %v2002_v29  ;;  %v8405_v58 = vld [vmem:[#allocation78_spill] sm:$0xff] }
 0x447   : > { %v4866_v17 = vpop.eup %4865  ;;  %4877 = vpow2.f32 %v2195_v32  ;;  %v8408_v29 = vld [vmem:[#allocation98_spill] sm:$0xff] }
 0x448   : > { %2634 = vperm.xlu0 %4790, %v4856_v57   ;;  %v2171_v14 = vmul.f32 1.442695, %v2004_v0  ;;  %v8403_v57 = vld [vmem:[#allocation80_spill] sm:$0xff]  ;;  %v2032_v0 = vsub.f32 %v8405_v58, %v6691_v8 }
 0x449   : > { %2574 = vperm.xlu1 %4789, %v4858_v53   ;;  %v2034_v53 = vsub.f32 %v8403_v57, %v6691_v8  ;;  %v8407_v57 = vld [vmem:[#allocation130_spill] sm:$0xff] }
 0x44a   : > { %4879 = vpow2.f32 %v2171_v14  ;;  %v2227_v14 = vmul.f32 1.442695, %v2032_v0 }
 0x44b   : > { %v2231_v48 = vmul.f32 1.442695, %v2034_v53  ;;  %4881 = vpow2.f32 %v2253_v13  ;;  %v2061_v53 = vsub.f32 %v8407_v57, %v6723_v16 }
 0x44c   : > { %2724 = vperm.xlu0 %4790, %v4860_v34   ;;  %v4868_v34 = vpop.eup %4867 }
 0x44d   : > { %2580 = vperm.xlu1 %4789, %v4862_v18   ;;  %v4870_v25 = vpop.eup %4869  ;;  %v2064_v18 = vsub.f32 %v6187_v28, %v6723_v16  ;;  %4883 = vpow2.f32 %v2231_v48  ;;  %v8409_v48 = vld [vmem:[#allocation67_spill] sm:$0xff] }
 0x44e   : > { %v4872_v24 = vpop.eup %4871  ;;  %4885 = vpow2.f32 %v2167_v21 }
 0x44f   : > { %v4874_v32 = vpop.eup %4873  ;;  %v2291_v38 = vmul.f32 1.442695, %v2064_v18  ;;  %v2003_v18 = vsub.f32 %v8409_v48, %v6672_v44  ;;  %v8412_v48 = vld [vmem:[#allocation68_spill] sm:$0xff] }
 0x450   : > { %2769 = vperm.xlu0 %4790, %v4864_v7   ;;  %v8406_v7 = vld [vmem:[#allocation52_spill] sm:$0xff]  ;;  %v4876_v28 = vpop.eup %4875 }
 0x451   : > { %2625 = vperm.xlu1 %4789, %v4866_v17   ;;  %v1990_v17 = vsub.f32 %v8406_v7, %v6647_v5  ;;  %v4878_v13 = vpop.eup %4877  ;;  %4887 = vpow2.f32 %v2291_v38  ;;  %v2169_v38 = vmul.f32 1.442695, %v2003_v18  ;;  %v8411_v7 = vld [vmem:[#allocation81_spill] sm:$0xff]  ;;  %v2006_v18 = vsub.f32 %v8412_v48, %v6672_v44  ;;  %v8416_v48 = vld [vmem:[#allocation54_spill] sm:$0xff] }
 0x452   : > { %4889 = vpow2.f32 %v2227_v14 }
 0x453   : > { %v2143_v37 = vmul.f32 1.442695, %v1990_v17  ;;  %v2033_v17 = vsub.f32 %v8411_v7, %v6691_v8  ;;  %v8414_v7 = vld [vmem:[#allocation99_spill] sm:$0xff] }
 0x454   : > { %2637 = vperm.xlu0 %4790, %v4868_v34   ;;  %v2020_v34 = vsub.f32 %v8408_v29, %v6679_v4  ;;  %v4880_v58 = vpop.eup %4879 }
 0x455   : > { %2628 = vperm.xlu1 %4789, %v4870_v25   ;;  %v2285_v25 = vmul.f32 1.442695, %v2061_v53  ;;  %v4882_v21 = vpop.eup %4881  ;;  %4891 = vpow2.f32 %v2143_v37  ;;  %v2063_v37 = vsub.f32 %v6189_v1, %v6723_v16  ;;  %v2175_v1 = vmul.f32 1.442695, %v2006_v18 }
 0x456   : > { %v2203_v0 = vmul.f32 1.442695, %v2020_v34  ;;  %v1992_v18 = vsub.f32 %v8416_v48, %v6647_v5 }
 0x457   : > { %4893 = vpow2.f32 %v2285_v25  ;;  %v4884_v57 = vpop.eup %4883 }
 0x458   : > { %2727 = vperm.xlu0 %4790, %v4872_v24   ;;  %v8410_v24 = vld [vmem:[#allocation112_spill] sm:$0xff]  ;;  %v4886_v14 = vpop.eup %4885  ;;  %4895 = vpow2.f32 %v2203_v0 }
 0x459   : > { %2673 = vperm.xlu1 %4789, %v4874_v32   ;;  %v2050_v32 = vsub.f32 %v8410_v24, %v6707_v26  ;;  %4897 = vpow2.f32 %v2169_v38  ;;  %v8413_v24 = vld [vmem:[#allocation82_spill] sm:$0xff] }
 0x45b   : > { %v2263_v53 = vmul.f32 1.442695, %v2050_v32  ;;  %v4888_v29 = vpop.eup %4887  ;;  %v2036_v32 = vsub.f32 %v8413_v24, %v6691_v8 }
 0x45c   : > { %2814 = vperm.xlu0 %4790, %v4876_v28   ;;  %v2080_v28 = vsub.f32 %v6255_v59, %v6739_v3  ;;  %v4890_v34 = vpop.eup %4889 }
 0x45d   : > { %2631 = vperm.xlu1 %4789, %v4878_v13   ;;  %v2229_v13 = vmul.f32 1.442695, %v2033_v17  ;;  %4899 = vpow2.f32 %v2263_v53  ;;  %v2019_v17 = vsub.f32 %v8414_v7, %v6679_v4  ;;  %v2066_v53 = vsub.f32 %v6234_v51, %v6723_v16 }
 0x45e   : > { %v2323_v25 = vmul.f32 1.442695, %v2080_v28 }
 0x45f   : > { %4901 = vpow2.f32 %v2229_v13  ;;  %v4892_v59 = vpop.eup %4891  ;;  %v2201_v28 = vmul.f32 1.442695, %v2019_v17  ;;  %v8415_v13 = vld [vmem:[#allocation113_spill] sm:$0xff] }
 0x460   : > { %2595 = vperm.xlu0 %4790, %v4880_v58   ;;  %v2289_v58 = vmul.f32 1.442695, %v2063_v37  ;;  %4903 = vpow2.f32 %v2323_v25  ;;  %v2049_v37 = vsub.f32 %v8415_v13, %v6707_v26  ;;  %v2295_v25 = vmul.f32 1.442695, %v2066_v53 }
 0x461   : > { %2718 = vperm.xlu1 %4789, %v4882_v21   ;;  %v2078_v21 = vsub.f32 %v6213_v50, %v6739_v3  ;;  %v4894_v0 = vpop.eup %4893  ;;  %v2235_v50 = vmul.f32 1.442695, %v2036_v32 }
 0x462   : > { %4905 = vpow2.f32 %v2289_v58  ;;  %v2261_v58 = vmul.f32 1.442695, %v2049_v37 }
 0x463   : > { %v2319_v38 = vmul.f32 1.442695, %v2078_v21  ;;  %4907 = vpow2.f32 %v2175_v1  ;;  %v2079_v21 = vsub.f32 %v6236_v39, %v6739_v3  ;;  %v8417_v1 = vld [vmem:[#allocation100_spill] sm:$0xff] }
 0x464   : > { %2685 = vperm.xlu0 %4790, %v4884_v57   ;;  %v4896_v57 = vpop.eup %4895  ;;  %v2022_v24 = vsub.f32 %v8417_v1, %v6679_v4 }
 0x465   : > { %2589 = vperm.xlu1 %4789, %v4886_v14   ;;  %v4898_v14 = vpop.eup %4897  ;;  %4909 = vpow2.f32 %v2319_v38  ;;  %v2321_v32 = vmul.f32 1.442695, %v2079_v21  ;;  %v8418_v38 = vld [vmem:[#allocation69_spill] sm:$0xff] }
 0x466   : > { %4911 = vpow2.f32 %v2235_v50  ;;  %v2005_v7 = vsub.f32 %v8418_v38, %v6672_v44  ;;  %v2207_v39 = vmul.f32 1.442695, %v2022_v24  ;;  %v8422_v24 = vld [vmem:[#allocation55_spill] sm:$0xff] }
 0x467   : > { %4913 = vpow2.f32 %v2201_v28  ;;  %v8420_v28 = vld [vmem:[#allocation83_spill] sm:$0xff] }
 0x468   : > { %2775 = vperm.xlu0 %4790, %v4888_v29   ;;  %v4900_v29 = vpop.eup %4899  ;;  %4915 = vpow2.f32 %v2295_v25  ;;  %v2173_v53 = vmul.f32 1.442695, %v2005_v7  ;;  %v2035_v13 = vsub.f32 %v8420_v28, %v6691_v8  ;;  %v2082_v25 = vsub.f32 %v6296_v61, %v6739_v3 }
 0x469   : > { %2679 = vperm.xlu1 %4789, %v4890_v34   ;;  %v4902_v34 = vpop.eup %4901  ;;  %4917 = vpow2.f32 %v2261_v58 }
 0x46a   : > { %v4904_v51 = vpop.eup %4903  ;;  %v2233_v48 = vmul.f32 1.442695, %v2035_v13 }
 0x46c   : > { %2553 = vperm.xlu0 %4790, %v4892_v59   ;;  %v4906_v59 = vpop.eup %4905 }
 0x46d   : > { %2766 = vperm.xlu1 %4789, %v4894_v0   ;;  %v2147_v0 = vmul.f32 1.442695, %v1992_v18  ;;  %v4908_v17 = vpop.eup %4907  ;;  %v2065_v18 = vsub.f32 %v6211_v15, %v6723_v16 }
 0x46f   : > { %4919 = vpow2.f32 %v2147_v0  ;;  %v2293_v1 = vmul.f32 1.442695, %v2065_v18  ;;  %v8429_v18 = vld [vmem:[#allocation115_spill] sm:$0xff] }
 0x470   : > { %2643 = vperm.xlu0 %4790, %v4896_v57   ;;  %v4910_v57 = vpop.eup %4909  ;;  %4921 = vpow2.f32 %v2321_v32  ;;  %v1991_v32 = vsub.f32 %v8422_v24, %v6647_v5  ;;  %v8432_v24 = vld [vmem:[#allocation56_spill] sm:$0xff] }
 0x471   : > { %2592 = vperm.xlu1 %4789, %v4898_v14   ;;  %v8419_v14 = vld [vmem:[#allocation114_spill] sm:$0xff]  ;;  %v4912_v37 = vpop.eup %4911  ;;  %4923 = vpow2.f32 %v2207_v39 }
 0x472   : > { %v2052_v50 = vsub.f32 %v8419_v14, %v6707_v26  ;;  %4925 = vpow2.f32 %v2173_v53  ;;  %v2145_v14 = vmul.f32 1.442695, %v1991_v32  ;;  %v1994_v32 = vsub.f32 %v8432_v24, %v6647_v5  ;;  %v8439_v24 = vld [vmem:[#allocation85_spill] sm:$0xff] }
 0x474   : > { %2733 = vperm.xlu0 %4790, %v4900_v29   ;;  %v4914_v29 = vpop.eup %4913 }
 0x475   : > { %2682 = vperm.xlu1 %4789, %v4902_v34   ;;  %v2267_v34 = vmul.f32 1.442695, %v2052_v50  ;;  %v4916_v58 = vpop.eup %4915  ;;  %v8426_v50 = vld [vmem:[#allocation101_spill] sm:$0xff] }
 0x476   : > { %v4918_v21 = vpop.eup %4917  ;;  %v2021_v53 = vsub.f32 %v8426_v50, %v6679_v4  ;;  %v8435_v50 = vld [vmem:[#allocation102_spill] sm:$0xff] }
 0x477   : > { %4927 = vpow2.f32 %v2267_v34 }
 0x478   : > { %2823 = vperm.xlu0 %4790, %v4904_v51   ;;  %v2327_v51 = vmul.f32 1.442695, %v2082_v25  ;;  %4929 = vpow2.f32 %v2233_v48  ;;  %v2068_v25 = vsub.f32 %v6272_v55, %v6723_v16  ;;  %v2205_v48 = vmul.f32 1.442695, %v2021_v53 }
 0x479   : > { %2772 = vperm.xlu1 %4789, %v4906_v59   ;;  %v8421_v59 = vld [vmem:[#allocation70_spill] sm:$0xff]  ;;  %v4920_v61 = vpop.eup %4919  ;;  %v2024_v53 = vsub.f32 %v8435_v50, %v6679_v4 }
 0x47a   : > { %v2008_v0 = vsub.f32 %v8421_v59, %v6672_v44  ;;  %v4922_v7 = vpop.eup %4921  ;;  %4931 = vpow2.f32 %v2327_v51 }
 0x47b   : > { %4933 = vpow2.f32 %v2293_v1  ;;  %v4924_v28 = vpop.eup %4923  ;;  %v2299_v1 = vmul.f32 1.442695, %v2068_v25 }
 0x47c   : > { %2601 = vperm.xlu0 %4790, %v4908_v17   ;;  %v2179_v15 = vmul.f32 1.442695, %v2008_v0 }
 0x47d   : > { %2817 = vperm.xlu1 %4789, %v4910_v57   ;;  %v8425_v57 = vld [vmem:[#allocation84_spill] sm:$0xff] }
 0x47e   : > { %v2038_v39 = vsub.f32 %v8425_v57, %v6691_v8  ;;  %4935 = vpow2.f32 %v2179_v15 }
 0x47f   : > { %4937 = vpow2.f32 %v2145_v14  ;;  %v2151_v14 = vmul.f32 1.442695, %v1994_v32  ;;  %v2037_v32 = vsub.f32 %v8439_v24, %v6691_v8 }
 0x480   : > { %2691 = vperm.xlu0 %4790, %v4912_v37   ;;  %v4926_v37 = vpop.eup %4925  ;;  %v2239_v34 = vmul.f32 1.442695, %v2038_v39 }
 0x481   : > { %2640 = vperm.xlu1 %4789, %v4914_v29  }
 0x482   : > { %4939 = vpow2.f32 %v2239_v34 }
 0x483   : > { %4941 = vpow2.f32 %v2205_v48 }
 0x484   : > { %2781 = vperm.xlu0 %4790, %v4916_v58   ;;  %v2051_v58 = vsub.f32 %v8429_v18, %v6707_v26  ;;  %4943 = vpow2.f32 %v2299_v1 }
 0x485   : > { %2730 = vperm.xlu1 %4789, %v4918_v21   ;;  %v4928_v21 = vpop.eup %4927 }
 0x486   : > { %v4930_v59 = vpop.eup %4929  ;;  %v2265_v55 = vmul.f32 1.442695, %v2051_v58  ;;  %v2211_v58 = vmul.f32 1.442695, %v2024_v53  ;;  %v2237_v53 = vmul.f32 1.442695, %v2037_v32 }
 0x487   : > { %v6809_v38 = vpop.permute.xlu0 %2481 }
 0x488   : > { %8423 = vst [vmem:[#allocation125_spill] sm:$0xff] %v6809_v38  ;;  %v6811_v17 = vpop.permute.xlu1 %2478  ;;  %2559 = vperm.xlu0 %4790, %v4920_v61   ;;  %v2081_v61 = vsub.f32 %v6274_v52, %v6739_v3  ;;  %4945 = vpow2.f32 %v2265_v55 }
 0x489   : > { %8424 = vst [vmem:[#allocation138_spill] sm:$0xff] %v6811_v17  ;;  %2820 = vperm.xlu1 %4789, %v4922_v7   ;;  %v4932_v7 = vpop.eup %4931  ;;  %4947 = vpow2.f32 %v2151_v14  ;;  %v2084_v14 = vsub.f32 %v6359_v10, %v6739_v3 }
 0x48a   : > { %v4934_v57 = vpop.eup %4933 }
 0x48b   : > { %v6817_v13 = vpop.permute.xlu0 %2508  ;;  %v4936_v25 = vpop.eup %4935 }
 0x48c   : > { %8427 = vst [vmem:[#allocation139_spill] sm:$0xff] %v6817_v13  ;;  %v6819_v29 = vpop.permute.xlu1 %2484  ;;  %2649 = vperm.xlu0 %4790, %v4924_v28   ;;  %v2325_v28 = vmul.f32 1.442695, %v2081_v61  ;;  %v4938_v48 = vpop.eup %4937 }
 0x48d   : > { %8428 = vst [vmem:[#allocation27_spill] sm:$0xff] %v6819_v29  ;;  %2598 = vperm.xlu1 %4789, %v4926_v37   ;;  %v8436_v37 = vld [vmem:[#allocation71_spill] sm:$0xff]  ;;  %v4940_v55 = vpop.eup %4939 }
 0x48e   : > { %v2007_v34 = vsub.f32 %v8436_v37, %v6672_v44  ;;  %4949 = vpow2.f32 %v2325_v28  ;;  %v2067_v28 = vsub.f32 %v6253_v42, %v6723_v16 }
 0x48f   : > { %v6825_v51 = vpop.permute.xlu0 %2514  ;;  %4951 = vpow2.f32 %v2211_v58  ;;  %v8444_v58 = vld [vmem:[#allocation72_spill] sm:$0xff] }
 0x490   : > { %8430 = vst [vmem:[#allocation31_spill] sm:$0xff] %v6825_v51  ;;  %v6827_v0 = vpop.permute.xlu1 %2487  ;;  %2739 = vperm.xlu0 %4790, %v4928_v21   ;;  %v8438_v21 = vld [vmem:[#allocation116_spill] sm:$0xff]  ;;  %v2177_v1 = vmul.f32 1.442695, %v2007_v34  ;;  %v2297_v10 = vmul.f32 1.442695, %v2067_v28 }
 0x491   : > { %8431 = vst [vmem:[#allocation29_spill] sm:$0xff] %v6827_v0  ;;  %2688 = vperm.xlu1 %4789, %v4930_v59   ;;  %v2054_v59 = vsub.f32 %v8438_v21, %v6707_v26  ;;  %v2331_v21 = vmul.f32 1.442695, %v2084_v14 }
 0x492   : > { %4953 = vpow2.f32 %v2177_v1  ;;  %v8445_v1 = vld [vmem:[#allocation57_spill] sm:$0xff] }
 0x493   : > { %v6833_v15 = vpop.permute.xlu0 %2520  ;;  %v2271_v50 = vmul.f32 1.442695, %v2054_v59  ;;  %v2010_v59 = vsub.f32 %v8444_v58, %v6672_v44  ;;  %v1993_v24 = vsub.f32 %v8445_v1, %v6647_v5 }
 0x494   : > { %8433 = vst [vmem:[#allocation39_spill] sm:$0xff] %v6833_v15  ;;  %v6835_v39 = vpop.permute.xlu1 %2490  ;;  %2829 = vperm.xlu0 %4790, %v4932_v7   ;;  %v4942_v7 = vpop.eup %4941 }
 0x495   : > { %8434 = vst [vmem:[#allocation28_spill] sm:$0xff] %v6835_v39  ;;  %2778 = vperm.xlu1 %4789, %v4934_v57   ;;  %v4944_v37 = vpop.eup %4943  ;;  %4955 = vpow2.f32 %v2271_v50  ;;  %v8448_v50 = vld [vmem:[#allocation86_spill] sm:$0xff] }
 0x496   : > { %4957 = vpow2.f32 %v2237_v53  ;;  %v2040_v14 = vsub.f32 %v8448_v50, %v6691_v8  ;;  %v8449_v53 = vld [vmem:[#allocation103_spill] sm:$0xff] }
 0x497   : > { %v6841_v52 = vpop.permute.xlu0 %2526  ;;  %4959 = vpow2.f32 %v2331_v21  ;;  %v2023_v28 = vsub.f32 %v8449_v53, %v6679_v4  ;;  %v2070_v21 = vsub.f32 %v6327_v49, %v6723_v16 }
 0x498   : > { %v6843_v18 = vpop.permute.xlu1 %2493  ;;  %2607 = vperm.xlu0 %4790, %v4936_v25   ;;  %v4946_v25 = vpop.eup %4945  ;;  %4961 = vpow2.f32 %v2297_v10  ;;  %v8452_v10 = vld [vmem:[#allocation117_spill] sm:$0xff] }
 0x499   : > { %8437 = vst [vmem:[#allocation25_spill] sm:$0xff] %v6843_v18  ;;  %2556 = vperm.xlu1 %4789, %v4938_v48   ;;  %v4948_v32 = vpop.eup %4947 }
 0x49b   : > { %v6849_v61 = vpop.permute.xlu0 %2532 }
 0x49c   : > { %8440 = vst [vmem:[#allocation41_spill] sm:$0xff] %v6849_v61  ;;  %v6851_v57 = vpop.permute.xlu1 %2496  ;;  %2697 = vperm.xlu0 %4790, %v4940_v55   ;;  %v4950_v55 = vpop.eup %4949 }
 0x49d   : > { %8441 = vst [vmem:[#allocation30_spill] sm:$0xff] %v6851_v57  ;;  %2646 = vperm.xlu1 %4789, %v4942_v7   ;;  %v4952_v58 = vpop.eup %4951 }
 0x49e   : > { %v4954_v15 = vpop.eup %4953 }
 0x49f   : > { %v6857_v34 = vpop.permute.xlu0 %2538 }
 0x4a0   : > { %8442 = vst [vmem:[#allocation43_spill] sm:$0xff] %v6857_v34  ;;  %v6859_v48 = vpop.permute.xlu1 %2499  ;;  %2787 = vperm.xlu0 %4790, %v4944_v37   ;;  %v2183_v37 = vmul.f32 1.442695, %v2010_v59  ;;  %v2209_v59 = vmul.f32 1.442695, %v2023_v28 }
 0x4a1   : > { %8443 = vst [vmem:[#allocation33_spill] sm:$0xff] %v6859_v48  ;;  %2736 = vperm.xlu1 %4789, %v4946_v25   ;;  %v2149_v25 = vmul.f32 1.442695, %v1993_v24  ;;  %v2053_v24 = vsub.f32 %v8452_v10, %v6707_v26 }
 0x4a2   : > { %4963 = vpow2.f32 %v2183_v37  ;;  %v8454_v37 = vld [vmem:[#allocation58_spill] sm:$0xff] }
 0x4a3   : > { %v6865_v42 = vpop.permute.xlu0 %2544  ;;  %4965 = vpow2.f32 %v2149_v25  ;;  %v2269_v49 = vmul.f32 1.442695, %v2053_v24  ;;  %v2083_v25 = vsub.f32 %v6329_v11, %v6739_v3 }
 0x4a4   : > { %8446 = vst [vmem:[#allocation45_spill] sm:$0xff] %v6865_v42  ;;  %v6867_v7 = vpop.permute.xlu1 %2502  ;;  %2565 = vperm.xlu0 %4790, %v4948_v32   ;;  %v2243_v32 = vmul.f32 1.442695, %v2040_v14  ;;  %v1996_v14 = vsub.f32 %v8454_v37, %v6647_v5 }
 0x4a5   : > { %8447 = vst [vmem:[#allocation32_spill] sm:$0xff] %v6867_v7  ;;  %2826 = vperm.xlu1 %4789, %v4950_v55   ;;  %v4956_v55 = vpop.eup %4955 }
 0x4a6   : > { %v4958_v53 = vpop.eup %4957  ;;  %4967 = vpow2.f32 %v2243_v32  ;;  %v8456_v32 = vld [vmem:[#allocation104_spill] sm:$0xff] }
 0x4a7   : > { %v6873_v1 = vpop.permute.xlu0 %2550  ;;  %4969 = vpow2.f32 %v2209_v59  ;;  %v4960_v28 = vpop.eup %4959  ;;  %v8457_v59 = vld [vmem:[#allocation73_spill] sm:$0xff] }
 0x4a8   : > { %8450 = vst [vmem:[#allocation47_spill] sm:$0xff] %v6873_v1  ;;  %v6875_v51 = vpop.permute.xlu1 %2505  ;;  %2655 = vperm.xlu0 %4790, %v4952_v58   ;;  %v4962_v10 = vpop.eup %4961  ;;  %v2009_v24 = vsub.f32 %v8457_v59, %v6672_v44 }
 0x4a9   : > { %8451 = vst [vmem:[#allocation35_spill] sm:$0xff] %v6875_v51  ;;  %2604 = vperm.xlu1 %4789, %v4954_v15   ;;  %v2303_v15 = vmul.f32 1.442695, %v2070_v21  ;;  %v2026_v21 = vsub.f32 %v8456_v32, %v6679_v4 }
 0x4ab   : > { %v6881_v50 = vpop.permute.xlu0 %2577  ;;  %4971 = vpow2.f32 %v2303_v15  ;;  %v8459_v15 = vld [vmem:[#allocation119_spill] sm:$0xff] }
 0x4ac   : > { %v6883_v13 = vpop.permute.xlu1 %2511  ;;  %2745 = vperm.xlu0 %4790, %v4956_v55   ;;  %v2155_v55 = vmul.f32 1.442695, %v1996_v14  ;;  %4973 = vpow2.f32 %v2269_v49  ;;  %v4964_v37 = vpop.eup %4963  ;;  %v2056_v14 = vsub.f32 %v8459_v15, %v6707_v26  ;;  %v8460_v49 = vld [vmem:[#allocation87_spill] sm:$0xff]  ;;  %v3026_v17 = vrot.slane %v6881_v50, %v6090_v33 }
 0x4ad   : > { %8453 = vst [vmem:[#allocation49_spill] sm:$0xff] %v6883_v13  ;;  %2694 = vperm.xlu1 %4789, %v4958_v53   ;;  %v2329_v53 = vmul.f32 1.442695, %v2083_v25  ;;  %v4966_v13 = vpop.eup %4965  ;;  %v2039_v25 = vsub.f32 %v8460_v49, %v6691_v8 }
 0x4ae   : > { %4975 = vpow2.f32 %v2155_v55  ;;  %v2086_v55 = vsub.f32 %v8351_v31, %v6739_v3 }
 0x4af   : > { %v6889_v58 = vpop.permute.xlu0 %2622  ;;  %4977 = vpow2.f32 %v2329_v53  ;;  %v2069_v53 = vsub.f32 %v6294_v27, %v6723_v16 }
 0x4b0   : > { %v6891_v51 = vpop.permute.xlu1 %2517  ;;  %2835 = vperm.xlu0 %4790, %v4960_v28   ;;  %v2215_v28 = vmul.f32 1.442695, %v2026_v21  ;;  %v4968_v32 = vpop.eup %4967  ;;  %v2241_v21 = vmul.f32 1.442695, %v2039_v25 }
 0x4b1   : > { %8455 = vst [vmem:[#allocation34_spill] sm:$0xff] %v6891_v51  ;;  %2784 = vperm.xlu1 %4789, %v4962_v10   ;;  %v2181_v10 = vmul.f32 1.442695, %v2009_v24  ;;  %v4970_v51 = vpop.eup %4969  ;;  %v2301_v31 = vmul.f32 1.442695, %v2069_v53  ;;  %v2087_v53 = vsub.f32 %v8352_v47, %v6739_v3  ;;  %v2085_v47 = vsub.f32 %v6387_v63, %v6739_v3 }
 0x4b2   : > { %4979 = vpow2.f32 %v2215_v28  ;;  %v8462_v28 = vld [vmem:[#allocation107_spill] sm:$0xff] }
 0x4b3   : > { %v6897_v11 = vpop.permute.xlu0 %2583  ;;  %4981 = vpow2.f32 %v2181_v10  ;;  %v8463_v10 = vld [vmem:[#allocation59_spill] sm:$0xff] }
 0x4b4   : > { %v6899_v7 = vpop.permute.xlu1 %2523  ;;  %2613 = vperm.xlu0 %4790, %v4964_v37   ;;  %v1995_v25 = vsub.f32 %v8463_v10, %v6647_v5 }
 0x4b5   : > { %8458 = vst [vmem:[#allocation51_spill] sm:$0xff] %v6899_v7  ;;  %2562 = vperm.xlu1 %4789, %v4966_v13   ;;  %v2275_v13 = vmul.f32 1.442695, %v2056_v14  ;;  %v4972_v24 = vpop.eup %4971  ;;  %v2027_v14 = vsub.f32 %v8462_v28, %v6679_v4  ;;  %v8464_v7 = vld [vmem:[#allocation123_spill] sm:$0xff] }
 0x4b6   : > { %v4974_v15 = vpop.eup %4973  ;;  %v2057_v57 = vsub.f32 %v8464_v7, %v6707_v26  ;;  %v2153_v5 = vmul.f32 1.442695, %v1995_v25 }
 0x4b7   : > { %v6905_v59 = vpop.permute.xlu0 %2670  ;;  %4983 = vpow2.f32 %v2275_v13  ;;  %v8466_v13 = vld [vmem:[#allocation105_spill] sm:$0xff] }
 0x4b8   : > { %v6907_v48 = vpop.permute.xlu1 %2529  ;;  %2703 = vperm.xlu0 %4790, %v4968_v32   ;;  %4985 = vpow2.f32 %v2241_v21  ;;  %v4976_v32 = vpop.eup %4975  ;;  %v2217_v21 = vmul.f32 1.442695, %v2027_v14  ;;  %v2277_v10 = vmul.f32 1.442695, %v2057_v57  ;;  %v2073_v14 = vsub.f32 %v6413_v35, %v6723_v16  ;;  %v8470_v57 = vld [vmem:[#allocation75_spill] sm:$0xff]  ;;  %v8471_v35 = vld [vmem:[#allocation89_spill] sm:$0xff] }
 0x4b9   : > { %2652 = vperm.xlu1 %4789, %v4970_v51   ;;  %v2335_v51 = vmul.f32 1.442695, %v2086_v55  ;;  %v4978_v18 = vpop.eup %4977  ;;  %v2025_v55 = vsub.f32 %v8466_v13, %v6679_v4  ;;  %v2011_v25 = vsub.f32 %v8470_v57, %v6672_v44 }
 0x4bb   : > { %v6913_v37 = vpop.permute.xlu0 %2586  ;;  %4987 = vpow2.f32 %v2335_v51  ;;  %v2337_v51 = vmul.f32 1.442695, %v2087_v53  ;;  %v2041_v53 = vsub.f32 %v8471_v35, %v6691_v8 }
 0x4bc   : > { %v6915_v49 = vpop.permute.xlu1 %2535  ;;  %2793 = vperm.xlu0 %4790, %v4972_v24   ;;  %4989 = vpow2.f32 %v2301_v31  ;;  %v8467_v24 = vld [vmem:[#allocation120_spill] sm:$0xff]  ;;  %v4980_v28 = vpop.eup %4979 }
 0x4bd   : > { %8461 = vst [vmem:[#allocation37_spill] sm:$0xff] %v6915_v49  ;;  %2742 = vperm.xlu1 %4789, %v4974_v15   ;;  %v2055_v15 = vsub.f32 %v8467_v24, %v6707_v26  ;;  %v4982_v29 = vpop.eup %4981  ;;  %4991 = vpow2.f32 %v2217_v21  ;;  %v2333_v21 = vmul.f32 1.442695, %v2085_v47  ;;  %v2060_v47 = vsub.f32 %v8348_v60, %v6707_v26 }
 0x4be   : > { %4993 = vpow2.f32 %v2153_v5  ;;  %v2309_v5 = vmul.f32 1.442695, %v2073_v14 }
 0x4bf   : > { %v6921_v27 = vpop.permute.xlu0 %2676  ;;  %v2273_v31 = vmul.f32 1.442695, %v2055_v15  ;;  %4995 = vpow2.f32 %v2277_v10  ;;  %v2074_v15 = vsub.f32 %v6441_v9, %v6723_v16  ;;  %v8472_v9 = vld [vmem:[#allocation74_spill] sm:$0xff]  ;;  %v2283_v60 = vmul.f32 1.442695, %v2060_v47  ;;  %v3535_v47 = vld [vmem:[%s5647_s8 + $0x100] sm:$0xff] }
 0x4c0   : > { %v6925_v39 = vpop.permute.xlu1 %2541  ;;  %2571 = vperm.xlu0 %4790, %v4976_v32   ;;  %v8468_v32 = vld [vmem:[#allocation91_spill] sm:$0xff]  ;;  %v2012_v14 = vsub.f32 %v8472_v9, %v6672_v44 }
 0x4c1   : > { %8465 = vst [vmem:[#allocation53_spill] sm:$0xff] %v6925_v39  ;;  %2832 = vperm.xlu1 %4789, %v4978_v18   ;;  %v2043_v0 = vsub.f32 %v8468_v32, %v6691_v8  ;;  %v2213_v18 = vmul.f32 1.442695, %v2025_v55  ;;  %v4984_v24 = vpop.eup %4983  ;;  %v2044_v55 = vsub.f32 %v8347_v36, %v6691_v8  ;;  %v2071_v36 = vsub.f32 %v6357_v46, %v6723_v16  ;;  %v3551_v9 = vld [vmem:[%s5647_s8 + $0x180] sm:$0xff] }
 0x4c2   : > { %v4986_v63 = vpop.eup %4985  ;;  %v2311_v46 = vmul.f32 1.442695, %v2074_v15  ;;  %v2187_v44 = vmul.f32 1.442695, %v2012_v14  ;;  %v3538_v14 = vld [vmem:[%s5647_s8 + $0x118] sm:$0xff] }
 0x4c3   : > { %v6933_v7 = vpop.permute.xlu0 %2721  ;;  %4997 = vpow2.f32 %v2213_v18  ;;  %v2251_v18 = vmul.f32 1.442695, %v2044_v55  ;;  %v3794_v41 = vmul.f32 %v3538_v14, %v6897_v11 }
 0x4c4   : > { %v6937_v13 = vpop.permute.xlu1 %2547  ;;  %2661 = vperm.xlu0 %4790, %v4980_v28   ;;  %v2249_v28 = vmul.f32 1.442695, %v2043_v0  ;;  %4999 = vpow2.f32 %v2337_v51  ;;  %v2185_v0 = vmul.f32 1.442695, %v2011_v25  ;;  %v2245_v51 = vmul.f32 1.442695, %v2041_v53 }
 0x4c5   : > { %8469 = vst [vmem:[#allocation36_spill] sm:$0xff] %v6937_v13  ;;  %2610 = vperm.xlu1 %4789, %v4982_v29   ;;  %5001 = vpow2.f32 %v2273_v31  ;;  %v4988_v10 = vpop.eup %4987  ;;  %v2090_v31 = vsub.f32 %v6561_v54, %v6739_v3  ;;  %v2305_v25 = vmul.f32 1.442695, %v2071_v36 }
 0x4c6   : > { %5003 = vpow2.f32 %v2249_v28 }
 0x4c7   : > { %v6945_v32 = vpop.permute.xlu0 %2634  ;;  %5005 = vpow2.f32 %v2333_v21  ;;  %v2343_v54 = vmul.f32 1.442695, %v2090_v31 }
 0x4c8   : > { %v6949_v29 = vpop.permute.xlu1 %2574  ;;  %2751 = vperm.xlu0 %4790, %v4984_v24   ;;  %v4990_v24 = vpop.eup %4989  ;;  %5007 = vpow2.f32 %v2309_v5  ;;  %v8473_v5 = vld [vmem:[#allocation88_spill] sm:$0xff] }
 0x4c9   : > { %2700 = vperm.xlu1 %4789, %v4986_v63   ;;  %5009 = vpow2.f32 %v2185_v0  ;;  %v4992_v28 = vpop.eup %4991  ;;  %v2042_v15 = vsub.f32 %v8473_v5, %v6691_v8  ;;  %v2091_v0 = vsub.f32 %v6598_v2, %v6739_v3  ;;  %v3567_v8 = vld [vmem:[%s5647_s8 + $0x200] sm:$0xff] }
 0x4ca   : > { %5011 = vpow2.f32 %v2251_v18  ;;  %v4994_v21 = vpop.eup %4993  ;;  %v3536_v18 = vld [vmem:[%s5647_s8 + $0x108] sm:$0xff]  ;;  %v3823_v1 = vmul.f32 %v3567_v8, %v6905_v59  ;;  %v3825_v8 = vmul.f32 %v3569_v6, %v6921_v27 }
 0x4cb   : > { %v6957_v57 = vpop.permute.xlu0 %2724  ;;  %5013 = vpow2.f32 %v2245_v51  ;;  %v4996_v53 = vpop.eup %4995 }
 0x4cc   : > { %v6961_v63 = vpop.permute.xlu1 %2580  ;;  %2841 = vperm.xlu0 %4790, %v4988_v10   ;;  %5015 = vpow2.f32 %v2311_v46  ;;  %v3552_v46 = vld [vmem:[%s5647_s8 + $0x188] sm:$0xff] }
 0x4cd   : > { %2790 = vperm.xlu1 %4789, %v4990_v24   ;;  %v4998_v36 = vpop.eup %4997  ;;  %5017 = vpow2.f32 %v2305_v25  ;;  %v6986_v25 = vmul.f32 1.442695, %v2042_v15 }
 0x4ce   : > { %v5000_v10 = vpop.eup %4999  ;;  %5019 = vpow2.f32 %v2283_v60 }
 0x4cf   : > { %v6967_v55 = vpop.permute.xlu0 %2769  ;;  %v5002_v51 = vpop.eup %5001  ;;  %5021 = vpow2.f32 %v2187_v44  ;;  %v8474_v44 = vld [vmem:[#allocation118_spill] sm:$0xff] }
 0x4d0   : > { %v6969_v35 = vpop.permute.xlu1 %2625  ;;  %2664 = vperm.xlu0 %4790, %v4992_v28   ;;  %v5004_v2 = vpop.eup %5003  ;;  %v3537_v28 = vld [vmem:[%s5647_s8 + $0x110] sm:$0xff]  ;;  %5023 = vpow2.f32 %v2343_v54  ;;  %v3101_v38 = vrot.slane %v6889_v58, %v8474_v44  ;;  %v3568_v54 = vld [vmem:[%s5647_s8 + $0x208] sm:$0xff] }
 0x4d1   : > { %2568 = vperm.xlu1 %4789, %v4994_v21   ;;  %v6988_v21 = vmul.f32 1.442695, %v2091_v0  ;;  %v5006_v5 = vpop.eup %5005  ;;  %v3807_v0 = vmul.f32 %v3551_v9, %v6889_v58  ;;  %v3808_v40 = vmul.f32 %v3552_v46, %v6969_v35  ;;  %v3793_v58 = vmul.f32 %v3537_v28, %v6961_v63  ;;  %v8475_v46 = vld [vmem:[#allocation121_spill] sm:$0xff] }
 0x4d2   : > { %v7000_v15 = vpop.eup %5007  ;;  %v3105_v9 = vrot.slane %v6969_v35, %v6090_v33  ;;  %v3189_v13 = vrot.slane %v6921_v27, %v8475_v46  ;;  %v3022_v35 = vrot.slane %v6949_v29, %v8474_v44  ;;  %5025 = vpow2.f32 %v6986_v25 }
 0x4d3   : > { %v6977_v24 = vpop.permute.xlu0 %2637  ;;  %5027 = vpow2.f32 %v6988_v21  ;;  %v3342_v21 = vrot.slane %v6967_v55, %v6090_v33 }
 0x4d4   : > { %v6982_v31 = vpop.permute.xlu1 %2628  ;;  %2754 = vperm.xlu0 %4790, %v4996_v53   ;;  %v3792_v53 = vmul.f32 %v3536_v18, %v6881_v50  ;;  %v7010_v18 = vpop.eup %5009 }
 0x4d5   : > { %2658 = vperm.xlu1 %4789, %v4998_v36   ;;  %v3791_v36 = vmul.f32 %v3535_v47, %v6949_v29  ;;  %v3180_v47 = vrot.slane %v6905_v59, %v8474_v44  ;;  %v7018_v60 = vpop.eup %5011  ;;  %v3809_v42 = vmul.f32 %v3553_v45, %v6982_v31  ;;  %v3555_v45 = vld [vmem:[%s5647_s8 + $0x1a0] sm:$0xff] }
 0x4d6   : > { %v7024_v59 = vpop.eup %5013 }
 0x4d7   : > { %v7008_v50 = vpop.permute.xlu0 %2727  ;;  %v3929_v28 = vadd.f32 %v3792_v53, %v3791_v36  ;;  %v7032_v49 = vpop.eup %5015  ;;  %v3106_v36 = vsel %vm1254_vm1, %v3105_v9, %v3101_v38 }
 0x4d8   : > { %v2674_v14 = vpop.permute.xlu1 %2673  ;;  %2844 = vperm.xlu0 %4790, %v5000_v10   ;;  %v3110_v10 = vrot.slane %v6982_v31, %v8475_v46  ;;  %v7040_v29 = vpop.eup %5017  ;;  %v3263_v31 = vrot.slane %v6933_v7, %v6090_v33 }
 0x4d9   : > { %v3184_v39 = vrot.slane %v2674_v14, %v6090_v33  ;;  %v3824_v34 = vmul.f32 %v3568_v54, %v2674_v14  ;;  %2748 = vperm.xlu1 %4789, %v5002_v51   ;;  %v3031_v51 = vrot.slane %v6961_v63, %v8475_v46  ;;  %v3950_v54 = vadd.f32 %v3808_v40, %v3807_v0  ;;  %v7048_v40 = vpop.eup %5019 }
 0x4da   : > { %v3930_v53 = vadd.f32 %v3929_v28, %v3793_v58  ;;  %v7055_v38 = vpop.eup %5021  ;;  %v3027_v58 = vsel %vm1254_vm1, %v3026_v17, %v3022_v35  ;;  %v3111_v9 = vsel %vm1261_vm2, %v3110_v10, %v3106_v36  ;;  %v3583_v28 = vld [vmem:[%s5647_s8 + $0x280] sm:$0xff] }
 0x4db   : > { %v3185_v14 = vsel %vm1254_vm1, %v3184_v39, %v3180_v47  ;;  %v3971_v6 = vadd.f32 %v3824_v34, %v3823_v1  ;;  %v7038_v27 = vpop.permute.xlu0 %2814  ;;  %v3584_v39 = vld [vmem:[%s5647_s8 + $0x288] sm:$0xff]  ;;  %v3951_v1 = vadd.f32 %v3950_v54, %v3809_v42  ;;  %v7063_v42 = vpop.eup %5023  ;;  %v3539_v54 = vld [vmem:[%s5647_s8 + $0x120] sm:$0xff] }
 0x4dc   : > { %8476 = vst [vmem:[#allocation60_spill] sm:$0xff] %v7038_v27  ;;  %v2632_v19 = vpop.permute.xlu1 %2631  ;;  %2712 = vperm.xlu0 %4790, %v5004_v2   ;;  %v7046_v61 = vsel %vm1261_vm2, %v3189_v13, %v3185_v14  ;;  %v3556_v34 = vld [vmem:[%s5647_s8 + $0x1a8] sm:$0xff]  ;;  %v3120_v2 = vrot.slane %v6945_v32, %v6126_v43  ;;  %v3811_v13 = vmul.f32 %v3555_v45, %v6945_v32 }
 0x4dd   : > { %v3115_v63 = vrot.slane %v2632_v19, %v6115_v20  ;;  %v3810_v0 = vmul.f32 %v3554_v56, %v2632_v19  ;;  %2838 = vperm.xlu1 %4789, %v5006_v5   ;;  %v7053_v47 = vadd.f32 %v3971_v6, %v3825_v8  ;;  %v3585_v19 = vld [vmem:[%s5647_s8 + $0x290] sm:$0xff]  ;;  %v3032_v56 = vsel %vm1261_vm2, %v3031_v51, %v3027_v58  ;;  %v8477_v5 = vld [vmem:[#allocation124_spill] sm:$0xff]  ;;  %v3586_v51 = vld [vmem:[%s5647_s8 + $0x298] sm:$0xff] }
 0x4de   : > { %v3125_v8 = vrot.slane %v6977_v24, %v8477_v5  ;;  %v3840_v17 = vmul.f32 %v3584_v39, %v6933_v7  ;;  %v3931_v32 = vadd.f32 %v3930_v53, %v3794_v41  ;;  %v3812_v35 = vmul.f32 %v3556_v34, %v6977_v24  ;;  %v3540_v39 = vld [vmem:[%s5647_s8 + $0x128] sm:$0xff] }
 0x4df   : > { %v3116_v14 = vsel %vm8478_vm5, %v3115_v63, %v3111_v9  ;;  %v3952_v6 = vadd.f32 %v3951_v1, %v3810_v0  ;;  %v7071_v27 = vpop.permute.xlu0 %2595  ;;  %vm8479_vm5 = vcmask 392512   ;;  %v3795_v7 = vmul.f32 %v3539_v54, %v6913_v37 }
 0x4e0   : > { %v3121_v10 = vsel %vm1275_vm4, %v3120_v2, %v3116_v14  ;;  %v2719_v45 = vpop.permute.xlu1 %2718  ;;  %2802 = vperm.xlu0 %4790, %v7000_v15   ;;  %v3268_v41 = vrot.slane %v6957_v57, %v8475_v46  ;;  %v3841_v24 = vmul.f32 %v3585_v19, %v6957_v57  ;;  %v8480_v15 = vrot.slane %v6897_v11, %v6115_v20 }
 0x4e1   : > { %v3953_v36 = vadd.f32 %v3952_v6, %v3811_v13  ;;  %v3259_v58 = vrot.slane %v2719_v45, %v8474_v44  ;;  %v3839_v30 = vmul.f32 %v3583_v28, %v2719_v45  ;;  %2616 = vperm.xlu1 %4789, %v7010_v18   ;;  %v7081_v1 = vsel %vm8479_vm5, %v3125_v8, %v3121_v10  ;;  %v8483_v8 = vld [vmem:[#allocation106_spill] sm:$0xff] }
 0x4e2   : > { %v3037_v53 = vsel %vm8481_vm3, %v8480_v15, %v3032_v56  ;;  %v3273_v34 = vrot.slane %v7008_v50, %v6115_v20  ;;  %v3041_v57 = vrot.slane %v6913_v37, %v6126_v43  ;;  %v3842_v13 = vmul.f32 %v3586_v51, %v7008_v50  ;;  %v3570_v50 = vld [vmem:[%s5647_s8 + $0x218] sm:$0xff] }
 0x4e3   : > { %v3264_v18 = vsel %vm1254_vm1, %v3263_v31, %v3259_v58  ;;  %v3992_v63 = vadd.f32 %v3840_v17, %v3839_v30  ;;  %v7095_v0 = vpop.permute.xlu0 %2685  ;;  %v7097_v2 = vadd.f32 %v3953_v36, %v3812_v35  ;;  %v3932_v9 = vadd.f32 %v3931_v32, %v3795_v7  ;;  %v8484_v51 = vld [vmem:[#allocation122_spill] sm:$0xff] }
 0x4e4   : > { %v3269_v11 = vsel %vm1261_vm2, %v3268_v41, %v3264_v18  ;;  %v2590_v28 = vpop.permute.xlu1 %2589  ;;  %2715 = vperm.xlu0 %4790, %v7018_v60   ;;  %v3042_v37 = vsel %vm1275_vm4, %v3041_v57, %v3037_v53  ;;  %v8482_v56 = vsub.f32 %v6385_v62, %v6723_v16  ;;  %v2028_v14 = vsub.f32 %v8483_v8, %v6679_v4  ;;  %v3600_v62 = vld [vmem:[%s5647_s8 + $0x308] sm:$0xff]  ;;  %v3599_v4 = vld [vmem:[%s5647_s8 + $0x300] sm:$0xff]  ;;  %v5026_v18 = vpop.eup %5025 }
 0x4e5   : > { %v3993_v54 = vadd.f32 %v3992_v63, %v3841_v24  ;;  %v3046_v31 = vrot.slane %v2590_v28, %v8477_v5  ;;  %v3796_v19 = vmul.f32 %v3540_v39, %v2590_v28  ;;  %2706 = vperm.xlu1 %4789, %v7024_v59   ;;  %v7107_v30 = vsel %vm8481_vm3, %v3273_v34, %v3269_v11  ;;  %v8486_v28 = vld [vmem:[#allocation126_spill] sm:$0xff]  ;;  %v3572_v8 = vld [vmem:[%s5647_s8 + $0x228] sm:$0xff] }
 0x4e6   : > { %v2307_v60 = vmul.f32 1.442695, %v8482_v56  ;;  %v2219_v45 = vmul.f32 1.442695, %v2028_v14  ;;  %v2058_v36 = vsub.f32 %v8484_v51, %v6707_v26  ;;  %v2088_v53 = vsub.f32 %v6480_v22, %v6739_v3  ;;  %v3571_v22 = vld [vmem:[%s5647_s8 + $0x220] sm:$0xff] }
 0x4e7   : > { %v3047_v6 = vsel %vm8479_vm5, %v3046_v31, %v3042_v37  ;;  %v3933_v59 = vadd.f32 %v3932_v9, %v3796_v19  ;;  %v7118_v17 = vpop.permute.xlu0 %2775  ;;  %v7120_v32 = vadd.f32 %v3993_v54, %v3842_v13  ;;  %v8485_v13 = vld [vmem:[#allocation127_spill] sm:$0xff]  ;;  %v2059_v54 = vsub.f32 %v8486_v28, %v6707_v26  ;;  %v5028_v31 = vpop.eup %5027  ;;  %v3520_v19 = vld [vmem:[%s5647_s8 + $0x88] sm:$0xff] }
 0x4e8   : > { %v2680_v35 = vpop.permute.xlu1 %2679  ;;  %2805 = vperm.xlu0 %4790, %v7032_v49   ;;  %5029 = vpow2.f32 %v2307_v60  ;;  %v3056_v11 = vrot.slane %v7071_v27, %v8485_v13  ;;  %v2339_v9 = vmul.f32 1.442695, %v2088_v53  ;;  %v3828_v51 = vmul.f32 %v3572_v8, %v7095_v0 }
 0x4e9   : > { %v3194_v10 = vrot.slane %v2680_v35, %v6115_v20  ;;  %v3826_v25 = vmul.f32 %v3570_v50, %v2680_v35  ;;  %2796 = vperm.xlu1 %4789, %v7040_v29   ;;  %v3856_v29 = vmul.f32 %v3600_v62, %v6967_v55  ;;  %5031 = vpow2.f32 %v2219_v45  ;;  %v3542_v55 = vld [vmem:[%s5647_s8 + $0x138] sm:$0xff] }
 0x4ea   : > { %v3798_v37 = vmul.f32 %v3542_v55, %v7071_v27  ;;  %v2089_v27 = vsub.f32 %v6521_v12, %v6739_v3  ;;  %v3204_v62 = vrot.slane %v7095_v0, %v8477_v5  ;;  %v2281_v45 = vmul.f32 1.442695, %v2059_v54 }
 0x4eb   : > { %v3195_v58 = vsel %vm8481_vm3, %v3194_v10, %v7046_v61  ;;  %v3973_v49 = vadd.f32 %v7053_v47, %v3826_v25  ;;  %v7133_v7 = vpop.permute.xlu0 %2553  ;;  %v3541_v61 = vld [vmem:[%s5647_s8 + $0x130] sm:$0xff]  ;;  %v2279_v47 = vmul.f32 1.442695, %v2058_v36  ;;  %v3519_v10 = vld [vmem:[%s5647_s8 + $0x80] sm:$0xff] }
 0x4ec   : > { %v2767_v41 = vpop.permute.xlu1 %2766  ;;  %2763 = vperm.xlu0 %4790, %v7048_v40  }
 0x4ed   : > { %v3338_v24 = vrot.slane %v2767_v41, %v8474_v44  ;;  %v3855_v15 = vmul.f32 %v3599_v4, %v2767_v41  ;;  %2619 = vperm.xlu1 %4789, %v7055_v38   ;;  %5033 = vpow2.f32 %v2279_v47  ;;  %v3601_v4 = vld [vmem:[%s5647_s8 + $0x310] sm:$0xff] }
 0x4ee   : > { %5035 = vpow2.f32 %v2339_v9  ;;  %v3521_v47 = vld [vmem:[%s5647_s8 + $0x90] sm:$0xff] }
 0x4ef   : > { %v3343_v39 = vsel %vm1254_vm1, %v3342_v21, %v3338_v24  ;;  %v4013_v40 = vadd.f32 %v3856_v29, %v3855_v15  ;;  %v7145_v34 = vpop.permute.xlu0 %2643  ;;  %v3775_v29 = vmul.f32 %v3519_v10, %v6841_v52  ;;  %v3602_v24 = vld [vmem:[%s5647_s8 + $0x318] sm:$0xff]  ;;  %5037 = vpow2.f32 %v2281_v45 }
 0x4f0   : > { %v2593_v63 = vpop.permute.xlu1 %2592  ;;  %2853 = vperm.xlu0 %4790, %v7063_v42   ;;  %v3858_v9 = vmul.f32 %v3602_v24, %v7118_v17 }
 0x4f1   : > { %v3051_v38 = vrot.slane %v2593_v63, %v6144_v23  ;;  %v3797_v57 = vmul.f32 %v3541_v61, %v2593_v63  ;;  %2709 = vperm.xlu1 %4789, %v5026_v18   ;;  %v3615_v63 = vld [vmem:[%s5647_s8 + $0x380] sm:$0xff] }
 0x4f2   : > { %v5030_v60 = vpop.eup %5029 }
 0x4f3   : > { %v3052_v42 = vsel %vm1289_vm6, %v3051_v38, %v3047_v6  ;;  %v3934_v50 = vadd.f32 %v3933_v59, %v3797_v57  ;;  %v7158_v56 = vpop.permute.xlu0 %2733  ;;  %v3776_v59 = vmul.f32 %v3520_v19, %v6907_v48  ;;  %v5032_v12 = vpop.eup %5031  ;;  %v3352_v38 = vrot.slane %v7118_v17, %v6115_v20  ;;  %v3616_v57 = vld [vmem:[%s5647_s8 + $0x388] sm:$0xff] }
 0x4f4   : > { %v2683_v14 = vpop.permute.xlu1 %2682  ;;  %2856 = vperm.xlu0 %4790, %v5028_v31   ;;  %v7162_v35 = vsel %vm1296_vm7, %v3056_v11, %v3052_v42  ;;  %v2341_v11 = vmul.f32 1.442695, %v2089_v27 }
 0x4f5   : > { %v3199_v26 = vrot.slane %v2683_v14, %v6126_v43  ;;  %v3827_v25 = vmul.f32 %v3571_v22, %v2683_v14  ;;  %2799 = vperm.xlu1 %4789, %v5030_v60   ;;  %v7168_v6 = vadd.f32 %v3934_v50, %v3798_v37  ;;  %v3908_v55 = vadd.f32 %v3776_v59, %v3775_v29  ;;  %v3522_v22 = vld [vmem:[%s5647_s8 + $0x98] sm:$0xff]  ;;  %v8488_v37 = vld [vmem:[#allocation41_spill] sm:$0xff]  ;;  %v8489_v50 = vld [vmem:[#allocation60_spill] sm:$0xff] }
 0x4f6   : > { %v3777_v42 = vmul.f32 %v3521_v47, %v8488_v37  ;;  %v3417_v60 = vrot.slane %v8489_v50, %v8474_v44  ;;  %v8490_v14 = vld [vmem:[#allocation141_spill] sm:$0xff]  ;;  %v3871_v17 = vmul.f32 %v3615_v63, %v8489_v50  ;;  %5039 = vpow2.f32 %v2341_v11  ;;  %v3524_v11 = vld [vmem:[%s5647_s8 + $0xa8] sm:$0xff] }
 0x4f7   : > { %v3200_v36 = vsel %vm1275_vm4, %v3199_v26, %v3195_v58  ;;  %v3974_v41 = vadd.f32 %v3973_v49, %v3827_v25  ;;  %v7176_v21 = vpop.permute.xlu0 %2823  ;;  %v8487_v58 = vld [vmem:[#allocation140_spill] sm:$0xff]  ;;  %v5034_v19 = vpop.eup %5033  ;;  %v2076_v10 = vsub.f32 %v8490_v14, %v6723_v16  ;;  %v8491_v59 = vld [vmem:[#allocation37_spill] sm:$0xff]  ;;  %v3135_v63 = vrot.slane %v7145_v34, %v8485_v13 }
 0x4f8   : > { %v2773_v15 = vpop.permute.xlu1 %2772  ;;  %v7181_v61 = vsel %vm8479_vm5, %v3204_v62, %v3200_v36  ;;  %v2075_v49 = vsub.f32 %v8487_v58, %v6723_v16  ;;  %v3909_v27 = vadd.f32 %v3908_v55, %v3777_v42  ;;  %v3778_v62 = vmul.f32 %v3522_v22, %v8491_v59  ;;  %v3588_v42 = vld [vmem:[%s5647_s8 + $0x2a8] sm:$0xff] }
 0x4f9   : > { %v3347_v53 = vrot.slane %v2773_v15, %v8475_v46  ;;  %v3857_v0 = vmul.f32 %v3601_v4, %v2773_v15  ;;  %2667 = vperm.xlu1 %4789, %v5032_v12   ;;  %v7187_v18 = vadd.f32 %v3974_v41, %v3828_v51  ;;  %v3557_v4 = vld [vmem:[%s5647_s8 + $0x1b0] sm:$0xff]  ;;  %v5036_v41 = vpop.eup %5035  ;;  %v3558_v12 = vld [vmem:[%s5647_s8 + $0x1b8] sm:$0xff]  ;;  %v2315_v24 = vmul.f32 1.442695, %v2076_v10 }
 0x4fa   : > { %v2313_v45 = vmul.f32 1.442695, %v2075_v49  ;;  %v8492_v15 = vld [vmem:[#allocation90_spill] sm:$0xff]  ;;  %v3910_v55 = vadd.f32 %v3909_v27, %v3778_v62  ;;  %v2957_v14 = vrot.slane %v8491_v59, %v6115_v20  ;;  %v3617_v27 = vld [vmem:[%s5647_s8 + $0x390] sm:$0xff]  ;;  %v2952_v62 = vrot.slane %v8488_v37, %v8475_v46 }
 0x4fb   : > { %v3348_v28 = vsel %vm1261_vm2, %v3347_v53, %v3343_v39  ;;  %v4014_v54 = vadd.f32 %v4013_v40, %v3857_v0  ;;  %v7196_v31 = vpop.permute.xlu0 %2601  ;;  %v2092_v47 = vsub.f32 %v8492_v15, %v6739_v3  ;;  %v3523_v53 = vld [vmem:[%s5647_s8 + $0xa0] sm:$0xff]  ;;  %v2947_v0 = vrot.slane %v6907_v48, %v6090_v33 }
 0x4fc   : > { %v2818_v8 = vpop.permute.xlu1 %2817  ;;  %v7204_v26 = vsel %vm8481_vm3, %v3352_v38, %v3348_v28  ;;  %v3587_v38 = vld [vmem:[%s5647_s8 + $0x2a0] sm:$0xff]  ;;  %5041 = vpow2.f32 %v2313_v45  ;;  %v3814_v3 = vmul.f32 %v3558_v12, %v7145_v34  ;;  %v5038_v28 = vpop.eup %5037 }
 0x4fd   : > { %v3421_v39 = vrot.slane %v2818_v8, %v6090_v33  ;;  %v3872_v40 = vmul.f32 %v3616_v57, %v2818_v8  ;;  %2757 = vperm.xlu1 %4789, %v5034_v19   ;;  %v7208_v25 = vadd.f32 %v4014_v54, %v3858_v9  ;;  %v2943_v57 = vrot.slane %v6841_v52, %v8474_v44  ;;  %v8493_v54 = vld [vmem:[#allocation43_spill] sm:$0xff] }
 0x4fe   : > { %v3779_v19 = vmul.f32 %v3523_v53, %v8493_v54  ;;  %5043 = vpow2.f32 %v2315_v24 }
 0x4ff   : > { %v7213_v16 = vsel %vm1254_vm1, %v3421_v39, %v3417_v60  ;;  %v7215_v51 = vadd.f32 %v3872_v40, %v3871_v17  ;;  %v7217_v36 = vpop.permute.xlu0 %2691  ;;  %v2347_v60 = vmul.f32 1.442695, %v2092_v47  ;;  %v2948_v34 = vsel %vm1254_vm1, %v2947_v0, %v2943_v57  ;;  %v8494_v17 = vld [vmem:[#allocation53_spill] sm:$0xff] }
 0x500   : > { %v2641_v29 = vpop.permute.xlu1 %2640  ;;  %v3911_v10 = vadd.f32 %v3910_v55, %v3779_v19  ;;  %v3780_v39 = vmul.f32 %v3524_v11, %v8494_v17  ;;  %v3283_v40 = vrot.slane %v7158_v56, %v8477_v5  ;;  %v5040_v59 = vpop.eup %5039  ;;  %v3525_v47 = vld [vmem:[%s5647_s8 + $0xb0] sm:$0xff]  ;;  %v2953_v37 = vsel %vm1261_vm2, %v2952_v62, %v2948_v34  ;;  %v3543_v55 = vld [vmem:[%s5647_s8 + $0x140] sm:$0xff]  ;;  %v3526_v19 = vld [vmem:[%s5647_s8 + $0xb8] sm:$0xff] }
 0x501   : > { %v3130_v58 = vrot.slane %v2641_v29, %v6144_v23  ;;  %v3813_v49 = vmul.f32 %v3557_v4, %v2641_v29  ;;  %2847 = vperm.xlu1 %4789, %v5036_v41   ;;  %v3844_v4 = vmul.f32 %v3588_v42, %v7158_v56  ;;  %v3618_v29 = vld [vmem:[%s5647_s8 + $0x398] sm:$0xff]  ;;  %5045 = vpow2.f32 %v2347_v60  ;;  %v3544_v42 = vld [vmem:[%s5647_s8 + $0x148] sm:$0xff] }
 0x502   : > { %v2967_v0 = vrot.slane %v8494_v17, %v8477_v5  ;;  %v3800_v62 = vmul.f32 %v3544_v42, %v7196_v31 }
 0x503   : > { %v3131_v48 = vsel %vm1289_vm6, %v3130_v58, %v7081_v1  ;;  %v3955_v22 = vadd.f32 %v7097_v2, %v3813_v49  ;;  %v7236_v9 = vpop.permute.xlu0 %2781  ;;  %v3912_v58 = vadd.f32 %v3911_v10, %v3780_v39  ;;  %v3431_v49 = vrot.slane %v7176_v21, %v6115_v20  ;;  %v8499_v10 = vld [vmem:[#allocation131_spill] sm:$0xff]  ;;  %v3573_v39 = vld [vmem:[%s5647_s8 + $0x230] sm:$0xff] }
 0x504   : > { %v2731_v50 = vpop.permute.xlu1 %2730  ;;  %v7241_v52 = vsel %vm1296_vm7, %v3135_v63, %v3131_v48  ;;  %v2962_v63 = vrot.slane %v8493_v54, %v6126_v43  ;;  %v3066_v17 = vrot.slane %v7196_v31, %v8499_v10  ;;  %v3527_v31 = vld [vmem:[%s5647_s8 + $0xc0] sm:$0xff] }
 0x505   : > { %v3278_v1 = vrot.slane %v2731_v50, %v6126_v43  ;;  %v3843_v8 = vmul.f32 %v3587_v38, %v2731_v50  ;;  %2760 = vperm.xlu1 %4789, %v5038_v28   ;;  %v7245_v2 = vadd.f32 %v3955_v22, %v3814_v3  ;;  %v3874_v38 = vmul.f32 %v3618_v29, %v7176_v21  ;;  %v8495_v22 = vld [vmem:[#allocation45_spill] sm:$0xff]  ;;  %v8497_v21 = vld [vmem:[#allocation128_spill] sm:$0xff] }
 0x506   : > { %v5042_v48 = vpop.eup %5041  ;;  %v3781_v28 = vmul.f32 %v3525_v47, %v8495_v22 }
 0x507   : > { %v3279_v45 = vsel %vm1275_vm4, %v3278_v1, %v7107_v30  ;;  %v3995_v41 = vadd.f32 %v7120_v32, %v3843_v8  ;;  %v7259_v12 = vpop.permute.xlu0 %2559  ;;  %v2958_v32 = vsel %vm8481_vm3, %v2957_v14, %v2953_v37 }
 0x508   : > { %v2821_v24 = vpop.permute.xlu1 %2820  ;;  %v7263_v15 = vsel %vm8479_vm5, %v3283_v40, %v3279_v45  ;;  %vm8496_vm5 = vmmov %vm8481_vm3  ;;  %v2963_v54 = vsel %vm1275_vm4, %v2962_v63, %v2958_v32  ;;  %v5044_v1 = vpop.eup %5043  ;;  %vm8498_vm3 = vcmask 392512   ;;  %v3913_v14 = vadd.f32 %v3912_v58, %v3781_v28  ;;  %v8500_v40 = vld [vmem:[#allocation36_spill] sm:$0xff] }
 0x509   : > { %v3426_v56 = vrot.slane %v2821_v24, %v8475_v46  ;;  %v3873_v53 = vmul.f32 %v3617_v27, %v2821_v24  ;;  %2850 = vperm.xlu1 %4789, %v5040_v59   ;;  %v7268_v30 = vadd.f32 %v3995_v41, %v3844_v4  ;;  %v2968_v8 = vsel %vm8498_vm3, %v2967_v0, %v2963_v54  ;;  %v3574_v24 = vld [vmem:[%s5647_s8 + $0x238] sm:$0xff]  ;;  %v3528_v0 = vld [vmem:[%s5647_s8 + $0xc8] sm:$0xff] }
 0x50a   : > { %v3782_v27 = vmul.f32 %v3526_v19, %v8500_v40  ;;  %v2972_v59 = vrot.slane %v8495_v22, %v6144_v23  ;;  %v2977_v29 = vrot.slane %v8500_v40, %v8485_v13  ;;  %v3214_v58 = vrot.slane %v7217_v36, %v8485_v13  ;;  %v3604_v19 = vld [vmem:[%s5647_s8 + $0x328] sm:$0xff] }
 0x50b   : > { %v3427_v57 = vsel %vm1261_vm2, %v3426_v56, %v7213_v16  ;;  %v4035_v11 = vadd.f32 %v7215_v51, %v3873_v53  ;;  %v7282_v3 = vpop.permute.xlu0 %2649  ;;  %v5046_v53 = vpop.eup %5045  ;;  %v3830_v63 = vmul.f32 %v3574_v24, %v7217_v36  ;;  %v3784_v36 = vmul.f32 %v3528_v0, %v7133_v7 }
 0x50c   : > { %v2599_v50 = vpop.permute.xlu1 %2598  ;;  %v7288_v60 = vsel %vm8496_vm5, %v3431_v49, %v3427_v57  ;;  %v2973_v32 = vsel %vm1289_vm6, %v2972_v59, %v2968_v8  ;;  %v3603_v49 = vld [vmem:[%s5647_s8 + $0x320] sm:$0xff]  ;;  %v3529_v8 = vld [vmem:[%s5647_s8 + $0xd0] sm:$0xff]  ;;  %vm8502_vm5 = vmmov %vm8498_vm3  ;;  %vm8505_vm3 = vcmask 720512  }
 0x50d   : > { %v3061_v34 = vrot.slane %v2599_v50, %v8497_v21  ;;  %v3799_v16 = vmul.f32 %v3543_v55, %v2599_v50  ;;  %2808 = vperm.xlu1 %4789, %v5042_v48   ;;  %v7292_v51 = vadd.f32 %v4035_v11, %v3874_v38  ;;  %v3914_v55 = vadd.f32 %v3913_v14, %v3782_v27  ;;  %v8501_v48 = vld [vmem:[#allocation47_spill] sm:$0xff] }
 0x50e   : > { %v3783_v22 = vmul.f32 %v3527_v31, %v8501_v48  ;;  %v2978_v28 = vsel %vm1296_vm7, %v2977_v29, %v2973_v32  ;;  %v8503_v29 = vld [vmem:[#allocation132_spill] sm:$0xff] }
 0x50f   : > { %v3062_v4 = vsel %vm1303_vm8, %v3061_v34, %v7162_v35  ;;  %v3936_v45 = vadd.f32 %v7168_v6, %v3799_v16  ;;  %v7303_v41 = vpop.permute.xlu0 %2739  ;;  %v2987_v16 = vrot.slane %v7133_v7, %v8499_v10 }
 0x510   : > { %v2689_v47 = vpop.permute.xlu1 %2688  ;;  %v7311_v37 = vsel %vm1310_vm9, %v3066_v17, %v3062_v4  ;;  %v3915_v14 = vadd.f32 %v3914_v55, %v3783_v22  ;;  %v3860_v17 = vmul.f32 %v3604_v19, %v7236_v9  ;;  %v3530_v4 = vld [vmem:[%s5647_s8 + $0xd8] sm:$0xff] }
 0x511   : > { %v3209_v56 = vrot.slane %v2689_v47, %v6144_v23  ;;  %v3829_v35 = vmul.f32 %v3573_v39, %v2689_v47  ;;  %2811 = vperm.xlu1 %4789, %v5044_v1   ;;  %v7315_v6 = vadd.f32 %v3936_v45, %v3800_v62  ;;  %v3362_v1 = vrot.slane %v7236_v9, %v8477_v5 }
 0x512   : > { %v3916_v59 = vadd.f32 %v3915_v14, %v3784_v36  ;;  %v3590_v36 = vld [vmem:[%s5647_s8 + $0x2b8] sm:$0xff] }
 0x513   : > { %v3210_v38 = vsel %vm1289_vm6, %v3209_v56, %v7181_v61  ;;  %v3976_v57 = vadd.f32 %v7187_v18, %v3829_v35  ;;  %v7326_v11 = vpop.permute.xlu0 %2829  ;;  %v2982_v18 = vrot.slane %v8501_v48, %v8497_v21  ;;  %v3559_v56 = vld [vmem:[%s5647_s8 + $0x1c0] sm:$0xff]  ;;  %v3786_v35 = vmul.f32 %v3530_v4, %v7259_v12  ;;  %v3589_v48 = vld [vmem:[%s5647_s8 + $0x2b0] sm:$0xff]  ;;  %v3620_v4 = vld [vmem:[%s5647_s8 + $0x3a8] sm:$0xff] }
 0x514   : > { %v2779_v42 = vpop.permute.xlu1 %2778  ;;  %v7332_v50 = vsel %vm1296_vm7, %v3214_v58, %v3210_v38  ;;  %v3560_v58 = vld [vmem:[%s5647_s8 + $0x1c8] sm:$0xff] }
 0x515   : > { %v3357_v54 = vrot.slane %v2779_v42, %v6126_v43  ;;  %v3859_v61 = vmul.f32 %v3603_v49, %v2779_v42  ;;  %2859 = vperm.xlu1 %4789, %v5046_v53   ;;  %v7336_v34 = vadd.f32 %v3976_v57, %v3830_v63  ;;  %v2983_v62 = vsel %vm1303_vm8, %v2982_v18, %v2978_v28 }
 0x516   : > { %v3816_v22 = vmul.f32 %v3560_v58, %v7282_v3 }
 0x517   : > { %v3358_v39 = vsel %vm1275_vm4, %v3357_v54, %v7204_v26  ;;  %v4016_v40 = vadd.f32 %v7208_v25, %v3859_v61  ;;  %v7349_v27 = vpop.permute.xlu0 %2607  ;;  %v2988_v26 = vsel %vm1310_vm9, %v2987_v16, %v2983_v62  ;;  %v8504_v25 = vld [vmem:[#allocation133_spill] sm:$0xff] }
 0x518   : > { %v2557_v7 = vpop.permute.xlu1 %2556  ;;  %v7354_v45 = vsel %vm8502_vm5, %v3362_v1, %v3358_v39  ;;  %v2997_v31 = vrot.slane %v7259_v12, %v8504_v25  ;;  %v3145_v12 = vrot.slane %v7282_v3, %v8499_v10  ;;  %v3293_v3 = vrot.slane %v7303_v41, %v8485_v13  ;;  %v4096_v39 = vld [vmem:[#allocation11] sm:$0xff]  ;;  %v4098_v62 = vld [vmem:[#allocation11 + $0x10] sm:$0xff] }
 0x519   : > { %v2992_v24 = vrot.slane %v2557_v7, %v8503_v29  ;;  %v3785_v47 = vmul.f32 %v3529_v8, %v2557_v7  ;;  %v7357_v9 = vadd.f32 %v4016_v40, %v3860_v17  ;;  %v3619_v8 = vld [vmem:[%s5647_s8 + $0x3a0] sm:$0xff]  ;;  %v4097_v40 = vld [vmem:[#allocation11 + $0x8] sm:$0xff] }
 0x51b   : > { %v2993_v53 = vsel %vm8505_vm3, %v2992_v24, %v2988_v26  ;;  %v3917_v32 = vadd.f32 %v3916_v59, %v3785_v47  ;;  %v7365_v0 = vpop.permute.xlu0 %2697  ;;  %v4646_v24 = vpack.c.bf16 %v4097_v40, %v4096_v39  ;;  %v4099_v47 = vld [vmem:[#allocation11 + $0x18] sm:$0xff] }
 0x51c   : > { %v2647_v49 = vpop.permute.xlu1 %2646  ;;  %v7369_v55 = vsel %vm1324_vm11, %v2997_v31, %v2993_v53 }
 0x51d   : > { %v3140_v63 = vrot.slane %v2647_v49, %v8497_v21  ;;  %v3815_v38 = vmul.f32 %v3559_v56, %v2647_v49  ;;  %v7372_v57 = vadd.f32 %v3917_v32, %v3786_v35  ;;  %4647 = vmatpush3.bf16.msra.mxu1 %v4646_v24  ;;  %v4649_v56 = vpack.c.bf16 %v4099_v47, %v4098_v62  ;;  %v3606_v62 = vld [vmem:[%s5647_s8 + $0x338] sm:$0xff] }
 0x51e   : > { %v3876_v35 = vmul.f32 %v3620_v4, %v7326_v11  ;;  %v8506_v49 = vmov 0.0|0.0  }
 0x51f   : > { %v3141_v28 = vsel %vm1303_vm8, %v3140_v63, %v7241_v52  ;;  %v3957_v19 = vadd.f32 %v7245_v2, %v3815_v38  ;;  %v7381_v42 = vpop.permute.xlu0 %2787  ;;  %v3846_v52 = vmul.f32 %v3590_v36, %v7303_v41  ;;  %4648 = vmatprep.subr.bf16.mxu1 %v8506_v49  ;;  %v3546_v63 = vld [vmem:[%s5647_s8 + $0x158] sm:$0xff] }
 0x520   : > { %v2737_v54 = vpop.permute.xlu1 %2736  ;;  %v7385_v61 = vsel %vm1310_vm9, %v3145_v12, %v3141_v28 }
 0x521   : > { %v3288_v18 = vrot.slane %v2737_v54, %v6144_v23  ;;  %v3845_v16 = vmul.f32 %v3589_v48, %v2737_v54  ;;  %v7388_v1 = vadd.f32 %v3957_v19, %v3816_v22  ;;  %4650 = vmatpush3.bf16.msra.mxu1 %v4649_v56  ;;  %v3532_v56 = vld [vmem:[%s5647_s8 + $0xe8] sm:$0xff] }
 0x522   : > { %4651 = vmatprep.subr.bf16.mxu1 %v8506_v49 }
 0x523   : > { %v3289_v2 = vsel %vm1289_vm6, %v3288_v18, %v7263_v15  ;;  %v3997_v14 = vadd.f32 %v7268_v30, %v3845_v16  ;;  %v7397_v17 = vpop.permute.xlu0 %2565  ;;  %v3441_v15 = vrot.slane %v7326_v11, %v8477_v5  ;;  %v3545_v30 = vld [vmem:[%s5647_s8 + $0x150] sm:$0xff]  ;;  %v3802_v11 = vmul.f32 %v3546_v63, %v7349_v27  ;;  %v3576_v18 = vld [vmem:[%s5647_s8 + $0x248] sm:$0xff] }
 0x524   : > { %v2827_v7 = vpop.permute.xlu1 %2826  ;;  %v7401_v59 = vsel %vm1296_vm7, %v3293_v3, %v3289_v2  ;;  %v3605_v2 = vld [vmem:[%s5647_s8 + $0x330] sm:$0xff] }
 0x525   : > { %v3436_v41 = vrot.slane %v2827_v7, %v6126_v43  ;;  %v3875_v26 = vmul.f32 %v3619_v8, %v2827_v7  ;;  %v7404_v31 = vadd.f32 %v3997_v14, %v3846_v52 }
 0x527   : > { %v3437_v53 = vsel %vm1275_vm4, %v3436_v41, %v7288_v60  ;;  %v4037_v32 = vadd.f32 %v7292_v51, %v3875_v26  ;;  %v7413_v58 = vpop.permute.xlu0 %2655  ;;  %v3076_v60 = vrot.slane %v7349_v27, %v8504_v25  ;;  %v3575_v51 = vld [vmem:[%s5647_s8 + $0x240] sm:$0xff] }
 0x528   : > { %v2605_v38 = vpop.permute.xlu1 %2604  ;;  %v7418_v12 = vsel %vm8502_vm5, %v3441_v15, %v3437_v53  ;;  %v3531_v26 = vld [vmem:[%s5647_s8 + $0xe0] sm:$0xff]  ;;  %vm8509_vm5 = vmmov %vm8505_vm3 }
 0x529   : > { %v3071_v48 = vrot.slane %v2605_v38, %v8503_v29  ;;  %v3801_v22 = vmul.f32 %v3545_v30, %v2605_v38  ;;  %v7421_v28 = vadd.f32 %v4037_v32, %v3876_v35  ;;  %v8507_v32 = vld [vmem:[#allocation134_spill] sm:$0xff] }
 0x52b   : > { %v3072_v19 = vsel %vm8505_vm3, %v3071_v48, %v7311_v37  ;;  %v3938_v36 = vadd.f32 %v7315_v6, %v3801_v22  ;;  %v7430_v54 = vpop.permute.xlu0 %2745  ;;  %v3224_v37 = vrot.slane %v7365_v0, %v8499_v10  ;;  %v3832_v6 = vmul.f32 %v3576_v18, %v7365_v0 }
 0x52c   : > { %v2695_v16 = vpop.permute.xlu1 %2694  ;;  %v7435_v3 = vsel %vm1324_vm11, %v3076_v60, %v3072_v19  ;;  %v3372_v0 = vrot.slane %v7381_v42, %v8485_v13  ;;  %v3561_v60 = vld [vmem:[%s5647_s8 + $0x1d0] sm:$0xff]  ;;  %v3562_v19 = vld [vmem:[%s5647_s8 + $0x1d8] sm:$0xff] }
 0x52d   : > { %v3219_v8 = vrot.slane %v2695_v16, %v8497_v21  ;;  %v3831_v52 = vmul.f32 %v3575_v51, %v2695_v16  ;;  %v7438_v27 = vadd.f32 %v3938_v36, %v3802_v11 }
 0x52f   : > { %v3220_v14 = vsel %vm1303_vm8, %v3219_v8, %v7332_v50  ;;  %v3978_v39 = vadd.f32 %v7336_v34, %v3831_v52  ;;  %v7447_v40 = vpop.permute.xlu0 %2835  ;;  %v3862_v50 = vmul.f32 %v3606_v62, %v7381_v42  ;;  %v8508_v42 = vld [vmem:[#allocation135_spill] sm:$0xff] }
 0x530   : > { %v2785_v4 = vpop.permute.xlu1 %2784  ;;  %v7451_v7 = vsel %vm1310_vm9, %v3224_v37, %v3220_v14  ;;  %v3007_v22 = vrot.slane %v7397_v17, %v8508_v42  ;;  %v3591_v37 = vld [vmem:[%s5647_s8 + $0x2c0] sm:$0xff]  ;;  %v3592_v14 = vld [vmem:[%s5647_s8 + $0x2c8] sm:$0xff] }
 0x531   : > { %v3367_v24 = vrot.slane %v2785_v4, %v6144_v23  ;;  %v3861_v47 = vmul.f32 %v3605_v2, %v2785_v4  ;;  %v7454_v41 = vadd.f32 %v3978_v39, %v3832_v6 }
 0x533   : > { %v3368_v34 = vsel %vm1289_vm6, %v3367_v24, %v7354_v45  ;;  %v4018_v15 = vadd.f32 %v7357_v9, %v3861_v47  ;;  %v7463_v30 = vpop.permute.xlu0 %2613  ;;  %v3788_v45 = vmul.f32 %v3532_v56, %v7397_v17  ;;  %v3155_v17 = vrot.slane %v7413_v58, %v8504_v25 }
 0x534   : > { %v2563_v35 = vpop.permute.xlu1 %2562  ;;  %v7467_v53 = vsel %vm1296_vm7, %v3372_v0, %v3368_v34  ;;  %v3621_v0 = vld [vmem:[%s5647_s8 + $0x3b0] sm:$0xff]  ;;  %v3622_v34 = vld [vmem:[%s5647_s8 + $0x3b8] sm:$0xff] }
 0x535   : > { %v3002_v63 = vrot.slane %v2563_v35, %v8507_v32  ;;  %v3787_v38 = vmul.f32 %v3531_v26, %v2563_v35  ;;  %v7470_v48 = vadd.f32 %v4018_v15, %v3862_v50 }
 0x537   : > { %v3003_v9 = vsel %vm1331_vm12, %v3002_v63, %v7369_v55  ;;  %v3919_v51 = vadd.f32 %v7372_v57, %v3787_v38  ;;  %v7479_v11 = vpop.permute.xlu0 %2703  ;;  %v3818_v55 = vmul.f32 %v3562_v19, %v7413_v58  ;;  %v3303_v58 = vrot.slane %v7430_v54, %v8499_v10 }
 0x538   : > { %v2653_v36 = vpop.permute.xlu1 %2652  ;;  %v7483_v18 = vsel %vm1338_vm13, %v3007_v22, %v3003_v9  ;;  %v3878_v22 = vmul.f32 %v3622_v34, %v7447_v40  ;;  %v3533_v34 = vld [vmem:[%s5647_s8 + $0xf0] sm:$0xff] }
 0x539   : > { %v3150_v16 = vrot.slane %v2653_v36, %v8503_v29  ;;  %v3817_v8 = vmul.f32 %v3561_v60, %v2653_v36  ;;  %v7486_v52 = vadd.f32 %v3919_v51, %v3788_v45  ;;  %v3548_v45 = vld [vmem:[%s5647_s8 + $0x168] sm:$0xff] }
 0x53b   : > { %v3151_v57 = vsel %vm8509_vm5, %v3150_v16, %v7385_v61  ;;  %v3959_v2 = vadd.f32 %v7388_v1, %v3817_v8  ;;  %v7495_v6 = vpop.permute.xlu0 %2793  ;;  %v3848_v61 = vmul.f32 %v3592_v14, %v7430_v54  ;;  %v3547_v54 = vld [vmem:[%s5647_s8 + $0x160] sm:$0xff]  ;;  %v3577_v16 = vld [vmem:[%s5647_s8 + $0x250] sm:$0xff]  ;;  %v3804_v8 = vmul.f32 %v3548_v45, %v7463_v30 }
 0x53c   : > { %v2743_v39 = vpop.permute.xlu1 %2742  ;;  %v7499_v62 = vsel %vm1324_vm11, %v3155_v17, %v3151_v57  ;;  %v3563_v45 = vld [vmem:[%s5647_s8 + $0x1e0] sm:$0xff]  ;;  %vm8516_vm5 = vcmask 261312  }
 0x53d   : > { %v3298_v4 = vrot.slane %v2743_v39, %v8497_v21  ;;  %v3847_v24 = vmul.f32 %v3591_v37, %v2743_v39  ;;  %v7502_v47 = vadd.f32 %v3959_v2, %v3818_v55  ;;  %v3578_v37 = vld [vmem:[%s5647_s8 + $0x258] sm:$0xff]  ;;  %v3607_v39 = vld [vmem:[%s5647_s8 + $0x340] sm:$0xff] }
 0x53f   : > { %v3299_v1 = vsel %vm1303_vm8, %v3298_v4, %v7401_v59  ;;  %v3999_v26 = vadd.f32 %v7404_v31, %v3847_v24  ;;  %v7511_v50 = vpop.permute.xlu0 %2571  ;;  %v3834_v4 = vmul.f32 %v3578_v37, %v7479_v11  ;;  %v3608_v24 = vld [vmem:[%s5647_s8 + $0x348] sm:$0xff]  ;;  %v8512_v37 = vld [vmem:[#allocation27_spill] sm:$0xff] }
 0x540   : > { %v2833_v15 = vpop.permute.xlu1 %2832  ;;  %v7515_v56 = vsel %vm1310_vm9, %v3303_v58, %v3299_v1 }
 0x541   : > { %v3446_v35 = vrot.slane %v2833_v15, %v6144_v23  ;;  %v3877_v63 = vmul.f32 %v3621_v0, %v2833_v15  ;;  %v7518_v38 = vadd.f32 %v3999_v26, %v3848_v61  ;;  %v3864_v15 = vmul.f32 %v3608_v24, %v7495_v6 }
 0x543   : > { %v7524_v59 = vsel %vm1289_vm6, %v3446_v35, %v7418_v12  ;;  %v4039_v31 = vadd.f32 %v7421_v28, %v3877_v63  ;;  %v7527_v60 = vpop.permute.xlu0 %2661  ;;  %v3534_v35 = vld [vmem:[%s5647_s8 + $0xf8] sm:$0xff] }
 0x544   : > { %v2611_v9 = vpop.permute.xlu1 %2610 }
 0x545   : > { %v3081_v51 = vrot.slane %v2611_v9, %v8507_v32  ;;  %v3803_v19 = vmul.f32 %v3547_v54, %v2611_v9  ;;  %v7531_v36 = vadd.f32 %v4039_v31, %v3878_v22  ;;  %v3790_v9 = vmul.f32 %v3534_v35, %v7511_v50 }
 0x547   : > { %v7537_v12 = vsel %vm1331_vm12, %v3081_v51, %v7435_v3  ;;  %v3940_v28 = vadd.f32 %v7438_v27, %v3803_v19  ;;  %v7540_v17 = vpop.permute.xlu0 %2751  ;;  %v8510_v51 = vld [vmem:[#allocation125_spill] sm:$0xff]  ;;  %v8511_v19 = vld [vmem:[#allocation138_spill] sm:$0xff] }
 0x548   : > { %v2701_v55 = vpop.permute.xlu1 %2700 }
 0x549   : > { %v3229_v57 = vrot.slane %v2701_v55, %v8503_v29  ;;  %v3833_v2 = vmul.f32 %v3577_v16, %v2701_v55  ;;  %v7544_v14 = vadd.f32 %v3940_v28, %v3804_v8  ;;  %v2864_v16 = vrot.slane %v8511_v19, %v8474_v44  ;;  %v3564_v8 = vld [vmem:[%s5647_s8 + $0x1e8] sm:$0xff] }
 0x54a   : > { %v2873_v55 = vrot.slane %v8512_v37, %v8475_v46 }
 0x54b   : > { %v7550_v3 = vsel %vm8505_vm3, %v3229_v57, %v7451_v7  ;;  %v3980_v27 = vadd.f32 %v7454_v41, %v3833_v2  ;;  %v7554_v58 = vpop.permute.xlu0 %2841 }
 0x54c   : > { %v2791_v0 = vpop.permute.xlu1 %2790 }
 0x54d   : > { %v3377_v61 = vrot.slane %v2791_v0, %v8497_v21  ;;  %v3863_v1 = vmul.f32 %v3607_v39, %v2791_v0  ;;  %v7557_v26 = vadd.f32 %v3980_v27, %v3834_v4  ;;  %v8514_v39 = vld [vmem:[#allocation29_spill] sm:$0xff]  ;;  %v3820_v27 = vmul.f32 %v3564_v8, %v7527_v60  ;;  %v8515_v0 = vld [vmem:[#allocation28_spill] sm:$0xff] }
 0x54e   : > { %v2878_v4 = vrot.slane %v8514_v39, %v6115_v20  ;;  %v2883_v46 = vrot.slane %v8515_v0, %v6126_v43  ;;  %v3623_v43 = vld [vmem:[%s5647_s8 + $0x3c0] sm:$0xff] }
 0x54f   : > { %v7563_v7 = vsel %vm1303_vm8, %v3377_v61, %v7467_v53  ;;  %v4020_v41 = vadd.f32 %v7470_v48, %v3863_v1  ;;  %v7572_v31 = vpop.permute.xlu0 %2664  ;;  %v2868_v48 = vrot.slane %v8510_v51, %v6090_v33  ;;  %v3593_v33 = vld [vmem:[%s5647_s8 + $0x2d0] sm:$0xff]  ;;  %v3594_v61 = vld [vmem:[%s5647_s8 + $0x2d8] sm:$0xff] }
 0x550   : > { %v7567_v63 = vpop.permute.xlu1 %2568 }
 0x551   : > { %v3789_v54 = vmul.f32 %v3533_v34, %v7567_v63  ;;  %v7570_v22 = vadd.f32 %v4020_v41, %v3864_v15  ;;  %v2869_v24 = vsel %vm1254_vm1, %v2868_v48, %v2864_v16  ;;  %v3850_v16 = vmul.f32 %v3594_v61, %v7540_v17 }
 0x552   : > { %v2874_v20 = vsel %vm1261_vm2, %v2873_v55, %v2869_v24  ;;  %vm8521_vm1 = vcmask 392512   ;;  %vm8525_vm2 = vmmov %vm8505_vm3 }
 0x553   : > { %v3921_v53 = vadd.f32 %v7486_v52, %v3789_v54  ;;  %v3565_v52 = vld [vmem:[%s5647_s8 + $0x1f0] sm:$0xff]  ;;  %v7599_v1 = vpop.permute.xlu0 %2754 }
 0x554   : > { %v7582_v28 = vpop.permute.xlu1 %2658  ;;  %v3821_v15 = vmul.f32 %v3565_v52, %v7572_v31  ;;  %v8517_v54 = vld [vmem:[#allocation25_spill] sm:$0xff] }
 0x555   : > { %v7586_v57 = vadd.f32 %v3921_v53, %v3790_v9  ;;  %v3819_v2 = vmul.f32 %v3563_v45, %v7582_v28  ;;  %v2888_v45 = vrot.slane %v8517_v54, %v8477_v5  ;;  %v3595_v9 = vld [vmem:[%s5647_s8 + $0x2e0] sm:$0xff]  ;;  %v8518_v53 = vld [vmem:[#allocation30_spill] sm:$0xff] }
 0x556   : > { %v2893_v48 = vrot.slane %v8518_v53, %v6144_v23  ;;  %v3851_v23 = vmul.f32 %v3595_v9, %v7599_v1 }
 0x557   : > { %8513 = vst [vmem:[#allocation38_spill] sm:$0xff] %v7586_v57  ;;  %v3961_v44 = vadd.f32 %v7502_v47, %v3819_v2  ;;  %v2879_v47 = vsel %vm8516_vm5, %v2878_v4, %v2874_v20  ;;  %v8519_v4 = vld [vmem:[#allocation33_spill] sm:$0xff]  ;;  %v8522_v20 = vld [vmem:[#allocation35_spill] sm:$0xff]  ;;  %vm8535_vm5 = vcmask 1041409  }
 0x558   : > { %v7601_v34 = vpop.permute.xlu1 %2748  ;;  %v2884_v2 = vsel %vm1275_vm4, %v2883_v46, %v2879_v47  ;;  %v2898_v52 = vrot.slane %v8519_v4, %v8485_v13  ;;  %v3625_v46 = vld [vmem:[%s5647_s8 + $0x3d0] sm:$0xff]  ;;  %vm8529_vm4 = vcmask 982912  }
 0x559   : > { %v3962_v41 = vadd.f32 %v3961_v44, %v3820_v27  ;;  %v3849_v35 = vmul.f32 %v3593_v33, %v7601_v34  ;;  %v3624_v33 = vld [vmem:[%s5647_s8 + $0x3c8] sm:$0xff]  ;;  %vm8534_vm3 = vmmov %vm8529_vm4 }
 0x55a   : > { %v8520_v27 = vld [vmem:[#allocation32_spill] sm:$0xff]  ;;  %v3880_v57 = vmul.f32 %v3624_v33, %v7554_v58  ;;  %v3579_v33 = vld [vmem:[%s5647_s8 + $0x260] sm:$0xff] }
 0x55b   : > { %v4001_v8 = vadd.f32 %v7518_v38, %v3849_v35  ;;  %v7615_v55 = vadd.f32 %v3962_v41, %v3821_v15  ;;  %v2903_v44 = vrot.slane %v8520_v27, %v8497_v21  ;;  %v2889_v38 = vsel %vm8521_vm1, %v2888_v45, %v2884_v2  ;;  %v7631_v41 = vpop.permute.xlu0 %2844  ;;  %v3549_v35 = vld [vmem:[%s5647_s8 + $0x170] sm:$0xff] }
 0x55c   : > { %v7621_v5 = vpop.permute.xlu1 %2838  ;;  %v2908_v15 = vrot.slane %v8522_v20, %v8499_v10  ;;  %v2894_v47 = vsel %vm1289_vm6, %v2893_v48, %v2889_v38  ;;  %v8523_v48 = vld [vmem:[#allocation49_spill] sm:$0xff]  ;;  %vm8533_vm6 = vmmov %vm8529_vm4  ;;  %vm8536_vm1 = vcmask 1042434  }
 0x55d   : > { %v4002_v24 = vadd.f32 %v4001_v8, %v3850_v16  ;;  %v3879_v61 = vmul.f32 %v3623_v43, %v7621_v5  ;;  %v2899_v43 = vsel %vm1296_vm7, %v2898_v52, %v2894_v47  ;;  %v3881_v8 = vmul.f32 %v3625_v46, %v7631_v41  ;;  %v8527_v47 = vld [vmem:[#allocation34_spill] sm:$0xff] }
 0x55e   : > { %v2904_v45 = vsel %vm1303_vm8, %v2903_v44, %v2899_v43  ;;  %v2918_v38 = vrot.slane %v8523_v48, %v8504_v25  ;;  %v2928_v43 = vrot.slane %v8527_v47, %v8508_v42 }
 0x55f   : > { %v4041_v27 = vadd.f32 %v7531_v36, %v3879_v61  ;;  %v7637_v9 = vadd.f32 %v4002_v24, %v3851_v23  ;;  %v2909_v4 = vsel %vm1310_vm9, %v2908_v15, %v2904_v45  ;;  %v8524_v36 = vld [vmem:[#allocation139_spill] sm:$0xff]  ;;  %v7651_v61 = vpop.permute.xlu0 %2712  ;;  %v3609_v45 = vld [vmem:[%s5647_s8 + $0x350] sm:$0xff] }
 0x560   : > { %v2617_v16 = vpop.permute.xlu1 %2616  ;;  %v2913_v23 = vrot.slane %v8524_v36, %v8503_v29 }
 0x561   : > { %v4042_v2 = vadd.f32 %v4041_v27, %v3880_v57  ;;  %v3805_v20 = vmul.f32 %v3549_v35, %v2617_v16  ;;  %v8526_v57 = vld [vmem:[#allocation136_spill] sm:$0xff] }
 0x562   : > { %v2914_v46 = vsel %vm8525_vm2, %v2913_v23, %v2909_v4  ;;  %v3012_v27 = vrot.slane %v7567_v63, %v8526_v57  ;;  %v8530_v23 = vld [vmem:[#allocation137_spill] sm:$0xff]  ;;  %vm8537_vm2 = vmmov %vm8534_vm3 }
 0x563   : > { %v3942_v24 = vadd.f32 %v7544_v14, %v3805_v20  ;;  %v7649_v52 = vadd.f32 %v4042_v2, %v3881_v8  ;;  %v2919_v35 = vsel %vm1324_vm11, %v2918_v38, %v2914_v46  ;;  %v8528_v14 = vld [vmem:[#allocation31_spill] sm:$0xff]  ;;  %v7674_v48 = vpop.permute.xlu0 %2802 }
 0x564   : > { %v2707_v44 = vpop.permute.xlu1 %2706  ;;  %v2923_v20 = vrot.slane %v8528_v14, %v8507_v32  ;;  %v3013_v63 = vsel %vm8529_vm4, %v3012_v27, %v7483_v18  ;;  %v8531_v46 = vld [vmem:[#allocation51_spill] sm:$0xff]  ;;  %v3017_v14 = vrot.slane %v7511_v50, %v8530_v23  ;;  %v3086_v18 = vrot.slane %v7463_v30, %v8508_v42  ;;  %v3580_v30 = vld [vmem:[%s5647_s8 + $0x268] sm:$0xff]  ;;  %vm8538_vm4 = vmmov %vm8537_vm2 }
 0x565   : > { %v3835_v15 = vmul.f32 %v3579_v33, %v2707_v44  ;;  %v2938_v47 = vrot.slane %v8531_v46, %v8530_v23 }
 0x566   : > { %v2924_v4 = vsel %vm1331_vm12, %v2923_v20, %v2919_v35  ;;  %v8532_v35 = vld [vmem:[#allocation39_spill] sm:$0xff]  ;;  %v3087_v50 = vsel %vm1338_vm13, %v3086_v18, %v7537_v12  ;;  %v3581_v12 = vld [vmem:[%s5647_s8 + $0x270] sm:$0xff] }
 0x567   : > { %v3982_v8 = vadd.f32 %v7557_v26, %v3835_v15  ;;  %v2929_v38 = vsel %vm1338_vm13, %v2928_v43, %v2924_v4  ;;  %v3091_v26 = vrot.slane %v2617_v16, %v8526_v57  ;;  %v3550_v15 = vld [vmem:[%s5647_s8 + $0x178] sm:$0xff]  ;;  %v2933_v20 = vrot.slane %v8532_v35, %v8526_v57 }
 0x568   : > { %v7663_v2 = vpop.permute.xlu1 %2796  ;;  %v3018_v43 = vsel %vm1352_vm15, %v3017_v14, %v3013_v63 }
 0x569   : > { %v3865_v33 = vmul.f32 %v3609_v45, %v7663_v2  ;;  %v2934_v4 = vsel %vm8533_vm6, %v2933_v20, %v2929_v38  ;;  %v3092_v36 = vsel %vm8534_vm3, %v3091_v26, %v3087_v50  ;;  %v2716_v38 = vpop.permute.xlu0 %2715  ;;  %v3234_v26 = vrot.slane %v7479_v11, %v8504_v25 }
 0x56a   : > { %v2939_v35 = vsel %vm1352_vm15, %v2938_v47, %v2934_v4  ;;  %v3239_v47 = vrot.slane %v2707_v44, %v8507_v32  ;;  %v3611_v44 = vld [vmem:[%s5647_s8 + $0x360] sm:$0xff]  ;;  %vm8539_vm6 = vcmask 1043459   ;;  %vm8540_vm3 = vcmask 720512  }
 0x56b   : > { %v4022_v27 = vadd.f32 %v7570_v22, %v3865_v33  ;;  %v3160_v22 = vrot.slane %v7582_v28, %v8507_v32  ;;  %v3493_v14 = vsel %vm8535_vm5, %v3018_v43, %v2939_v35  ;;  %v3582_v28 = vld [vmem:[%s5647_s8 + $0x278] sm:$0xff]  ;;  %v3235_v4 = vsel %vm1324_vm11, %v3234_v26, %v7550_v3  ;;  %vm8544_vm5 = vmmov %vm8537_vm2 }
 0x56c   : > { %v2620_v45 = vpop.permute.xlu1 %2619  ;;  %v3610_v43 = vld [vmem:[%s5647_s8 + $0x358] sm:$0xff]  ;;  %v3838_v50 = vmul.f32 %v3582_v28, %v2716_v38  ;;  %v3867_v3 = vmul.f32 %v3611_v44, %v7674_v48 }
 0x56d   : > { %v3096_v16 = vrot.slane %v2620_v45, %v8530_v23  ;;  %v3806_v46 = vmul.f32 %v3550_v15, %v2620_v45  ;;  %v3165_v45 = vrot.slane %v7527_v60, %v8508_v42 }
 0x56f   : > { %v3097_v63 = vsel %vm1352_vm15, %v3096_v16, %v3092_v36  ;;  %v7695_v33 = vadd.f32 %v3942_v24, %v3806_v46  ;;  %v3161_v36 = vsel %vm1331_vm12, %v3160_v22, %v7499_v62  ;;  %v3837_v24 = vmul.f32 %v3581_v12, %v7651_v61  ;;  %v3612_v22 = vld [vmem:[%s5647_s8 + $0x368] sm:$0xff] }
 0x570   : > { %v3494_v15 = vsel %vm8536_vm1, %v3097_v63, %v3493_v14  ;;  %v2710_v20 = vpop.permute.xlu1 %2709  ;;  %v3240_v16 = vsel %vm1331_vm12, %v3239_v47, %v3235_v4  ;;  %v3166_v62 = vsel %vm1338_vm13, %v3165_v45, %v3161_v36  ;;  %v3249_v63 = vrot.slane %v7651_v61, %v8526_v57  ;;  %v3566_v47 = vld [vmem:[%s5647_s8 + $0x1f8] sm:$0xff]  ;;  %v3596_v45 = vld [vmem:[%s5647_s8 + $0x2e8] sm:$0xff] }
 0x571   : > { %v3836_v18 = vmul.f32 %v3580_v30, %v2710_v20  ;;  %v3244_v35 = vrot.slane %v2710_v20, %v8508_v42  ;;  %v3254_v61 = vrot.slane %v2716_v38, %v8530_v23 }
 0x573   : > { %v3983_v46 = vadd.f32 %v3982_v8, %v3836_v18  ;;  %v7719_v8 = vpop.permute.xlu0 %2805  ;;  %v3245_v60 = vsel %vm1338_vm13, %v3244_v35, %v3240_v16  ;;  %v3170_v18 = vrot.slane %v7572_v31, %v8526_v57 }
 0x574   : > { %v7713_v11 = vpop.permute.xlu1 %2799  ;;  %v3868_v28 = vmul.f32 %v3612_v22, %v7719_v8 }
 0x575   : > { %v3984_v30 = vadd.f32 %v3983_v46, %v3837_v24  ;;  %v3866_v14 = vmul.f32 %v3610_v43, %v7713_v11  ;;  %v3250_v43 = vsel %vm8537_vm2, %v3249_v63, %v3245_v60  ;;  %v3171_v24 = vsel %vm8538_vm4, %v3170_v18, %v3166_v62  ;;  %v3626_v62 = vld [vmem:[%s5647_s8 + $0x3d8] sm:$0xff]  ;;  %v3597_v18 = vld [vmem:[%s5647_s8 + $0x2f0] sm:$0xff] }
 0x576   : > { %v3255_v38 = vsel %vm1352_vm15, %v3254_v61, %v3250_v43  ;;  %vm8562_vm4 = vmmov 0  }
 0x577   : > { %v7725_v12 = vadd.f32 %v3984_v30, %v3838_v50  ;;  %v4023_v20 = vadd.f32 %v4022_v27, %v3866_v14  ;;  %v3308_v27 = vrot.slane %v7601_v34, %v8503_v29 }
 0x578   : > { %v2668_v26 = vpop.permute.xlu1 %2667 }
 0x579   : > { %v4024_v36 = vadd.f32 %v4023_v20, %v3867_v3  ;;  %v3175_v35 = vrot.slane %v2668_v26, %v8530_v23  ;;  %v3822_v46 = vmul.f32 %v3566_v47, %v2668_v26  ;;  %v3309_v34 = vsel %vm8540_vm3, %v3308_v27, %v7515_v56  ;;  %v2764_v20 = vpop.permute.xlu0 %2763  ;;  %v3628_v27 = vld [vmem:[%s5647_s8 + $0x3e8] sm:$0xff] }
 0x57a   : > { %v3456_v3 = vrot.slane %v7621_v5, %v8497_v21  ;;  %v3451_v56 = vrot.slane %v7447_v40, %v8485_v13  ;;  %v3382_v26 = vrot.slane %v7495_v6, %v8499_v10  ;;  %v3387_v40 = vrot.slane %v7663_v2, %v8503_v29 }
 0x57b   : > { %v3176_v31 = vsel %vm1352_vm15, %v3175_v35, %v3171_v24  ;;  %v7739_v44 = vadd.f32 %v4024_v36, %v3868_v28  ;;  %v7743_v50 = vadd.f32 %v7615_v55, %v3822_v46  ;;  %v3598_v28 = vld [vmem:[%s5647_s8 + $0x2f8] sm:$0xff] }
 0x57c   : > { %v3495_v4 = vsel %vm8539_vm6, %v3176_v31, %v3494_v15  ;;  %v2758_v16 = vpop.permute.xlu1 %2757  ;;  %v3313_v15 = vrot.slane %v7540_v17, %v8504_v25  ;;  %v3452_v21 = vsel %vm1296_vm7, %v3451_v56, %v7524_v59  ;;  %v3854_v61 = vmul.f32 %v3598_v28, %v2764_v20  ;;  %vm8541_vm7 = vmmov %vm8537_vm2 }
 0x57d   : > { %v3852_v30 = vmul.f32 %v3596_v45, %v2758_v16  ;;  %v3496_v14 = vsel %vm1913_vm14, %v3255_v38, %v3495_v4  ;;  %v3323_v47 = vrot.slane %v2758_v16, %v8508_v42  ;;  %v3457_v13 = vsel %vm1303_vm8, %v3456_v3, %v3452_v21  ;;  %v2854_v31 = vpop.permute.xlu0 %2853  ;;  %vm8542_vm8 = vmmov %vm8540_vm3 }
 0x57e   : > { %v3314_v55 = vsel %vm1324_vm11, %v3313_v15, %v3309_v34  ;;  %v3392_v59 = vrot.slane %v7713_v11, %v8504_v25  ;;  %v3461_v45 = vrot.slane %v7554_v58, %v8499_v10  ;;  %v3383_v16 = vsel %vm1310_vm9, %v3382_v26, %v7563_v7 }
 0x57f   : > { %v4004_v22 = vadd.f32 %v7637_v9, %v3852_v30  ;;  %v3318_v9 = vrot.slane %v7599_v1, %v8507_v32  ;;  %v3333_v1 = vrot.slane %v2764_v20, %v8530_v23  ;;  %v3388_v34 = vsel %vm8542_vm8, %v3387_v40, %v3383_v16  ;;  %v4103_v16 = vld [vmem:[#allocation11 + $0x38] sm:$0xff] }
 0x580   : > { %v2848_v60 = vpop.permute.xlu1 %2847  ;;  %v3462_v11 = vsel %vm1310_vm9, %v3461_v45, %v3457_v13  ;;  %v3884_v10 = vmul.f32 %v3628_v27, %v2854_v31  ;;  %v3393_v58 = vsel %vm1324_vm11, %v3392_v59, %v3388_v34  ;;  %v3466_v7 = vrot.slane %v7631_v41, %v8503_v29  ;;  %vm8543_vm9 = vmmov %vm8540_vm3  ;;  %v4106_v34 = vld [vmem:[#allocation11 + $0x50] sm:$0xff] }
 0x581   : > { %v3882_v63 = vmul.f32 %v3626_v62, %v2848_v60  ;;  %v3319_v5 = vsel %vm1331_vm12, %v3318_v9, %v3314_v55  ;;  %v3471_v15 = vrot.slane %v2848_v60, %v8504_v25  ;;  %v3397_v55 = vrot.slane %v7674_v48, %v8507_v32  ;;  %v3614_v25 = vld [vmem:[%s5647_s8 + $0x378] sm:$0xff]  ;;  %v3629_v48 = vld [vmem:[%s5647_s8 + $0x3f0] sm:$0xff] }
 0x582   : > { %v3324_v6 = vsel %vm1338_vm13, %v3323_v47, %v3319_v5  ;;  %v3467_v56 = vsel %vm8543_vm9, %v3466_v7, %v3462_v11  ;;  %v3402_v60 = vrot.slane %v7719_v8, %v8508_v42  ;;  %v3481_v28 = vrot.slane %v2854_v31, %v8508_v42  ;;  %v4100_v31 = vld [vmem:[#allocation11 + $0x20] sm:$0xff]  ;;  %v4110_v7 = vld [vmem:[#allocation11 + $0x70] sm:$0xff] }
 0x583   : > { %v4044_v17 = vadd.f32 %v7649_v52, %v3882_v63  ;;  %v3627_v52 = vld [vmem:[%s5647_s8 + $0x3e0] sm:$0xff]  ;;  %v3472_v29 = vsel %vm1324_vm11, %v3471_v15, %v3467_v56  ;;  %vm8545_vm11 = vmmov %vm8537_vm2  ;;  %v4109_v15 = vld [vmem:[#allocation11 + $0x68] sm:$0xff] }
 0x584   : > { %v2761_v43 = vpop.permute.xlu1 %2760 }
 0x585   : > { %v3328_v36 = vrot.slane %v2761_v43, %v8526_v57  ;;  %v3853_v35 = vmul.f32 %v3597_v18, %v2761_v43  ;;  %v3398_v18 = vsel %vm1331_vm12, %v3397_v55, %v3393_v58  ;;  %v4108_v58 = vld [vmem:[#allocation11 + $0x60] sm:$0xff]  ;;  %v4111_v55 = vld [vmem:[#allocation11 + $0x78] sm:$0xff] }
 0x586   : > { %v3403_v43 = vsel %vm1338_vm13, %v3402_v60, %v3398_v18  ;;  %v3507_v60 = vld [vmem:[%s5647_s8 + $0x20] sm:$0xff] }
 0x587   : > { %v3329_v24 = vsel %vm8541_vm7, %v3328_v36, %v3324_v6  ;;  %v4005_v46 = vadd.f32 %v4004_v22, %v3853_v35  ;;  %v3613_v22 = vld [vmem:[%s5647_s8 + $0x370] sm:$0xff]  ;;  %v3630_v35 = vld [vmem:[%s5647_s8 + $0x3f8] sm:$0xff] }
 0x588   : > { %v2851_v4 = vpop.permute.xlu1 %2850  ;;  %v3334_v2 = vsel %vm1352_vm15, %v3333_v1, %v3329_v24 }
 0x589   : > { %v7785_v38 = vadd.f32 %v4005_v46, %v3854_v61  ;;  %v3883_v30 = vmul.f32 %v3627_v52, %v2851_v4  ;;  %v3497_v62 = vsel %vm1915_vm0, %v3334_v2, %v3496_v14  ;;  %v3476_v14 = vrot.slane %v2851_v4, %v8507_v32  ;;  %v2857_v32 = vpop.permute.xlu0 %2856  ;;  %v4101_v4 = vld [vmem:[#allocation11 + $0x28] sm:$0xff]  ;;  %v4102_v2 = vld [vmem:[#allocation11 + $0x30] sm:$0xff] }
 0x58a   : > { %v3885_v8 = vmul.f32 %v3629_v48, %v2857_v32  ;;  %v3486_v1 = vrot.slane %v2857_v32, %v8526_v57  ;;  %v3508_v48 = vld [vmem:[%s5647_s8 + $0x28] sm:$0xff] }
 0x58b   : > { %v4045_v63 = vadd.f32 %v4044_v17, %v3883_v30  ;;  %v3477_v17 = vsel %vm1331_vm12, %v3476_v14, %v3472_v29  ;;  %vm8546_vm12 = vcmask 1047559   ;;  %v4655_v30 = vpack.c.bf16 %v4103_v16, %v4102_v2  ;;  %v3516_v2 = vld [vmem:[%s5647_s8 + $0x68] sm:$0xff] }
 0x58c   : > { %v2809_v3 = vpop.permute.xlu1 %2808  ;;  %v3482_v40 = vsel %vm1338_vm13, %v3481_v28, %v3477_v17  ;;  %v4667_v14 = vpack.c.bf16 %v4111_v55, %v4110_v7  ;;  %v3763_v17 = vmul.f32 %v3507_v60, %v8515_v0  ;;  %vm8557_vm13 = vcmask 1041409   ;;  %vm8560_vm2 = vmmov %vm8546_vm12 }
 0x58d   : > { %v4046_v20 = vadd.f32 %v4045_v63, %v3884_v10  ;;  %v3869_v47 = vmul.f32 %v3613_v22, %v2809_v3  ;;  %v3407_v9 = vrot.slane %v2809_v3, %v8526_v57  ;;  %v3487_v24 = vsel %vm8545_vm11, %v3486_v1, %v3482_v40  ;;  %v4107_v22 = vld [vmem:[#allocation11 + $0x58] sm:$0xff]  ;;  %v3504_v3 = vld [vmem:[%s5647_s8 + $0x8] sm:$0xff]  ;;  %v8549_v1 = vld [vmem:[#allocation35_spill] sm:$0xff] }
 0x58e   : > { %v4652_v57 = vpack.c.bf16 %v4101_v4, %v4100_v31  ;;  %v4661_v10 = vpack.c.bf16 %v4107_v22, %v4106_v34  ;;  %v4664_v63 = vpack.c.bf16 %v4109_v15, %v4108_v58  ;;  %v3760_v18 = vmul.f32 %v3504_v3, %v8510_v51  ;;  %v3515_v31 = vld [vmem:[%s5647_s8 + $0x60] sm:$0xff]  ;;  %v3518_v22 = vld [vmem:[%s5647_s8 + $0x78] sm:$0xff] }
 0x58f   : > { %v4026_v41 = vadd.f32 %v7739_v44, %v3869_v47  ;;  %v3408_v36 = vsel %vm8544_vm5, %v3407_v9, %v3403_v43  ;;  %v4047_v52 = vadd.f32 %v4046_v20, %v3885_v8  ;;  %v3503_v20 = vld [vmem:[%s5647_s8] sm:$0xff]  ;;  %v3505_v47 = vld [vmem:[%s5647_s8 + $0x10] sm:$0xff]  ;;  %v3506_v9 = vld [vmem:[%s5647_s8 + $0x18] sm:$0xff]  ;;  %v3764_v51 = vmul.f32 %v3508_v48, %v8517_v54 }
 0x590   : > { %v2812_v26 = vpop.permute.xlu1 %2811  ;;  %4653 = vmatpush3.bf16.msra.mxu1 %v4652_v57  ;;  %v3759_v56 = vmul.f32 %v3503_v20, %v8511_v19  ;;  %v3510_v43 = vld [vmem:[%s5647_s8 + $0x38] sm:$0xff]  ;;  %v8552_v57 = vld [vmem:[#allocation31_spill] sm:$0xff] }
 0x591   : > { %v3412_v21 = vrot.slane %v2812_v26, %v8530_v23  ;;  %v3870_v5 = vmul.f32 %v3614_v25, %v2812_v26  ;;  %4654 = vmatprep.subr.bf16.mxu1 %v8506_v49  ;;  %v3761_v25 = vmul.f32 %v3505_v47, %v8512_v37  ;;  %v3509_v26 = vld [vmem:[%s5647_s8 + $0x30] sm:$0xff]  ;;  %v3511_v37 = vld [vmem:[%s5647_s8 + $0x40] sm:$0xff]  ;;  %v3771_v16 = vmul.f32 %v3515_v31, %v8552_v57  ;;  %v8556_v3 = vld [vmem:[#allocation38_spill] sm:$0xff] }
 0x592   : > { %v3887_v29 = vadd.f32 %v3760_v18, %v3759_v56  ;;  %v3923_v20 = vrot.slane %v8556_v3, 4  ;;  %v3944_v47 = vrot.slane %v7695_v33, 4  ;;  %v3965_v18 = vrot.slane %v7743_v50, 4 }
 0x593   : > { %v7813_v13 = vadd.f32 %v4026_v41, %v3870_v5  ;;  %v3413_v44 = vsel %vm1352_vm15, %v3412_v21, %v3408_v36  ;;  %v3762_v41 = vmul.f32 %v3506_v9, %v8514_v39  ;;  %v3765_v21 = vmul.f32 %v3509_v26, %v8518_v53  ;;  %v8547_v36 = vld [vmem:[#allocation33_spill] sm:$0xff]  ;;  %v8550_v53 = vld [vmem:[#allocation139_spill] sm:$0xff] }
 0x594   : > { %v2860_v6 = vpop.permute.xlu1 %2859  ;;  %v3498_v42 = vsel %vm1917_vm10, %v3413_v44, %v3497_v62  ;;  %v4105_v62 = vld [vmem:[#allocation11 + $0x48] sm:$0xff]  ;;  %4656 = vmatpush3.bf16.msra.mxu1 %v4655_v30  ;;  %v3888_v32 = vadd.f32 %v3887_v29, %v3761_v25  ;;  %v3766_v39 = vmul.f32 %v3510_v43, %v8547_v36  ;;  %v3986_v56 = vrot.slane %v7725_v12, 4 }
 0x595   : > { %v3491_v61 = vrot.slane %v2860_v6, %v8530_v23  ;;  %v3886_v59 = vmul.f32 %v3630_v35, %v2860_v6  ;;  %v4104_v23 = vld [vmem:[#allocation11 + $0x40] sm:$0xff]  ;;  %4657 = vmatprep.subr.bf16.mxu1 %v8506_v49  ;;  %v3512_v35 = vld [vmem:[%s5647_s8 + $0x48] sm:$0xff]  ;;  %v4007_v9 = vrot.slane %v7785_v38, 4  ;;  %v3924_v60 = vadd.f32 %v3923_v20, %v8556_v3 }
 0x596   : > { %v4658_v11 = vpack.c.bf16 %v4105_v62, %v4104_v23  ;;  %v3889_v28 = vadd.f32 %v3888_v32, %v3762_v41  ;;  %v8548_v44 = vld [vmem:[#allocation32_spill] sm:$0xff]  ;;  %v3768_v6 = vmul.f32 %v3512_v35, %v8549_v1  ;;  %v8553_v23 = vld [vmem:[#allocation34_spill] sm:$0xff]  ;;  %v3945_v29 = vadd.f32 %v3944_v47, %v7695_v33 }
 0x597   : > { %v7821_v46 = vadd.f32 %v4047_v52, %v3886_v59  ;;  %v3492_v45 = vsel %vm1352_vm15, %v3491_v61, %v3487_v24  ;;  %v3767_v0 = vmul.f32 %v3511_v37, %v8548_v44  ;;  %v3514_v61 = vld [vmem:[%s5647_s8 + $0x58] sm:$0xff]  ;;  %v3772_v62 = vmul.f32 %v3516_v2, %v8553_v23  ;;  %vm8558_vm15 = vmmov %vm8536_vm1 }
 0x598   : > { %v3499_v27 = vsel %vm8546_vm12, %v3492_v45, %v3498_v42  ;;  %4659 = vmatpush3.bf16.msra.mxu1 %v4658_v11  ;;  %v3890_v19 = vadd.f32 %v3889_v28, %v3763_v17  ;;  %v3513_v42 = vld [vmem:[%s5647_s8 + $0x50] sm:$0xff]  ;;  %v3966_v41 = vadd.f32 %v3965_v18, %v7743_v50  ;;  %v4028_v48 = vrot.slane %v7813_v13, 4  ;;  %vm8559_vm1 = vmmov %vm8539_vm6 }
 0x599   : > { %3501 = vadd.xlane.f32.xlu0 %v3499_v27  ;;  %4660 = vmatprep.subr.bf16.mxu1 %v8506_v49  ;;  %v3769_v59 = vmul.f32 %v3513_v42, %v8550_v53  ;;  %v8551_v45 = vld [vmem:[#allocation49_spill] sm:$0xff]  ;;  %v4049_v32 = vrot.slane %v7821_v46, 4  ;;  %v3987_v17 = vadd.f32 %v3986_v56, %v7725_v12  ;;  %v4008_v26 = vadd.f32 %v4007_v9, %v7785_v38 }
 0x59a   : > { %v3891_v5 = vadd.f32 %v3890_v19, %v3764_v51  ;;  %v3770_v27 = vmul.f32 %v3514_v61, %v8551_v45  ;;  %v3517_v11 = vld [vmem:[%s5647_s8 + $0x70] sm:$0xff]  ;;  %v3925_v51 = vrot.slane %v3924_v60, 2  ;;  %v3946_v43 = vrot.slane %v3945_v29, 2 }
 0x59b   : > { %v3967_v19 = vrot.slane %v3966_v41, 2  ;;  %v4050_v37 = vadd.f32 %v4049_v32, %v7821_v46  ;;  %v3988_v33 = vrot.slane %v3987_v17, 2  ;;  %v4009_v36 = vrot.slane %v4008_v26, 2 }
 0x59c   : > { %4662 = vmatpush3.bf16.msra.mxu1 %v4661_v10  ;;  %v3892_v8 = vadd.f32 %v3891_v5, %v3765_v21  ;;  %v8554_v10 = vld [vmem:[#allocation39_spill] sm:$0xff]  ;;  %v4029_v21 = vadd.f32 %v4028_v48, %v7813_v13  ;;  %v3947_v35 = vadd.f32 %v3946_v43, %v3945_v29 }
 0x59d   : > { %4663 = vmatprep.subr.bf16.mxu1 %v8506_v49  ;;  %v3773_v58 = vmul.f32 %v3517_v11, %v8554_v10  ;;  %v4051_v12 = vrot.slane %v4050_v37, 2  ;;  %v4010_v38 = vadd.f32 %v4009_v36, %v4008_v26  ;;  %v4080_v29 = vld [vmem:[#allocation10] sm:$0xff]  ;;  %v8561_v36 = vmov 0.0  }
 0x59e   : > { %v3893_v40 = vadd.f32 %v3892_v8, %v3766_v39  ;;  %v3926_v39 = vadd.f32 %v3925_v51, %v3924_v60  ;;  %v3968_v8 = vadd.f32 %v3967_v19, %v3966_v41  ;;  %v4030_v44 = vrot.slane %v4029_v21, 2  ;;  %v4081_v41 = vld [vmem:[#allocation10 + $0x8] sm:$0xff] }
 0x59f   : > { %v4052_v13 = vadd.f32 %v4051_v12, %v4050_v37  ;;  %v4011_v46 = vrot.slane %v4010_v38, 1  ;;  %v4670_v43 = vpack.c.bf16 %v4081_v41, %v4080_v29  ;;  %v4083_v37 = vld [vmem:[#allocation10 + $0x18] sm:$0xff] }
 0x5a0   : > { %4665 = vmatpush3.bf16.msra.mxu1 %v4664_v63  ;;  %v3894_v54 = vadd.f32 %v3893_v40, %v3767_v0  ;;  %v8555_v63 = vld [vmem:[#allocation51_spill] sm:$0xff]  ;;  %v3989_v0 = vadd.f32 %v3988_v33, %v3987_v17  ;;  %v3927_v1 = vrot.slane %v3926_v39, 1  ;;  %v4031_v42 = vadd.f32 %v4030_v44, %v4029_v21  ;;  %v4082_v21 = vld [vmem:[#allocation10 + $0x10] sm:$0xff]  ;;  %v4087_v44 = vld [vmem:[#allocation10 + $0x38] sm:$0xff] }
 0x5a1   : > { %4666 = vmatprep.subr.bf16.mxu1 %v8506_v49  ;;  %v3774_v7 = vmul.f32 %v3518_v22, %v8555_v63  ;;  %v4053_v31 = vrot.slane %v4052_v13, 1  ;;  %v4012_v23 = vadd.f32 %v4011_v46, %v4010_v38  ;;  %v4673_v33 = vpack.c.bf16 %v4083_v37, %v4082_v21  ;;  %v4089_v38 = vld [vmem:[#allocation10 + $0x48] sm:$0xff]  ;;  %v4094_v46 = vld [vmem:[#allocation10 + $0x70] sm:$0xff] }
 0x5a2   : > { %v3895_v52 = vadd.f32 %v3894_v54, %v3768_v6  ;;  %v3948_v6 = vrot.slane %v3947_v35, 1  ;;  %v3969_v54 = vrot.slane %v3968_v8, 1  ;;  %v3928_v53 = vadd.f32 %v3927_v1, %v3926_v39  ;;  %v4085_v39 = vld [vmem:[#allocation10 + $0x28] sm:$0xff]  ;;  %v4090_v1 = vld [vmem:[#allocation10 + $0x50] sm:$0xff] }
 0x5a3   : > { %v4054_v63 = vadd.f32 %v4053_v31, %v4052_v13  ;;  %v4093_v13 = vld [vmem:[#allocation10 + $0x68] sm:$0xff] }
 0x5a4   : > { %4668 = vmatpush3.bf16.msra.mxu1 %v4667_v14  ;;  %v3896_v24 = vadd.f32 %v3895_v52, %v3769_v59  ;;  %v3990_v52 = vrot.slane %v3989_v0, 1  ;;  %v3970_v45 = vadd.f32 %v3969_v54, %v3968_v8  ;;  %v4086_v8 = vld [vmem:[#allocation10 + $0x30] sm:$0xff] }
 0x5a5   : > { %4669 = vmatprep.subr.bf16.mxu1 %v8506_v49  ;;  %v4679_v12 = vpack.c.bf16 %v4087_v44, %v4086_v8 }
 0x5a6   : > { %v3897_v4 = vadd.f32 %v3896_v24, %v3770_v27  ;;  %v3949_v24 = vadd.f32 %v3948_v6, %v3947_v35  ;;  %v4032_v27 = vrot.slane %v4031_v42, 1  ;;  %v4091_v6 = vld [vmem:[#allocation10 + $0x58] sm:$0xff] }
 0x5a7   : > { %v4685_v54 = vpack.c.bf16 %v4091_v6, %v4090_v1 }
 0x5a8   : > { %v3898_v30 = vadd.f32 %v3897_v4, %v3771_v16 }
 0x5aa   : > { %v3899_v34 = vadd.f32 %v3898_v30, %v3772_v62  ;;  %v3991_v30 = vadd.f32 %v3990_v52, %v3989_v0  ;;  %v4088_v0 = vld [vmem:[#allocation10 + $0x40] sm:$0xff] }
 0x5ac   : > { %v3900_v15 = vadd.f32 %v3899_v34, %v3773_v58 }
 0x5ae   : > { %v3901_v55 = vadd.f32 %v3900_v15, %v3774_v7  ;;  %v4033_v15 = vadd.f32 %v4032_v27, %v4031_v42  ;;  %v4092_v42 = vld [vmem:[#allocation10 + $0x60] sm:$0xff] }
 0x5af   : > { %v4688_v52 = vpack.c.bf16 %v4093_v13, %v4092_v42 }
 0x5b0   : > { %v3902_v14 = vrot.slane %v3901_v55, 4 }
 0x5b2   : > { %v3903_v25 = vadd.f32 %v3902_v14, %v3901_v55 }
 0x5b4   : > { %v3904_v28 = vrot.slane %v3903_v25, 2 }
 0x5b6   : > { %v3905_v50 = vadd.f32 %v3904_v28, %v3903_v25 }
 0x5b8   : > { %v3906_v40 = vrot.slane %v3905_v50, 1 }
 0x5ba   : > { %v3907_v61 = vadd.f32 %v3906_v40, %v3905_v50  ;;  %v4084_v50 = vld [vmem:[#allocation10 + $0x20] sm:$0xff]  ;;  %v4682_v40 = vpack.c.bf16 %v4089_v38, %v4088_v0 }
 0x5bb   : > { %v4676_v35 = vpack.c.bf16 %v4085_v39, %v4084_v50 }
 0x626   : > { %v3502_v5 = vpop.xlane.xlu0 %3501 }
 0x627   : > { %5047 = vrcp.f32 %v3502_v5 }
 0x631   : > { %v5048_v59 = vpop.eup %5047 }
 0x632   : > { %v4057_v4 = vrot.slane %v5048_v59, 1  ;;  %v4058_v2 = vrot.slane %v5048_v59, 2  ;;  %v4059_v57 = vrot.slane %v5048_v59, 3  ;;  %v4060_v16 = vrot.slane %v5048_v59, 4 }
 0x633   : > { %v4061_v62 = vrot.slane %v5048_v59, 5  ;;  %v4062_v11 = vrot.slane %v5048_v59, 6  ;;  %v4063_v34 = vrot.slane %v5048_v59, 7  ;;  %v4072_v55 = vmul.f32 %v5048_v59, %v3907_v61  ;;  %v4095_v61 = vld [vmem:[#allocation10 + $0x78] sm:$0xff] }
 0x634   : > { %v4073_v22 = vmul.f32 %v4057_v4, %v3928_v53  ;;  %v4074_v10 = vmul.f32 %v4058_v2, %v3949_v24  ;;  %v4075_v58 = vmul.f32 %v4059_v57, %v3970_v45  ;;  %v4076_v7 = vmul.f32 %v4060_v16, %v3991_v30  ;;  %v8564_v59 = vld [vmem:[#allocation26_spill] sm:$0xff] }
 0x635   : > { %v4077_v14 = vmul.f32 %v4061_v62, %v4012_v23  ;;  %v4078_v47 = vmul.f32 %v4062_v11, %v4033_v15  ;;  %v4079_v18 = vmul.f32 %v4063_v34, %v4054_v63  ;;  %v4691_v53 = vpack.c.bf16 %v4095_v61, %v4094_v46 }
 0x636   : > { %v4120_v3 = vrot.slane %v4073_v22, 7  ;;  %v4122_v20 = vrot.slane %v4074_v10, 6  ;;  %v4124_v9 = vrot.slane %v4075_v58, 5  ;;  %v4126_v60 = vrot.slane %v4076_v7, 4 }
 0x637   : > { %v4128_v32 = vrot.slane %v4077_v14, 3  ;;  %v4130_v26 = vrot.slane %v4078_v47, 2  ;;  %v4132_v51 = vrot.slane %v4079_v18, 1 }
 0x638   : > { %v4121_v56 = vsel %vm8557_vm13, %v4120_v3, %v4072_v55 }
 0x639   : > { %v4123_v25 = vsel %vm8558_vm15, %v4122_v20, %v4121_v56 }
 0x63a   : > { %v4125_v48 = vsel %vm8559_vm1, %v4124_v9, %v4123_v25 }
 0x63b   : > { %v4127_v17 = vsel %vm1913_vm14, %v4126_v60, %v4125_v48 }
 0x63c   : > { %v4129_v28 = vsel %vm1915_vm0, %v4128_v32, %v4127_v17 }
 0x63d   : > { %v4131_v19 = vsel %vm1917_vm10, %v4130_v26, %v4129_v28 }
 0x63e   : > { %v4133_v5 = vsel %vm8560_vm2, %v4132_v51, %v4131_v19 }
 0x63f   : > { %4584 = vmatmul.mubr.f32.vlgmr.msra.gmra.mrb[0].mxu1 %v4133_v5 }
 0x640   : > { %4671 = vmatpush3.bf16.msra.mxu1 %v4670_v43  ;;  %4618 = vmatprep.mubr.msk.f32.mxu1 %vm8562_vm4, %v8561_v36 }
 0x641   : > { %4672 = vmatprep.subr.bf16.mxu1 %v8506_v49 }
 0x644   : > { %4674 = vmatpush3.bf16.msra.mxu1 %v4673_v33 }
 0x645   : > { %4675 = vmatprep.subr.bf16.mxu1 %v8506_v49 }
 0x648   : > { %4677 = vmatpush3.bf16.msra.mxu1 %v4676_v35 }
 0x649   : > { %4678 = vmatprep.subr.bf16.mxu1 %v8506_v49 }
 0x64c   : > { %4680 = vmatpush3.bf16.msra.mxu1 %v4679_v12 }
 0x64d   : > { %4681 = vmatprep.subr.bf16.mxu1 %v8506_v49 }
 0x650   : > { %4683 = vmatpush3.bf16.msra.mxu1 %v4682_v40 }
 0x651   : > { %4684 = vmatprep.subr.bf16.mxu1 %v8506_v49 }
 0x654   : > { %4686 = vmatpush3.bf16.msra.mxu1 %v4685_v54 }
 0x655   : > { %4687 = vmatprep.subr.bf16.mxu1 %v8506_v49 }
 0x658   : > { %4689 = vmatpush3.bf16.msra.mxu1 %v4688_v52 }
 0x659   : > { %4690 = vmatprep.subr.bf16.mxu1 %v8506_v49 }
 0x65c   : > { %4692 = vmatpush3.bf16.msra.mxu1 %v4691_v53 }
 0x65f   : > { %4619 = vmatmul.mubr.f32.vlgmr.msra.gmra.mrb[0].mxu1 %v8564_v59 }
 0x732   : > { %v4271_v24 = vpop.f32.mrb[0].mxu1 }
 0x733   : > { %4275 = vst [vmem:[%s416_s1] sm:$0xff] %v4271_v24  ;;  %v4620_v49 = vpop.f32.mrb[1].mxu1 }
 0x734   : > { %5236 = shalt.err (!%p5233_p5)
}
 0x735   : > { %s5237_s26 = scalar_lea.hbm %s7902_s23, 128  ;;  %s5241_s18 = scalar_lea.hbm %s8565_s20, 256 }
 0x736   : > { %p5238_p8 = scmp.ne.s32.totalorder %s7902_s23, %s5237_s26  ;;  %p5242_p12 = scmp.lt.u32.totalorder %s7902_s23, %s8565_s20 }
 0x737   : > { %p5243_p1 = scmp.lt.u32.totalorder %s5241_s18, %s5237_s26  ;;  %p5245_p10 = scmp.lt.u32.totalorder %s5237_s26, %s7902_s23 }
 0x738   : > { %p5239_p2 = pnand %p5238_p8, %p8566_p0 }
 0x739   : > { %p5244_p6 = por %p5243_p1, %p5242_p12 }
 0x73a   : > { %p5240_p9 = pneg %p5239_p2 }
 0x73b   : > { %p5246_p4 = por %p5245_p10, %p5244_p6 }
 0x73d   : > { %p5247_p11 = pnand %p5246_p4, %p5240_p9 }
 0x73f   : > { %5250 = shalt.err (!%p5247_p11)
}
 0x740   : > { %4713 = dma.vmem_to_hbm [thread:$0]  (%p8566_p0), %s7897_s10, 128, %s7902_s23, %s4277_s22  }
 0x741 PF: > { %s8567_s11 = sld [smem:[#allocation19_spill]]  ;;  %s8568_s17 = sld [smem:[#allocation21_spill]] }
 0x742   : > { %p8570_p7 = scmp.ge.s32.totalorder %s5301_s27, 2 }
 0x747   : > { %s4302_s8 = sand.u32 1, %s8567_s11   ;;  %p8569_p13 = scmp.ne.s32.totalorder %s8568_s17, 0 }
 0x748   : > { %s4303_s30 = scalar_lea.sflag [#allocation4], %s4302_s8 }
 0x749   : > { %p4736_p3 = pnand %p8570_p7, %p8569_p13 }
 0x74b   : > { %5284 = dma.done.wait (!%p4736_p3), %s4303_s30, 128  }
 0x74c   : > { %5286 = vsyncadd (!%p4736_p3), %s4303_s30, 4294967168  ;;  %s8571_s27 = sld [smem:[#allocation22_spill]]  ;;  %s8572_s13 = sld [smem:[#allocation20_spill]] }
 0x74d   : > { %s8573_s26 = sld [smem:[#allocation23_spill]]  ;;  %s8574_s24 = smov %s5293_s25 }
 0x752   : > { %p25_p5 = scmp.ge.s32.totalorder %s8571_s27, 4   ;;  %s8575_s25 = smov %s8572_s13 }
 0x754   :  { %27 = sbr.rel (!%p25_p5) target bundleno = 13 (0xd), region = 129 }
 0x75b   :  { %4308 = vsyncpa [#allocation3], 1 }
 0x75c   :  { %4310 = vsyncpa [#allocation3 + $0x1], 1 }
 0x75d   :  { %4311 = vsyncpa [#allocation6], 1 }
 0x75e   :  { %4313 = vsyncpa [#allocation6 + $0x1], 1 }
 0x75f   :  { %4314 = vsyncpa [#allocation9], 1 }
 0x760   :  { %4315 = vsyncpa [#allocation12], 1 }
 0x761   :  { %4316 = vsyncpa [#allocation4], 1 }
 0x762   :  { %4318 = vsyncpa [#allocation4 + $0x1], 1 }

</bundles_post_ra>
